<compile_context>
chip_gen: v7x
topology: tpu7x:2x2x1
jax: 0.10.0
libtpu: 0.0.40
codegen_flags: <defaults>
</compile_context>

<pallas_src>
import math
import numpy as np
import jax
import jax.numpy as jnp
from jax import lax
from jax.experimental import pallas as pl
from jax.experimental.pallas import tpu as pltpu


_LOG10_INV = 1.0 / math.log(10.0)


def _round_up(x, m):
    return ((x + m - 1) // m) * m


def _cdiv(a, b):
    return -(-a // b)


# ----------------------------------------------------------------------------
# Deterministic parameter construction (matches the torch module's __init__)
# ----------------------------------------------------------------------------

def _hann_window_periodic(n):
    """torch.hann_window(n, periodic=True)"""
    k = np.arange(n, dtype=np.float64)
    return 0.5 - 0.5 * np.cos(2.0 * np.pi * k / n)


def _hz_to_mel_slaney(f):
    f = np.asarray(f, dtype=np.float64)
    f_sp = 200.0 / 3.0
    min_log_hz = 1000.0
    min_log_mel = min_log_hz / f_sp
    logstep = np.log(6.4) / 27.0
    lin = f / f_sp
    log_part = min_log_mel + np.log(np.maximum(f, 1e-10) / min_log_hz) / logstep
    return np.where(f >= min_log_hz, log_part, lin)


def _mel_to_hz_slaney(m):
    m = np.asarray(m, dtype=np.float64)
    f_sp = 200.0 / 3.0
    min_log_hz = 1000.0
    min_log_mel = min_log_hz / f_sp
    logstep = np.log(6.4) / 27.0
    lin = m * f_sp
    log_part = min_log_hz * np.exp(logstep * (m - min_log_mel))
    return np.where(m >= min_log_mel, log_part, lin)


def _mel_librosa_fb(num_filters, fft_length, fs, low_freq, high_freq, norm=True):
    """librosa-style mel filterbank (Slaney norm), shape (fft_length//2+1, num_filters)."""
    n_freq = fft_length // 2 + 1
    fftfreqs = np.linspace(0.0, fs / 2.0, n_freq)
    mels = np.linspace(_hz_to_mel_slaney(low_freq), _hz_to_mel_slaney(high_freq),
                       num_filters + 2)
    mel_f = _mel_to_hz_slaney(mels)
    fdiff = np.diff(mel_f)
    ramps = mel_f[:, None] - fftfreqs[None, :]
    weights = np.zeros((num_filters, n_freq), dtype=np.float64)
    for i in range(num_filters):
        lower = -ramps[i] / fdiff[i]
        upper = ramps[i + 2] / fdiff[i + 1]
        weights[i] = np.maximum(0.0, np.minimum(lower, upper))
    if norm:
        enorm = 2.0 / (mel_f[2:num_filters + 2] - mel_f[:num_filters])
        weights *= enorm[:, None]
    return weights.T.astype(np.float32)  # (n_freq, num_filters)


# ----------------------------------------------------------------------------
# Pallas kernel: chunked frames @ [win*cos | win*(-sin)] -> |X| -> mel -> log10
# ----------------------------------------------------------------------------

def _logfb_kernel(chk_ref, dft_ref, fb_ref, out_ref):
    # chk_ref: (TR + extra, shift)  bf16/f32  overlapped waveform chunk slab
    # dft_ref: (N, 2*Fp)            bf16/f32  window-folded [cos | -sin], lane aligned
    # fb_ref:  (Fp, Mp)             bf16/f32  zero-padded mel filterbank
    # out_ref: (TR, Mp)             f32       lane-dense log10-mel slab
    tr = out_ref.shape[0]
    shift = chk_ref.shape[1]
    n_fft_rows, f2 = dft_ref.shape
    f_pad = f2 // 2
    n_sub = n_fft_rows // shift                      # frame_length // frame_shift (= 4)

    x = chk_ref[...]                                 # (TR + extra, shift)

    # Frame r = [chunk_r | chunk_{r+1} | ... | chunk_{r+n_sub-1}], so the
    # frames @ DFT matmul decomposes into n_sub row-shifted matmuls against
    # shift-row slabs of the window-folded DFT -- no 4x frames tensor needed.
    spec = None
    for j in range(n_sub):
        xj = lax.slice(x, (j, 0), (j + tr, shift))                  # (TR, shift)
        wj = dft_ref[pl.ds(j * shift, shift), :]                    # (shift, 2*Fp)
        pj = jnp.dot(xj, wj, preferred_element_type=jnp.float32)    # (TR, 2*Fp) f32
        spec = pj if spec is None else spec + pj

    re = spec[:, :f_pad]
    im = spec[:, f_pad:]
    # use_fft_mag=True -> |X(f)|.  Keep elementwise math in f32 (v5e has no
    # bf16 VPU/EUP path); bf16 only at the MXU operand boundary below.
    mag = jnp.sqrt(re * re + im * im)
    mel = jnp.dot(mag.astype(fb_ref.dtype), fb_ref[...],
                  preferred_element_type=jnp.float32)               # (TR, Mp) f32
    out_ref[...] = jnp.log(mel + 1e-10) * _LOG10_INV                # log10 * scale


# ----------------------------------------------------------------------------
# Python wrapper replicating Wav2KanBayashiLogFilterBank.forward
# ----------------------------------------------------------------------------

class Wav2KanBayashiLogFilterBankPallas:
    def __init__(self, fs=16000, frame_length=64, frame_shift=16, fft_length=1024,
                 remove_dc_offset=True, window_type="hanning",
                 low_freq=80, high_freq=7600, num_filters=80,
                 dither=1e-5, tile_rows=512, weight_dtype=jnp.bfloat16):
        # Fixed by the subclass: preemph_coeff=0, use_fft_mag=True,
        # fb_type='mel_librosa', norm_filters=True, snip_edges=False,
        # center=True, use_energy=False.
        # weight_dtype=jnp.float32 gives a full-precision validation path.
        self.fs = fs
        self.fft_length = fft_length
        self.remove_dc_offset = remove_dc_offset
        self.dither = dither
        self.num_filters = num_filters
        self.tile_rows = int(tile_rows)
        self._length = int(math.floor(frame_length * fs / 1000))   # 1024
        self._shift = int(math.floor(frame_shift * fs / 1000))     # 256
        assert self._length <= fft_length
        # Chunked (no-frames-tensor) formulation needs frame_length to be an
        # integer number of frame shifts (true for the module defaults).
        # TODO(synk): generic fallback (materialized frames) for other ratios.
        assert self._length % self._shift == 0, \
            "frame_length must be an integer multiple of frame_shift"

        if window_type != "hanning":
            raise ValueError("only 'hanning' (module default) is implemented here")

        N = self._length
        n_freq = fft_length // 2 + 1                                # 513
        m_pad = _round_up(num_filters, 128)                         # 80  -> 128

        # librosa/Slaney mel filterbank at full resolution.
        fb_full = _mel_librosa_fb(num_filters, fft_length, fs,
                                  low_freq, high_freq, norm=True)   # (513, 80)

        # Highest frequency bin with any nonzero mel weight.  With the default
        # high_freq=7600 < Nyquist this is bin 486, so keeping 512 bins is
        # bit-exact and trims ~20% of the dominant matmul; if the filters reach
        # Nyquist this falls back to zero-padding (513 -> 640) automatically.
        nz = np.nonzero(np.any(fb_full != 0.0, axis=1))[0]
        f_used = int(nz[-1]) + 1 if nz.size else 1
        f_pad = _round_up(max(f_used, 128), 128)                    # 487 -> 512
        n_keep = min(f_pad, n_freq)

        # Window-folded, fused, lane-aligned real-DFT matrix: x @ dft = [re | im].
        n = np.arange(N, dtype=np.float64)[:, None]
        k = np.arange(n_keep, dtype=np.float64)[None, :]
        ang = 2.0 * np.pi * n * k / fft_length
        win = _hann_window_periodic(N)[:, None]
        dft = np.zeros((N, 2 * f_pad), dtype=np.float64)
        dft[:, :n_keep] = win * np.cos(ang)
        dft[:, f_pad:f_pad + n_keep] = win * (-np.sin(ang))
        self.dft = jnp.asarray(dft.astype(np.float32)).astype(weight_dtype)

        # Zero-padded mel filterbank (extra rows/cols are zero -> inert).
        fb = np.zeros((f_pad, m_pad), dtype=np.float32)
        fb[:n_keep, :num_filters] = fb_full[:n_keep]
        self.fb = jnp.asarray(fb).astype(weight_dtype)

        self.frame_dtype = weight_dtype
        self._f_pad = f_pad
        self._m_pad = m_pad
        self.scale = _LOG10_INV                                     # applied inside kernel

        self._jit_forward = jax.jit(self._forward)

    # ------------------------------------------------------------------ tiling
    def _choose_tiling(self, num_frames, batch):
        cap = max(8, self.tile_rows)
        if num_frames <= 8:
            return 8, 1
        tiles = _cdiv(num_frames, cap)
        # v7x has 2 TensorCores: make sure the ("parallel","parallel") grid has
        # at least 2 steps so both cores get work (batch >= 2 already does).
        if batch == 1 and num_frames > 16:
            tiles = max(tiles, 2)
        tr = _round_up(_cdiv(num_frames, tiles), 8)
        return tr, tiles

    # ------------------------------------------------------------------ forward
    def _forward(self, x, key):
        x = x.astype(jnp.float32)
        if self.dither != 0.0:
            # NOTE: torch uses torch.randn; jax PRNG is statistically equivalent.
            x = x + self.dither * jax.random.normal(key, x.shape, dtype=jnp.float32)
        if self.remove_dc_offset:
            x = x - jnp.mean(x, axis=1, keepdims=True)
        # preemph_coeff == 0 for this module -> no preemphasis.

        N, shift = self._length, self._shift
        n_sub = N // shift
        npad = N // 2
        batch, num_samples = x.shape
        assert num_samples > npad, "waveform shorter than half a frame"
        num_frames = 1 + (num_samples + 2 * npad - N) // shift

        # center=True framing with reflect padding (= _get_strided_batch, center).
        pad_left = jnp.flip(x[:, 1:npad + 1], axis=1)
        pad_right = jnp.flip(x[:, -npad - 1:-1], axis=1)
        xp = jnp.concatenate([pad_left, x, pad_right], axis=1)      # (B, S + N)

        tr, tiles = self._choose_tiling(num_frames, batch)
        frames_pad = tr * tiles
        extra = _round_up(n_sub, 8)                                  # 8 for N/shift=4
        c_rows = tr + extra                                          # >= tr + n_sub - 1
        n_chunks = frames_pad + extra

        # Non-overlapping shift-sample chunks of the padded waveform (cast to
        # the MXU operand dtype first), then re-tiled into per-grid-step slabs
        # with an `extra`-row overlap (~1.6% duplication at TR=512) instead of
        # materializing the 4x-expanded frames tensor.
        xp = xp.astype(self.frame_dtype)
        xp = jnp.pad(xp, ((0, 0), (0, n_chunks * shift - xp.shape[1])))
        chunks = xp.reshape(batch, n_chunks, shift)
        row_idx = (jnp.arange(tiles)[:, None] * tr
                   + jnp.arange(c_rows)[None, :])                    # (tiles, c_rows)
        chk = jnp.take(chunks, row_idx, axis=1)                      # (B, tiles, c_rows, shift)

        f_pad, m_pad = self._f_pad, self._m_pad
        itemsize = int(np.dtype(self.frame_dtype).itemsize)
        flops = 2 * batch * frames_pad * (N * 2 * f_pad + f_pad * m_pad)
        bytes_accessed = (batch * tiles * c_rows * shift * itemsize
                          + N * 2 * f_pad * itemsize
                          + f_pad * m_pad * itemsize
                          + batch * frames_pad * m_pad * 4)

        out = pl.pallas_call(
            _logfb_kernel,
            out_shape=jax.ShapeDtypeStruct((batch, frames_pad, m_pad), jnp.float32),
            grid=(batch, tiles),
            in_specs=[
                pl.BlockSpec((None, None, c_rows, shift), lambda b, i: (b, i, 0, 0)),
                # Constant index maps -> DFT / filterbank stay resident in VMEM
                # across the whole grid (no re-DMA).
                pl.BlockSpec((N, 2 * f_pad), lambda b, i: (0, 0)),
                pl.BlockSpec((f_pad, m_pad), lambda b, i: (0, 0)),
            ],
            out_specs=pl.BlockSpec((None, tr, m_pad), lambda b, i: (b, i, 0)),
            compiler_params=pltpu.CompilerParams(
                dimension_semantics=("parallel", "parallel"),
                vmem_limit_bytes=32 * 1024 * 1024),
            cost_estimate=pl.CostEstimate(
                flops=int(flops),
                transcendentals=int(batch * frames_pad * (f_pad + m_pad)),
                bytes_accessed=int(bytes_accessed)),
        )(chk, self.dft, self.fb)

        return out[:, :num_frames, :self.num_filters]

    def __call__(self, x, key):
        return self._jit_forward(x, key)


if __name__ == "__main__":
    key = jax.random.PRNGKey(0)
    k_wave, k_dither = jax.random.split(key)

    batch, num_samples = 2, 4096                                    # small example input
    x = jax.random.normal(k_wave, (batch, num_samples), dtype=jnp.float32)

    # Production-config model (bf16 MXU operands).
    model = Wav2KanBayashiLogFilterBankPallas()
    y = jax.block_until_ready(model(x, k_dither))

    expected_frames = 1 + num_samples // model._shift               # center=True framing
    assert y.shape == (batch, expected_frames, model.num_filters), y.shape
    assert bool(jnp.all(jnp.isfinite(y)))

    # Numerical self-check: f32 weight path, dither disabled, against a pure
    # JAX rFFT/mel reference of the same forward pass.
    model_val = Wav2KanBayashiLogFilterBankPallas(dither=0.0, weight_dtype=jnp.float32)
    y_val = jax.block_until_ready(model_val(x, k_dither))

    def reference(xw):
        xw = xw - jnp.mean(xw, axis=1, keepdims=True)
        npad = model_val._length // 2
        xp = jnp.concatenate([jnp.flip(xw[:, 1:npad + 1], axis=1), xw,
                              jnp.flip(xw[:, -npad - 1:-1], axis=1)], axis=1)
        nf = 1 + num_samples // model_val._shift
        idx = (jnp.arange(nf)[:, None] * model_val._shift
               + jnp.arange(model_val._length)[None, :])
        win = jnp.asarray(_hann_window_periodic(model_val._length), jnp.float32)
        frames = xp[:, idx] * win
        spec = jnp.abs(jnp.fft.rfft(frames, n=model_val.fft_length, axis=-1))
        fb = jnp.asarray(_mel_librosa_fb(model_val.num_filters, model_val.fft_length,
                                         model_val.fs, 80, 7600, norm=True))
        mel = spec.astype(jnp.float32) @ fb
        return jnp.log(mel + 1e-10) / math.log(10.0)

    y_ref = jax.block_until_ready(reference(x))
    err = float(jnp.max(jnp.abs(y_val - y_ref)))
    assert err < 5e-2, f"kernel/reference mismatch: max abs err = {err}"

    print("KERNEL_OK")
</pallas_src>

<mosaic_0001>
module attributes {stable_mosaic.version = 11 : i64} {
  func.func @_logfb_kernel(%arg0: i32, %arg1: i32, %arg2: memref<1x1x32x256xbf16, #tpu.memory_space<vmem>>, %arg3: memref<1024x1024xbf16, #tpu.memory_space<vmem>>, %arg4: memref<512x128xbf16, #tpu.memory_space<vmem>>, %arg5: memref<1x24x128xf32, #tpu.memory_space<vmem>>) attributes {dimension_semantics = [#tpu.dimension_semantics<parallel>, #tpu.dimension_semantics<parallel>], iteration_bounds = array<i64: 2, 1>, scalar_prefetch = 0 : i64, scratch_operands = 0 : i64, tpu.core_type = #tpu.core_type<tc>, window_params = [{transform_indices = @transform_0, window_bounds = array<i64: 1, 1, 32, 256>}, {pipeline_mode = #tpu.pipeline_mode<synchronous>, transform_indices = @transform_1, window_bounds = array<i64: 1024, 1024>}, {pipeline_mode = #tpu.pipeline_mode<synchronous>, transform_indices = @transform_2, window_bounds = array<i64: 512, 128>}, {transform_indices = @transform_3, window_bounds = array<i64: 1, 24, 128>}]} {
    %c0 = arith.constant 0 : index
    %c0_0 = arith.constant 0 : index
    %c0_1 = arith.constant 0 : index
    %c0_2 = arith.constant 0 : index
    %0 = vector.load %arg2[%c0, %c0_0, %c0_1, %c0_2] : memref<1x1x32x256xbf16, #tpu.memory_space<vmem>>, vector<1x1x32x256xbf16>
    %1 = vector.shape_cast %0 : vector<1x1x32x256xbf16> to vector<32x256xbf16>
    %2 = vector.extract_strided_slice %1 {offsets = [0, 0], sizes = [24, 256], strides = [1, 1]} : vector<32x256xbf16> to vector<24x256xbf16>
    %c0_3 = arith.constant 0 : index
    %c0_4 = arith.constant 0 : index
    %3 = vector.load %arg3[%c0_3, %c0_4] : memref<1024x1024xbf16, #tpu.memory_space<vmem>>, vector<256x1024xbf16>
    %cst = arith.constant dense<0.000000e+00> : vector<24x1024xf32>
    %4 = tpu.matmul %2, %3, %cst {dimension_numbers = #tpu.dot_dimension_numbers<[1], [0], [0], [1], [0, 0, 1, 1], [], []>} : vector<24x256xbf16>, vector<256x1024xbf16>, vector<24x1024xf32> -> vector<24x1024xf32>
    %5 = vector.extract_strided_slice %1 {offsets = [1, 0], sizes = [24, 256], strides = [1, 1]} : vector<32x256xbf16> to vector<24x256xbf16>
    %c256 = arith.constant 256 : index
    %c0_5 = arith.constant 0 : index
    %6 = vector.load %arg3[%c256, %c0_5] : memref<1024x1024xbf16, #tpu.memory_space<vmem>>, vector<256x1024xbf16>
    %cst_6 = arith.constant dense<0.000000e+00> : vector<24x1024xf32>
    %7 = tpu.matmul %5, %6, %cst_6 {dimension_numbers = #tpu.dot_dimension_numbers<[1], [0], [0], [1], [0, 0, 1, 1], [], []>} : vector<24x256xbf16>, vector<256x1024xbf16>, vector<24x1024xf32> -> vector<24x1024xf32>
    %8 = arith.addf %4, %7 : vector<24x1024xf32>
    %9 = vector.extract_strided_slice %1 {offsets = [2, 0], sizes = [24, 256], strides = [1, 1]} : vector<32x256xbf16> to vector<24x256xbf16>
    %c512 = arith.constant 512 : index
    %c0_7 = arith.constant 0 : index
    %10 = vector.load %arg3[%c512, %c0_7] : memref<1024x1024xbf16, #tpu.memory_space<vmem>>, vector<256x1024xbf16>
    %cst_8 = arith.constant dense<0.000000e+00> : vector<24x1024xf32>
    %11 = tpu.matmul %9, %10, %cst_8 {dimension_numbers = #tpu.dot_dimension_numbers<[1], [0], [0], [1], [0, 0, 1, 1], [], []>} : vector<24x256xbf16>, vector<256x1024xbf16>, vector<24x1024xf32> -> vector<24x1024xf32>
    %12 = arith.addf %8, %11 : vector<24x1024xf32>
    %13 = vector.extract_strided_slice %1 {offsets = [3, 0], sizes = [24, 256], strides = [1, 1]} : vector<32x256xbf16> to vector<24x256xbf16>
    %c768 = arith.constant 768 : index
    %c0_9 = arith.constant 0 : index
    %14 = vector.load %arg3[%c768, %c0_9] : memref<1024x1024xbf16, #tpu.memory_space<vmem>>, vector<256x1024xbf16>
    %cst_10 = arith.constant dense<0.000000e+00> : vector<24x1024xf32>
    %15 = tpu.matmul %13, %14, %cst_10 {dimension_numbers = #tpu.dot_dimension_numbers<[1], [0], [0], [1], [0, 0, 1, 1], [], []>} : vector<24x256xbf16>, vector<256x1024xbf16>, vector<24x1024xf32> -> vector<24x1024xf32>
    %16 = arith.addf %12, %15 : vector<24x1024xf32>
    %17 = vector.extract_strided_slice %16 {offsets = [0, 0], sizes = [24, 512], strides = [1, 1]} : vector<24x1024xf32> to vector<24x512xf32>
    %18 = vector.extract_strided_slice %16 {offsets = [0, 512], sizes = [24, 512], strides = [1, 1]} : vector<24x1024xf32> to vector<24x512xf32>
    %19 = arith.mulf %17, %17 : vector<24x512xf32>
    %20 = arith.mulf %18, %18 : vector<24x512xf32>
    %21 = arith.addf %19, %20 : vector<24x512xf32>
    %22 = math.sqrt %21 : vector<24x512xf32>
    %23 = arith.truncf %22 : vector<24x512xf32> to vector<24x512xbf16>
    %c0_11 = arith.constant 0 : index
    %c0_12 = arith.constant 0 : index
    %24 = vector.load %arg4[%c0_11, %c0_12] : memref<512x128xbf16, #tpu.memory_space<vmem>>, vector<512x128xbf16>
    %cst_13 = arith.constant dense<0.000000e+00> : vector<24x128xf32>
    %25 = tpu.matmul %23, %24, %cst_13 {dimension_numbers = #tpu.dot_dimension_numbers<[1], [0], [0], [1], [0, 0, 1, 1], [], []>} : vector<24x512xbf16>, vector<512x128xbf16>, vector<24x128xf32> -> vector<24x128xf32>
    %cst_14 = arith.constant 1.000000e-10 : f32
    %26 = vector.broadcast %cst_14 : f32 to vector<24x128xf32>
    %27 = arith.addf %25, %26 : vector<24x128xf32>
    %28 = math.log %27 : vector<24x128xf32>
    %cst_15 = arith.constant 0.434294492 : f32
    %29 = vector.broadcast %cst_15 : f32 to vector<24x128xf32>
    %30 = arith.mulf %28, %29 : vector<24x128xf32>
    %c0_16 = arith.constant 0 : index
    %c0_17 = arith.constant 0 : index
    %c0_18 = arith.constant 0 : index
    %31 = vector.load %arg5[%c0_16, %c0_17, %c0_18] : memref<1x24x128xf32, #tpu.memory_space<vmem>>, vector<1x24x128xf32>
    %32 = vector.shape_cast %31 : vector<1x24x128xf32> to vector<24x128xf32>
    %33 = vector.shape_cast %30 : vector<24x128xf32> to vector<1x24x128xf32>
    tpu.vector_store %arg5[%c0_16, %c0_17, %c0_18], %33 {strides = array<i32>} : memref<1x24x128xf32, #tpu.memory_space<vmem>>, vector<1x24x128xf32>,
    return
  }
  func.func @transform_0(%arg0: i32, %arg1: i32) -> (i32, i32, i32, i32) {
    %c0_i32 = arith.constant 0 : i32
    %c0_i32_0 = arith.constant 0 : i32
    %c0_i32_1 = arith.constant 0 : i32
    return %arg0, %arg1, %c0_i32, %c0_i32_0 : i32, i32, i32, i32
  }
  func.func @transform_1(%arg0: i32, %arg1: i32) -> (i32, i32) {
    %c0_i32 = arith.constant 0 : i32
    %c0_i32_0 = arith.constant 0 : i32
    %c0_i32_1 = arith.constant 0 : i32
    return %c0_i32, %c0_i32_0 : i32, i32
  }
  func.func @transform_2(%arg0: i32, %arg1: i32) -> (i32, i32) {
    %c0_i32 = arith.constant 0 : i32
    %c0_i32_0 = arith.constant 0 : i32
    %c0_i32_1 = arith.constant 0 : i32
    return %c0_i32, %c0_i32_0 : i32, i32
  }
  func.func @transform_3(%arg0: i32, %arg1: i32) -> (i32, i32, i32) {
    %c0_i32 = arith.constant 0 : i32
    %c0_i32_0 = arith.constant 0 : i32
    return %arg0, %arg1, %c0_i32 : i32, i32, i32
  }
}

</mosaic_0001>

<bundles_post_ra>
// kernel: _forward.1
= control target key start
LH: loop header
LB: loop body
LE: loop exit
PB: predicated region body
PF: predicated region fallthrough
CT: control target
= control target key end

     0   :  { %s5672_s12 = smov 0   ;;  %s5674_s13 = smov 0   ;;  %s7642_s0 = inlined_call_operand.vmem [shape: bf16[2,1,32,256], index: 0, kind: input, shape index: {}]   ;;  %s7643_s1 = inlined_call_operand.vmem [shape: bf16[1024,1024], index: 1, kind: input, shape index: {}]   ;;  %s7644_s2 = inlined_call_operand.vmem [shape: bf16[512,128], index: 2, kind: input, shape index: {}]   ;;  %s7645_s3 = inlined_call_operand.vmem [shape: f32[2,24,128], index: 3, kind: output, shape index: {}]  }
   0x1   :  { %s5676_s14 = smov 0  }
   0x2 LB: > { %s25_s15 = sadd.s32 1, %s5646_s13  ;;  %p4822_p0 = scmp.ge.s32.totalorder %s5650_s14, 1  ;;  %s5650_s14 = sphi %s5676_s14, %s13_s14   ;;  %s5646_s13 = sphi %s5674_s13, %s7647_s13   ;;  %s5642_s12 = sphi %s5672_s12, %s7646_s12  }
   0x3   : > { %p27_p1 = scmp.ge.s32.totalorder %s25_s15, 2  ;;  %p157_p2 = scmp.lt.s32.totalorder %s5650_s14, 3 }
   0x5   : > { %s7649_s15 = smov (%p27_p1, %s25_s15), 0  ;;  %p158_p3 = pnand %p4822_p0, %p157_p2 }
   0x6   : > { %v341_v0 = vld [vmem:[%s7643_s1 + $0x400] sm:$0xff] (!%p158_p3)  ;;  %v342_v2 = vld [vmem:[%s7643_s1 + $0x408] sm:$0xff] (!%p158_p3)  ;;  %p189_p4 = scmp.lt.s32.totalorder (!%p158_p3), %s5642_s12, 1  ;;  %vm485_vm0 = vsmask.f32 (!%p158_p3), 7424  ;;  %vm2342_vm1 = vcmask (!%p158_p3), 1046528  }
   0x7   : > { %161 = sbr.rel (%p158_p3) target bundleno = 1005 (0x3ed), region = 32  ;;  %v345_v1 = vld [vmem:[%s7643_s1 + $0x420] sm:$0xff] (!%p158_p3)  ;;  %v346_v4 = vld [vmem:[%s7643_s1 + $0x428] sm:$0xff] (!%p158_p3)  ;;  %vm3349_vm2 = vsmask.f32 (!%p158_p3), 6400 }
   0x8   : > { %v4831_v3 = vcombine.high (!%p158_p3), %v341_v0, %v345_v1  ;;  %v4830_v5 = vcombine.low (!%p158_p3), %v341_v0, %v345_v1  ;;  %v349_v6 = vld [vmem:[%s7643_s1 + $0x440] sm:$0xff] (!%p158_p3)  ;;  %v4833_v8 = vcombine.high (!%p158_p3), %v342_v2, %v346_v4  ;;  %v4832_v9 = vcombine.low (!%p158_p3), %v342_v2, %v346_v4  ;;  %v350_v11 = vld [vmem:[%s7643_s1 + $0x448] sm:$0xff] (!%p158_p3) }
   0x9   : > { %v353_v7 = vld [vmem:[%s7643_s1 + $0x460] sm:$0xff] (!%p158_p3)  ;;  %v354_v12 = vld [vmem:[%s7643_s1 + $0x468] sm:$0xff] (!%p158_p3) }
   0xa   : > { %v4839_v10 = vcombine.high (!%p158_p3), %v349_v6, %v353_v7  ;;  %v357_v13 = vld [vmem:[%s7643_s1 + $0x480] sm:$0xff] (!%p158_p3)  ;;  %1160 = vmatprep.subr.bf16.mxu0 (!%p158_p3), %v4831_v3  ;;  %v4841_v14 = vcombine.high (!%p158_p3), %v350_v11, %v354_v12  ;;  %v358_v16 = vld [vmem:[%s7643_s1 + $0x488] sm:$0xff] (!%p158_p3)  ;;  %1211 = vmatprep.subr.bf16.mxu1 (!%p158_p3), %v4833_v8  ;;  %v4838_v18 = vcombine.low (!%p158_p3), %v349_v6, %v353_v7 }
   0xb   : > { %v361_v15 = vld [vmem:[%s7643_s1 + $0x4a0] sm:$0xff] (!%p158_p3)  ;;  %v362_v17 = vld [vmem:[%s7643_s1 + $0x4a8] sm:$0xff] (!%p158_p3)  ;;  %1161 = vmatpush1.bf16.msra.mxu0 (!%p158_p3), %v4830_v5  ;;  %1212 = vmatpush1.bf16.msra.mxu1 (!%p158_p3), %v4832_v9  ;;  %v4840_v19 = vcombine.low (!%p158_p3), %v350_v11, %v354_v12 }
   0xc   : > { %1162 = vmatprep.subr.bf16.mxu0 (!%p158_p3), %v4839_v10  ;;  %v4847_v20 = vcombine.high (!%p158_p3), %v357_v13, %v361_v15  ;;  %1213 = vmatprep.subr.bf16.mxu1 (!%p158_p3), %v4841_v14  ;;  %v4849_v21 = vcombine.high (!%p158_p3), %v358_v16, %v362_v17  ;;  %v365_v22 = vld [vmem:[%s7643_s1 + $0x4c0] sm:$0xff] (!%p158_p3)  ;;  %v366_v24 = vld [vmem:[%s7643_s1 + $0x4c8] sm:$0xff] (!%p158_p3)  ;;  %v4846_v26 = vcombine.low (!%p158_p3), %v357_v13, %v361_v15 }
   0xd   : > { %v369_v23 = vld [vmem:[%s7643_s1 + $0x4e0] sm:$0xff] (!%p158_p3)  ;;  %v370_v25 = vld [vmem:[%s7643_s1 + $0x4e8] sm:$0xff] (!%p158_p3)  ;;  %v4848_v27 = vcombine.low (!%p158_p3), %v358_v16, %v362_v17 }
   0xe   : > { %v4855_v28 = vcombine.high %v365_v22, %v369_v23  ;;  %v4857_v29 = vcombine.high %v366_v24, %v370_v25  ;;  %v373_v30 = vld [vmem:[%s7643_s1 + $0x500] sm:$0xff]  ;;  %v374_v32 = vld [vmem:[%s7643_s1 + $0x508] sm:$0xff]  ;;  %v4854_v34 = vcombine.low %v365_v22, %v369_v23  ;;  %s7651_s12 = smov (!%p189_p4, %s5642_s12), 1  ;;  %v4856_v35 = vcombine.low %v366_v24, %v370_v25 }
   0xf   : > { %1163 = vmatpush1.bf16.msra.mxu0 %v4838_v18  ;;  %1214 = vmatpush1.bf16.msra.mxu1 %v4840_v19  ;;  %v377_v31 = vld [vmem:[%s7643_s1 + $0x520] sm:$0xff]  ;;  %v378_v33 = vld [vmem:[%s7643_s1 + $0x528] sm:$0xff]  ;;  %s5378_s18 = sshll.u32 %s7651_s12, 5  ;;  %s5531_s20 = smul.u32 24, %s7651_s12 }
  0x10   : > { %1164 = vmatprep.subr.bf16.mxu0 %v4847_v20  ;;  %1215 = vmatprep.subr.bf16.mxu1 %v4849_v21  ;;  %v4863_v36 = vcombine.high %v373_v30, %v377_v31  ;;  %v4865_v37 = vcombine.high %v374_v32, %v378_v33  ;;  %v381_v38 = vld [vmem:[%s7643_s1 + $0x540] sm:$0xff]  ;;  %v382_v40 = vld [vmem:[%s7643_s1 + $0x548] sm:$0xff]  ;;  %v4862_v42 = vcombine.low %v373_v30, %v377_v31  ;;  %s5784_s29 = scalar_lea.vmem %s7642_s0, %s5378_s18 }
  0x11   : > { %v385_v39 = vld [vmem:[%s7643_s1 + $0x560] sm:$0xff]  ;;  %v386_v41 = vld [vmem:[%s7643_s1 + $0x568] sm:$0xff]  ;;  %v4864_v43 = vcombine.low %v374_v32, %v378_v33  ;;  %v211_v56 = vld [vmem:[%s5784_s29 + $0x10] sm:$0xff]  ;;  %s206_s23 = scalar_lea.vmem %s7645_s3, %s5531_s20 }
  0x12   : > { %v4871_v44 = vcombine.high %v381_v38, %v385_v39  ;;  %v4873_v45 = vcombine.high %v382_v40, %v386_v41  ;;  %v389_v46 = vld [vmem:[%s7643_s1 + $0x580] sm:$0xff]  ;;  %v390_v48 = vld [vmem:[%s7643_s1 + $0x588] sm:$0xff]  ;;  %v4870_v50 = vcombine.low %v381_v38, %v385_v39  ;;  %v4872_v51 = vcombine.low %v382_v40, %v386_v41  ;;  %v212_v57 = vld [vmem:[%s5784_s29 + $0x18] sm:$0xff] }
  0x13   : > { %1165 = vmatpush1.bf16.msra.mxu0 %v4846_v26  ;;  %1216 = vmatpush1.bf16.msra.mxu1 %v4848_v27  ;;  %v393_v47 = vld [vmem:[%s7643_s1 + $0x5a0] sm:$0xff]  ;;  %v394_v49 = vld [vmem:[%s7643_s1 + $0x5a8] sm:$0xff]  ;;  %v5803_v61 = vcombine.high %v211_v56, %v212_v57 }
  0x14   : > { %1166 = vmatprep.subr.bf16.mxu0 %v4855_v28  ;;  %1217 = vmatprep.subr.bf16.mxu1 %v4857_v29  ;;  %v4879_v52 = vcombine.high %v389_v46, %v393_v47  ;;  %v397_v53 = vld [vmem:[%s7643_s1 + $0x5c0] sm:$0xff]  ;;  %v4881_v54 = vcombine.high %v390_v48, %v394_v49  ;;  %v398_v58 = vld [vmem:[%s7643_s1 + $0x5c8] sm:$0xff]  ;;  %v4878_v62 = vcombine.low %v389_v46, %v393_v47 }
  0x15   : > { %v401_v55 = vld [vmem:[%s7643_s1 + $0x5e0] sm:$0xff]  ;;  %v402_v59 = vld [vmem:[%s7643_s1 + $0x5e8] sm:$0xff]  ;;  %v4880_v63 = vcombine.low %v390_v48, %v394_v49  ;;  %v506_v3 = vshll.u32 %v5803_v61, 16  ;;  %v5856_v29 = vcombine.low %v211_v56, %v212_v57 }
  0x16   : > { %v5801_v60 = vld [vmem:[%s5784_s29 + $0x4] ss:$8 sps:$4 sm:$0xff]   ;;  %v4887_v0 = vcombine.high %v397_v53, %v401_v55  ;;  %v4889_v4 = vcombine.high %v398_v58, %v402_v59  ;;  %v4886_v11 = vcombine.low %v397_v53, %v401_v55  ;;  %v4888_v12 = vcombine.low %v398_v58, %v402_v59 }
  0x17   : > { %1167 = vmatpush1.bf16.msra.mxu0 %v4854_v34  ;;  %1218 = vmatpush1.bf16.msra.mxu1 %v4856_v35  ;;  %v499_v1 = vshrl.u32 %v5801_v60, 16  ;;  %v501_v2 = vshll.u32 %v5801_v60, 16  ;;  %v405_v5 = vld [vmem:[%s7643_s1 + $0x600] sm:$0xff]  ;;  %v406_v7 = vld [vmem:[%s7643_s1 + $0x608] sm:$0xff]  ;;  %v5822_v10 = vrot.slane %v506_v3, 1  ;;  %v494_v39 = vshll.u32 %v5856_v29, 16 }
  0x18   : > { %1168 = vmatprep.subr.bf16.mxu0 %v4863_v36  ;;  %1219 = vmatprep.subr.bf16.mxu1 %v4865_v37  ;;  %v409_v6 = vld [vmem:[%s7643_s1 + $0x620] sm:$0xff]  ;;  %v410_v8 = vld [vmem:[%s7643_s1 + $0x628] sm:$0xff]  ;;  %v513_v36 = vshrl.u32 %v5803_v61, 16  ;;  %v510_v40 = vshrl.u32 %v5856_v29, 16 }
  0x19   : > { %v503_v9 = vrot.slane %v501_v2, 1  ;;  %v4895_v13 = vcombine.high %v405_v5, %v409_v6  ;;  %v4897_v15 = vcombine.high %v406_v7, %v410_v8  ;;  %v413_v16 = vld [vmem:[%s7643_s1 + $0x640] sm:$0xff]  ;;  %v414_v18 = vld [vmem:[%s7643_s1 + $0x648] sm:$0xff]  ;;  %v4894_v21 = vcombine.low %v405_v5, %v409_v6 }
  0x1a   : > { %v417_v17 = vld [vmem:[%s7643_s1 + $0x660] sm:$0xff]  ;;  %v418_v19 = vld [vmem:[%s7643_s1 + $0x668] sm:$0xff]  ;;  %v4896_v22 = vcombine.low %v406_v7, %v410_v8  ;;  %v3354_v46 = vrot.slane %v494_v39, 2  ;;  %v3353_v47 = vrot.slane %v510_v40, 1 }
  0x1b   : > { %1169 = vmatpush1.bf16.msra.mxu0 %v4862_v42  ;;  %1220 = vmatpush1.bf16.msra.mxu1 %v4864_v43  ;;  %v504_v14 = vor.u32 %v503_v9, %v499_v1  ;;  %v4903_v23 = vcombine.high %v413_v16, %v417_v17  ;;  %v4905_v24 = vcombine.high %v414_v18, %v418_v19  ;;  %v421_v25 = vld [vmem:[%s7643_s1 + $0x680] sm:$0xff]  ;;  %v422_v27 = vld [vmem:[%s7643_s1 + $0x688] sm:$0xff]  ;;  %v3361_v42 = vrot.slane %v506_v3, 2 }
  0x1c   : > { %1170 = vmatprep.subr.bf16.mxu0 %v4871_v44  ;;  %1221 = vmatprep.subr.bf16.mxu1 %v4873_v45  ;;  %v425_v26 = vld [vmem:[%s7643_s1 + $0x6a0] sm:$0xff]  ;;  %v426_v28 = vld [vmem:[%s7643_s1 + $0x6a8] sm:$0xff]  ;;  %v4902_v30 = vcombine.low %v413_v16, %v417_v17  ;;  %v4904_v31 = vcombine.low %v414_v18, %v418_v19  ;;  %v3360_v43 = vrot.slane %v513_v36, 1  ;;  %v5893_v57 = vor.u32 %v3354_v46, %v3353_v47 }
  0x1d   : > { %v5840_v20 = vsel %vm485_vm0, %v504_v14, %v5822_v10  ;;  %v4911_v32 = vcombine.high %v421_v25, %v425_v26  ;;  %v4913_v33 = vcombine.high %v422_v27, %v426_v28  ;;  %v429_v34 = vld [vmem:[%s7643_s1 + $0x6c0] sm:$0xff]  ;;  %v430_v37 = vld [vmem:[%s7643_s1 + $0x6c8] sm:$0xff]  ;;  %v4910_v41 = vcombine.low %v421_v25, %v425_v26 }
  0x1e   : > { %1192 = vmatprep.mubr.bf16.mxu0 %v5840_v20  ;;  %1243 = vmatprep.mubr.bf16.mxu1 %v5840_v20  ;;  %v433_v35 = vld [vmem:[%s7643_s1 + $0x6e0] sm:$0xff]  ;;  %v434_v38 = vld [vmem:[%s7643_s1 + $0x6e8] sm:$0xff]  ;;  %v4912_v44 = vcombine.low %v422_v27, %v426_v28 }
  0x1f   : > { %1171 = vmatpush1.bf16.msra.mxu0 %v4870_v50  ;;  %1222 = vmatpush1.bf16.msra.mxu1 %v4872_v51  ;;  %v4919_v45 = vcombine.high %v429_v34, %v433_v35  ;;  %v4921_v48 = vcombine.high %v430_v37, %v434_v38  ;;  %v437_v49 = vld [vmem:[%s7643_s1 + $0x700] sm:$0xff]  ;;  %v438_v51 = vld [vmem:[%s7643_s1 + $0x708] sm:$0xff]  ;;  %v4918_v53 = vcombine.low %v429_v34, %v433_v35 }
  0x20   : > { %1172 = vmatprep.subr.bf16.mxu0 %v4879_v52  ;;  %1223 = vmatprep.subr.bf16.mxu1 %v4881_v54  ;;  %v441_v50 = vld [vmem:[%s7643_s1 + $0x720] sm:$0xff]  ;;  %v442_v52 = vld [vmem:[%s7643_s1 + $0x728] sm:$0xff]  ;;  %v5891_v54 = vor.u32 %v3361_v42, %v3360_v43  ;;  %v4920_v55 = vcombine.low %v430_v37, %v434_v38  ;;  %v496_v37 = vrot.slane %v494_v39, 1  ;;  %v351_v43 = vld [vmem:[%s7643_s1 + $0x450] sm:$0xff] }
  0x21   : > { %v4927_v56 = vcombine.high %v437_v49, %v441_v50  ;;  %v4929_v58 = vcombine.high %v438_v51, %v442_v52  ;;  %v445_v59 = vld [vmem:[%s7643_s1 + $0x740] sm:$0xff]  ;;  %v4926_v3 = vcombine.low %v437_v49, %v441_v50  ;;  %v4928_v5 = vcombine.low %v438_v51, %v442_v52  ;;  %v356_v39 = vld [vmem:[%s7643_s1 + $0x478] sm:$0xff]  ;;  %v359_v51 = vld [vmem:[%s7643_s1 + $0x490] sm:$0xff] }
  0x22   : > { %v453_v8 = vld [vmem:[%s7643_s1 + $0x780] sm:$0xff]  ;;  %v363_v52 = vld [vmem:[%s7643_s1 + $0x4b0] sm:$0xff] }
  0x23   : > { %1173 = vmatpush1.bf16.msra.mxu0 %v4878_v62  ;;  %1224 = vmatpush1.bf16.msra.mxu1 %v4880_v63  ;;  %v449_v62 = vld [vmem:[%s7643_s1 + $0x760] sm:$0xff]  ;;  %v446_v63 = vld [vmem:[%s7643_s1 + $0x748] sm:$0xff] }
  0x24   : > { %1174 = vmatprep.subr.bf16.mxu0 %v4887_v0  ;;  %1225 = vmatprep.subr.bf16.mxu1 %v4889_v4  ;;  %v450_v0 = vld [vmem:[%s7643_s1 + $0x768] sm:$0xff]  ;;  %v4935_v6 = vcombine.high %v445_v59, %v449_v62  ;;  %v457_v9 = vld [vmem:[%s7643_s1 + $0x7a0] sm:$0xff] }
  0x25   : > { %v5908_v4 = vld [vmem:[%s5784_s29] ss:$8 sps:$4 sm:$0xff]   ;;  %v4937_v7 = vcombine.high %v446_v63, %v450_v0  ;;  %v4943_v16 = vcombine.high %v453_v8, %v457_v9 }
  0x26   : > { %v489_v14 = vshll.u32 %v5908_v4, 16  ;;  %v461_v18 = vld [vmem:[%s7643_s1 + $0x7c0] sm:$0xff] }
  0x27   : > { %1175 = vmatpush1.bf16.msra.mxu0 %v4886_v11  ;;  %1226 = vmatpush1.bf16.msra.mxu1 %v4888_v12  ;;  %v454_v11 = vld [vmem:[%s7643_s1 + $0x788] sm:$0xff]  ;;  %v465_v19 = vld [vmem:[%s7643_s1 + $0x7e0] sm:$0xff] }
  0x28   : > { %1176 = vmatprep.subr.bf16.mxu0 %v4895_v13  ;;  %1227 = vmatprep.subr.bf16.mxu1 %v4897_v15  ;;  %v458_v12 = vld [vmem:[%s7643_s1 + $0x7a8] sm:$0xff]  ;;  %v4934_v13 = vcombine.low %v445_v59, %v449_v62  ;;  %v4936_v15 = vcombine.low %v446_v63, %v450_v0  ;;  %v491_v25 = vrot.slane %v489_v14, 1  ;;  %v4951_v27 = vcombine.high %v461_v18, %v465_v19  ;;  %v367_v63 = vld [vmem:[%s7643_s1 + $0x4d0] sm:$0xff] }
  0x29   : > { %v4945_v17 = vcombine.high %v454_v11, %v458_v12  ;;  %v4944_v26 = vcombine.low %v454_v11, %v458_v12  ;;  %v4950_v34 = vcombine.low %v461_v18, %v465_v19  ;;  %v4851_v62 = vcombine.high %v359_v51, %v363_v52  ;;  %v379_v11 = vld [vmem:[%s7643_s1 + $0x530] sm:$0xff]  ;;  %v376_v12 = vld [vmem:[%s7643_s1 + $0x518] sm:$0xff] }
  0x2a   : > { %v383_v18 = vld [vmem:[%s7643_s1 + $0x550] sm:$0xff] }
  0x2b   : > { %1177 = vmatpush1.bf16.msra.mxu0 %v4894_v21  ;;  %1228 = vmatpush1.bf16.msra.mxu1 %v4896_v22  ;;  %v462_v21 = vld [vmem:[%s7643_s1 + $0x7c8] sm:$0xff]  ;;  %v387_v19 = vld [vmem:[%s7643_s1 + $0x570] sm:$0xff] }
  0x2c   : > { %1178 = vmatprep.subr.bf16.mxu0 %v4903_v23  ;;  %1229 = vmatprep.subr.bf16.mxu1 %v4905_v24  ;;  %v466_v22 = vld [vmem:[%s7643_s1 + $0x7e8] sm:$0xff]  ;;  %v4942_v23 = vcombine.low %v453_v8, %v457_v9  ;;  %v487_v24 = vshrl.u32 %v5908_v4, 16  ;;  %v375_v9 = vld [vmem:[%s7643_s1 + $0x510] sm:$0xff]  ;;  %v3228_v4 = vld [vmem:[%s7643_s1 + $0xc38] sm:$0xff] }
  0x2d   : > { %v4953_v28 = vcombine.high %v462_v21, %v466_v22  ;;  %v4952_v38 = vcombine.low %v462_v21, %v466_v22  ;;  %v384_v21 = vld [vmem:[%s7643_s1 + $0x558] sm:$0xff] }
  0x2e   : > { %v492_v35 = vor.u32 %v491_v25, %v487_v24  ;;  %v4866_v25 = vcombine.low %v375_v9, %v379_v11 }
  0x2f   : > { %1179 = vmatpush1.bf16.msra.mxu0 %v4902_v30  ;;  %1230 = vmatpush1.bf16.msra.mxu1 %v4904_v31  ;;  %v343_v30 = vld [vmem:[%s7643_s1 + $0x410] sm:$0xff] }
  0x30   : > { %1180 = vmatprep.subr.bf16.mxu0 %v4911_v32  ;;  %1231 = vmatprep.subr.bf16.mxu1 %v4913_v33  ;;  %v347_v31 = vld [vmem:[%s7643_s1 + $0x430] sm:$0xff]  ;;  %v344_v32 = vld [vmem:[%s7643_s1 + $0x418] sm:$0xff]  ;;  %v5967_v47 = vsel %vm485_vm0, %v492_v35, %v496_v37 }
  0x31   : > { %v348_v33 = vld [vmem:[%s7643_s1 + $0x438] sm:$0xff]  ;;  %v4834_v46 = vcombine.low %v343_v30, %v347_v31 }
  0x32   : > { %v4837_v42 = vcombine.high %v344_v32, %v348_v33 }
  0x33   : > { %1181 = vmatpush1.bf16.msra.mxu0 %v4910_v41  ;;  %1232 = vmatpush1.bf16.msra.mxu1 %v4912_v44  ;;  %v4835_v41 = vcombine.high %v343_v30, %v347_v31  ;;  %v355_v44 = vld [vmem:[%s7643_s1 + $0x470] sm:$0xff]  ;;  %v392_v31 = vld [vmem:[%s7643_s1 + $0x598] sm:$0xff] }
  0x34   : > { %1182 = vmatprep.subr.bf16.mxu0 %v4919_v45  ;;  %1233 = vmatprep.subr.bf16.mxu1 %v4921_v48  ;;  %v352_v45 = vld [vmem:[%s7643_s1 + $0x458] sm:$0xff]  ;;  %v4836_v48 = vcombine.low %v344_v32, %v348_v33  ;;  %v4843_v49 = vcombine.high %v351_v43, %v355_v44  ;;  %v395_v30 = vld [vmem:[%s7643_s1 + $0x5b0] sm:$0xff]  ;;  %v4874_v33 = vcombine.low %v383_v18, %v387_v19 }
  0x35   : > { %v4845_v50 = vcombine.high %v352_v45, %v356_v39  ;;  %v4844_v59 = vcombine.low %v352_v45, %v356_v39  ;;  %v396_v32 = vld [vmem:[%s7643_s1 + $0x5b8] sm:$0xff] }
  0x36   : > { %v4884_v45 = vcombine.low %v392_v31, %v396_v32 }
  0x37   : > { %1183 = vmatpush1.bf16.msra.mxu0 %v4918_v53  ;;  %1234 = vmatpush1.bf16.msra.mxu1 %v4920_v55  ;;  %v360_v53 = vld [vmem:[%s7643_s1 + $0x498] sm:$0xff]  ;;  %v5981_v55 = vor.u32 %v513_v36, %v5822_v10  ;;  %v371_v10 = vld [vmem:[%s7643_s1 + $0x4f0] sm:$0xff] }
  0x38   : > { %1184 = vmatprep.subr.bf16.mxu0 %v4927_v56  ;;  %1235 = vmatprep.subr.bf16.mxu1 %v4929_v58  ;;  %v364_v56 = vld [vmem:[%s7643_s1 + $0x4b8] sm:$0xff]  ;;  %v4842_v58 = vcombine.low %v351_v43, %v355_v44  ;;  %v4859_v8 = vcombine.high %v367_v63, %v371_v10 }
  0x39   : > { %v368_v36 = vld [vmem:[%s7643_s1 + $0x4d8] sm:$0xff]  ;;  %v4853_v0 = vcombine.high %v360_v53, %v364_v56 }
  0x3a   : > { %v404_v43 = vld [vmem:[%s7643_s1 + $0x5f8] sm:$0xff] }
  0x3b   : > { %1185 = vmatpush1.bf16.msra.mxu0 %v4926_v3  ;;  %1236 = vmatpush1.bf16.msra.mxu1 %v4928_v5  ;;  %v372_v3 = vld [vmem:[%s7643_s1 + $0x4f8] sm:$0xff]  ;;  %v6004_v5 = vor.u32 %v510_v40, %v496_v37  ;;  %v399_v37 = vld [vmem:[%s7643_s1 + $0x5d0] sm:$0xff] }
  0x3c   : > { %1186 = vmatprep.subr.bf16.mxu0 %v4935_v6  ;;  %1237 = vmatprep.subr.bf16.mxu1 %v4937_v7  ;;  %v4850_v6 = vcombine.low %v359_v51, %v363_v52  ;;  %v4852_v7 = vcombine.low %v360_v53, %v364_v56  ;;  %v4861_v40 = vcombine.high %v368_v36, %v372_v3  ;;  %v412_v51 = vld [vmem:[%s7643_s1 + $0x638] sm:$0xff] }
  0x3f   : > { %1187 = vmatpush1.bf16.msra.mxu0 %v4934_v13  ;;  %1238 = vmatpush1.bf16.msra.mxu1 %v4936_v15  ;;  %v380_v13 = vld [vmem:[%s7643_s1 + $0x538] sm:$0xff]  ;;  %v4858_v15 = vcombine.low %v367_v63, %v371_v10 }
  0x40   : > { %1188 = vmatprep.subr.bf16.mxu0 %v4943_v16  ;;  %1239 = vmatprep.subr.bf16.mxu1 %v4945_v17  ;;  %v4860_v16 = vcombine.low %v368_v36, %v372_v3  ;;  %v4867_v17 = vcombine.high %v375_v9, %v379_v11  ;;  %v4869_v22 = vcombine.high %v376_v12, %v380_v13  ;;  %v420_v10 = vld [vmem:[%s7643_s1 + $0x678] sm:$0xff] }
  0x41   : > { %v424_v9 = vld [vmem:[%s7643_s1 + $0x698] sm:$0xff] }
  0x42   : > { %v428_v11 = vld [vmem:[%s7643_s1 + $0x6b8] sm:$0xff] }
  0x43   : > { %1189 = vmatpush1.bf16.msra.mxu0 %v4942_v23  ;;  %1240 = vmatpush1.bf16.msra.mxu1 %v4944_v26  ;;  %v388_v23 = vld [vmem:[%s7643_s1 + $0x578] sm:$0xff]  ;;  %v4868_v26 = vcombine.low %v376_v12, %v380_v13 }
  0x44   : > { %1190 = vmatprep.subr.bf16.mxu0 %v4951_v27  ;;  %1241 = vmatprep.subr.bf16.mxu1 %v4953_v28  ;;  %v4875_v27 = vcombine.high %v383_v18, %v387_v19  ;;  %v391_v28 = vld [vmem:[%s7643_s1 + $0x590] sm:$0xff]  ;;  %v432_v18 = vld [vmem:[%s7643_s1 + $0x6d8] sm:$0xff] }
  0x45   : > { %v4883_v35 = vcombine.high %v391_v28, %v395_v30  ;;  %v4882_v44 = vcombine.low %v391_v28, %v395_v30  ;;  %v436_v19 = vld [vmem:[%s7643_s1 + $0x6f8] sm:$0xff] }
  0x46   : > { %v440_v28 = vld [vmem:[%s7643_s1 + $0x718] sm:$0xff] }
  0x47   : > { %1191 = vmatpush1.bf16.msra.mxu0 %v4950_v34  ;;  %1242 = vmatpush1.bf16.msra.mxu1 %v4952_v38  ;;  %v4876_v34 = vcombine.low %v384_v21, %v388_v23  ;;  %v403_v38 = vld [vmem:[%s7643_s1 + $0x5f0] sm:$0xff]  ;;  %v444_v30 = vld [vmem:[%s7643_s1 + $0x738] sm:$0xff] }
  0x48   : > { %1262 = vmatprep.subr.bf16.mxu0 %v4835_v41  ;;  %1313 = vmatprep.subr.bf16.mxu1 %v4837_v42  ;;  %v400_v41 = vld [vmem:[%s7643_s1 + $0x5d8] sm:$0xff]  ;;  %v4885_v42 = vcombine.high %v392_v31, %v396_v32  ;;  %v4891_v39 = vcombine.high %v399_v37, %v403_v38  ;;  %v4890_v52 = vcombine.low %v399_v37, %v403_v38 }
  0x49   : > { %v4892_v53 = vcombine.low %v400_v41, %v404_v43  ;;  %v448_v37 = vld [vmem:[%s7643_s1 + $0x758] sm:$0xff] }
  0x4a   : > { %1193 = vmatmul.mubr.bf16.vlgmr.msra.gmra.mrb[0].mxu0 %v5967_v47  ;;  %1244 = vmatmul.mubr.bf16.vlgmr.msra.gmra.mrb[0].mxu1 %v5967_v47  ;;  %v452_v38 = vld [vmem:[%s7643_s1 + $0x778] sm:$0xff] }
  0x4b   : > { %1263 = vmatpush1.bf16.msra.mxu0 %v4834_v46  ;;  %1314 = vmatpush1.bf16.msra.mxu1 %v4836_v48  ;;  %v407_v46 = vld [vmem:[%s7643_s1 + $0x610] sm:$0xff] }
  0x4c   : > { %1264 = vmatprep.subr.bf16.mxu0 %v4843_v49  ;;  %1315 = vmatprep.subr.bf16.mxu1 %v4845_v50  ;;  %v411_v48 = vld [vmem:[%s7643_s1 + $0x630] sm:$0xff]  ;;  %v408_v49 = vld [vmem:[%s7643_s1 + $0x618] sm:$0xff]  ;;  %v4893_v50 = vcombine.high %v400_v41, %v404_v43 }
  0x4d   : > { %1202 = vmatprep.mubr.bf16.mxu0 %v5981_v55  ;;  %1253 = vmatprep.mubr.bf16.mxu1 %v5981_v55  ;;  %v4899_v56 = vcombine.high %v407_v46, %v411_v48  ;;  %v4901_v63 = vcombine.high %v408_v49, %v412_v51  ;;  %v4898_v36 = vcombine.low %v407_v46, %v411_v48  ;;  %v456_v46 = vld [vmem:[%s7643_s1 + $0x798] sm:$0xff] }
  0x4e   : > { %v460_v48 = vld [vmem:[%s7643_s1 + $0x7b8] sm:$0xff] }
  0x4f   : > { %1265 = vmatpush1.bf16.msra.mxu0 %v4842_v58  ;;  %1316 = vmatpush1.bf16.msra.mxu1 %v4844_v59  ;;  %v415_v58 = vld [vmem:[%s7643_s1 + $0x650] sm:$0xff] }
  0x50   : > { %1266 = vmatprep.subr.bf16.mxu0 %v4851_v62  ;;  %1317 = vmatprep.subr.bf16.mxu1 %v4853_v0  ;;  %v419_v59 = vld [vmem:[%s7643_s1 + $0x670] sm:$0xff]  ;;  %v416_v62 = vld [vmem:[%s7643_s1 + $0x658] sm:$0xff]  ;;  %v4900_v0 = vcombine.low %v408_v49, %v412_v51 }
  0x51   : > { %v4907_v3 = vcombine.high %v415_v58, %v419_v59  ;;  %v4906_v12 = vcombine.low %v415_v58, %v419_v59  ;;  %v464_v58 = vld [vmem:[%s7643_s1 + $0x7d8] sm:$0xff] }
  0x52   : > { %1203 = vmatmul.mubr.bf16.gmra.mrb[4].mxu0 %v6004_v5  ;;  %1254 = vmatmul.mubr.bf16.gmra.mrb[4].mxu1 %v6004_v5  ;;  %v468_v59 = vld [vmem:[%s7643_s1 + $0x7f8] sm:$0xff] }
  0x53   : > { %1267 = vmatpush1.bf16.msra.mxu0 %v4850_v6  ;;  %1318 = vmatpush1.bf16.msra.mxu1 %v4852_v7  ;;  %v423_v6 = vld [vmem:[%s7643_s1 + $0x690] sm:$0xff]  ;;  %v4909_v7 = vcombine.high %v416_v62, %v420_v10 }
  0x54   : > { %1268 = vmatprep.subr.bf16.mxu0 %v4859_v8  ;;  %1319 = vmatprep.subr.bf16.mxu1 %v4861_v40  ;;  %v427_v8 = vld [vmem:[%s7643_s1 + $0x6b0] sm:$0xff]  ;;  %v4908_v40 = vcombine.low %v416_v62, %v420_v10 }
  0x55   : > { %1294 = vmatprep.mubr.bf16.mxu0 %v5840_v20  ;;  %1345 = vmatprep.mubr.bf16.mxu1 %v5840_v20  ;;  %v4877_v20 = vcombine.high %v384_v21, %v388_v23  ;;  %v4915_v13 = vcombine.high %v423_v6, %v427_v8  ;;  %v4914_v21 = vcombine.low %v423_v6, %v427_v8  ;;  %v214_v6 = vld [vmem:[%s7643_s1 + $0x8] sm:$0xff] }
  0x57   : > { %1269 = vmatpush1.bf16.msra.mxu0 %v4858_v15  ;;  %1320 = vmatpush1.bf16.msra.mxu1 %v4860_v16  ;;  %v4917_v15 = vcombine.high %v424_v9, %v428_v11  ;;  %v431_v16 = vld [vmem:[%s7643_s1 + $0x6d0] sm:$0xff] }
  0x58   : > { %1270 = vmatprep.subr.bf16.mxu0 %v4867_v17  ;;  %1321 = vmatprep.subr.bf16.mxu1 %v4869_v22  ;;  %v435_v17 = vld [vmem:[%s7643_s1 + $0x6f0] sm:$0xff]  ;;  %v4916_v22 = vcombine.low %v424_v9, %v428_v11  ;;  %v4956_v9 = vcombine.low %v464_v58, %v468_v59 }
  0x59   : > { %v4923_v23 = vcombine.high %v431_v16, %v435_v17  ;;  %v4922_v31 = vcombine.low %v431_v16, %v435_v17  ;;  %v226_v16 = vld [vmem:[%s7643_s1 + $0x68] sm:$0xff] }
  0x5b   : > { %1271 = vmatpush1.bf16.msra.mxu0 %v4866_v25  ;;  %1322 = vmatpush1.bf16.msra.mxu1 %v4868_v26  ;;  %v4925_v25 = vcombine.high %v432_v18, %v436_v19  ;;  %v439_v26 = vld [vmem:[%s7643_s1 + $0x710] sm:$0xff] }
  0x5c   : > { %1272 = vmatprep.subr.bf16.mxu0 %v4875_v27  ;;  %1323 = vmatprep.subr.bf16.mxu1 %v4877_v20  ;;  %v443_v27 = vld [vmem:[%s7643_s1 + $0x730] sm:$0xff]  ;;  %v4924_v20 = vcombine.low %v432_v18, %v436_v19 }
  0x5d   : > { %v4931_v32 = vcombine.high %v439_v26, %v443_v27  ;;  %v4930_v41 = vcombine.low %v439_v26, %v443_v27  ;;  %v234_v26 = vld [vmem:[%s7643_s1 + $0xa8] sm:$0xff] }
  0x5f   : > { %1273 = vmatpush1.bf16.msra.mxu0 %v4874_v33  ;;  %1324 = vmatpush1.bf16.msra.mxu1 %v4876_v34  ;;  %v4933_v33 = vcombine.high %v440_v28, %v444_v30  ;;  %v447_v34 = vld [vmem:[%s7643_s1 + $0x750] sm:$0xff] }
  0x60   : > { %1274 = vmatprep.subr.bf16.mxu0 %v4883_v35  ;;  %1325 = vmatprep.subr.bf16.mxu1 %v4885_v42  ;;  %v451_v35 = vld [vmem:[%s7643_s1 + $0x770] sm:$0xff]  ;;  %v4932_v42 = vcombine.low %v440_v28, %v444_v30 }
  0x61   : > { %v4939_v43 = vcombine.high %v447_v34, %v451_v35  ;;  %v4938_v49 = vcombine.low %v447_v34, %v451_v35 }
  0x63   : > { %1275 = vmatpush1.bf16.msra.mxu0 %v4882_v44  ;;  %1326 = vmatpush1.bf16.msra.mxu1 %v4884_v45  ;;  %v4941_v44 = vcombine.high %v448_v37, %v452_v38  ;;  %v455_v45 = vld [vmem:[%s7643_s1 + $0x790] sm:$0xff] }
  0x64   : > { %1276 = vmatprep.subr.bf16.mxu0 %v4891_v39  ;;  %1327 = vmatprep.subr.bf16.mxu1 %v4893_v50  ;;  %v459_v39 = vld [vmem:[%s7643_s1 + $0x7b0] sm:$0xff]  ;;  %v4940_v50 = vcombine.low %v448_v37, %v452_v38 }
  0x65   : > { %v4947_v51 = vcombine.high %v455_v45, %v459_v39  ;;  %v4946_v62 = vcombine.low %v455_v45, %v459_v39 }
  0x67   : > { %1277 = vmatpush1.bf16.msra.mxu0 %v4890_v52  ;;  %1328 = vmatpush1.bf16.msra.mxu1 %v4892_v53  ;;  %v4949_v52 = vcombine.high %v456_v46, %v460_v48  ;;  %v463_v53 = vld [vmem:[%s7643_s1 + $0x7d0] sm:$0xff] }
  0x68   : > { %1278 = vmatprep.subr.bf16.mxu0 %v4899_v56  ;;  %1329 = vmatprep.subr.bf16.mxu1 %v4901_v63  ;;  %v467_v56 = vld [vmem:[%s7643_s1 + $0x7f0] sm:$0xff]  ;;  %v4948_v63 = vcombine.low %v456_v46, %v460_v48  ;;  %v253_v48 = vld [vmem:[%s7643_s1 + $0x140] sm:$0xff] }
  0x69   : > { %v4955_v10 = vcombine.high %v463_v53, %v467_v56  ;;  %v4954_v8 = vcombine.low %v463_v53, %v467_v56 }
  0x6b   : > { %1279 = vmatpush1.bf16.msra.mxu0 %v4898_v36  ;;  %1330 = vmatpush1.bf16.msra.mxu1 %v4900_v0  ;;  %v4957_v36 = vcombine.high %v464_v58, %v468_v59  ;;  %v213_v0 = vld [vmem:[%s7643_s1] sm:$0xff] }
  0x6c   : > { %1280 = vmatprep.subr.bf16.mxu0 %v4907_v3  ;;  %1331 = vmatprep.subr.bf16.mxu1 %v4909_v7  ;;  %v217_v3 = vld [vmem:[%s7643_s1 + $0x20] sm:$0xff]  ;;  %v218_v7 = vld [vmem:[%s7643_s1 + $0x28] sm:$0xff] }
  0x6d   : > { %v4961_v11 = vcombine.high %v213_v0, %v217_v3  ;;  %v4960_v17 = vcombine.low %v213_v0, %v217_v3  ;;  %v4962_v18 = vcombine.low %v214_v6, %v218_v7  ;;  %v261_v58 = vld [vmem:[%s7643_s1 + $0x180] sm:$0xff] }
  0x6e   : > { %v265_v59 = vld [vmem:[%s7643_s1 + $0x1a0] sm:$0xff] }
  0x6f   : > { %1281 = vmatpush1.bf16.msra.mxu0 %v4906_v12  ;;  %1332 = vmatpush1.bf16.msra.mxu1 %v4908_v40  ;;  %v4963_v12 = vcombine.high %v214_v6, %v218_v7  ;;  %v221_v40 = vld [vmem:[%s7643_s1 + $0x40] sm:$0xff]  ;;  %v5009_v0 = vcombine.high %v261_v58, %v265_v59 }
  0x70   : > { %1282 = vmatprep.subr.bf16.mxu0 %v4915_v13  ;;  %1333 = vmatprep.subr.bf16.mxu1 %v4917_v15  ;;  %v225_v13 = vld [vmem:[%s7643_s1 + $0x60] sm:$0xff]  ;;  %v222_v15 = vld [vmem:[%s7643_s1 + $0x48] sm:$0xff] }
  0x71   : > { %v4969_v19 = vcombine.high %v221_v40, %v225_v13  ;;  %v4968_v27 = vcombine.low %v221_v40, %v225_v13  ;;  %v4970_v28 = vcombine.low %v222_v15, %v226_v16  ;;  %v269_v6 = vld [vmem:[%s7643_s1 + $0x1c0] sm:$0xff] }
  0x72   : > { %v273_v7 = vld [vmem:[%s7643_s1 + $0x1e0] sm:$0xff] }
  0x73   : > { %1283 = vmatpush1.bf16.msra.mxu0 %v4914_v21  ;;  %1334 = vmatpush1.bf16.msra.mxu1 %v4916_v22  ;;  %v4971_v21 = vcombine.high %v222_v15, %v226_v16  ;;  %v229_v22 = vld [vmem:[%s7643_s1 + $0x80] sm:$0xff]  ;;  %v5017_v40 = vcombine.high %v269_v6, %v273_v7 }
  0x74   : > { %1284 = vmatprep.subr.bf16.mxu0 %v4923_v23  ;;  %1335 = vmatprep.subr.bf16.mxu1 %v4925_v25  ;;  %v233_v23 = vld [vmem:[%s7643_s1 + $0xa0] sm:$0xff]  ;;  %v230_v25 = vld [vmem:[%s7643_s1 + $0x88] sm:$0xff] }
  0x75   : > { %v4977_v30 = vcombine.high %v229_v22, %v233_v23  ;;  %v4976_v34 = vcombine.low %v229_v22, %v233_v23  ;;  %v4978_v35 = vcombine.low %v230_v25, %v234_v26  ;;  %v277_v15 = vld [vmem:[%s7643_s1 + $0x200] sm:$0xff] }
  0x76   : > { %v281_v16 = vld [vmem:[%s7643_s1 + $0x220] sm:$0xff] }
  0x77   : > { %1285 = vmatpush1.bf16.msra.mxu0 %v4922_v31  ;;  %1336 = vmatpush1.bf16.msra.mxu1 %v4924_v20  ;;  %v4979_v31 = vcombine.high %v230_v25, %v234_v26  ;;  %v237_v20 = vld [vmem:[%s7643_s1 + $0xc0] sm:$0xff]  ;;  %v5025_v22 = vcombine.high %v277_v15, %v281_v16 }
  0x78   : > { %1286 = vmatprep.subr.bf16.mxu0 %v4931_v32  ;;  %1337 = vmatprep.subr.bf16.mxu1 %v4933_v33  ;;  %v241_v32 = vld [vmem:[%s7643_s1 + $0xe0] sm:$0xff]  ;;  %v242_v33 = vld [vmem:[%s7643_s1 + $0xe8] sm:$0xff] }
  0x79   : > { %v4985_v37 = vcombine.high %v237_v20, %v241_v32  ;;  %v285_v25 = vld [vmem:[%s7643_s1 + $0x240] sm:$0xff] }
  0x7a   : > { %v289_v26 = vld [vmem:[%s7643_s1 + $0x260] sm:$0xff] }
  0x7b   : > { %1287 = vmatpush1.bf16.msra.mxu0 %v4930_v41  ;;  %1338 = vmatpush1.bf16.msra.mxu1 %v4932_v42  ;;  %v245_v41 = vld [vmem:[%s7643_s1 + $0x100] sm:$0xff] }
  0x7c   : > { %1288 = vmatprep.subr.bf16.mxu0 %v4939_v43  ;;  %1339 = vmatprep.subr.bf16.mxu1 %v4941_v44  ;;  %v249_v42 = vld [vmem:[%s7643_s1 + $0x120] sm:$0xff]  ;;  %v250_v43 = vld [vmem:[%s7643_s1 + $0x128] sm:$0xff]  ;;  %v4984_v44 = vcombine.low %v237_v20, %v241_v32  ;;  %v5033_v20 = vcombine.high %v285_v25, %v289_v26 }
  0x7d   : > { %v4993_v39 = vcombine.high %v245_v41, %v249_v42 }
  0x7f   : > { %1289 = vmatpush1.bf16.msra.mxu0 %v4938_v49  ;;  %1340 = vmatpush1.bf16.msra.mxu1 %v4940_v50  ;;  %v257_v49 = vld [vmem:[%s7643_s1 + $0x160] sm:$0xff]  ;;  %v258_v50 = vld [vmem:[%s7643_s1 + $0x168] sm:$0xff] }
  0x80   : > { %1290 = vmatprep.subr.bf16.mxu0 %v4947_v51  ;;  %1341 = vmatprep.subr.bf16.mxu1 %v4949_v52  ;;  %v4992_v51 = vcombine.low %v245_v41, %v249_v42  ;;  %v5001_v53 = vcombine.high %v253_v48, %v257_v49 }
  0x83   : > { %1291 = vmatpush1.bf16.msra.mxu0 %v4946_v62  ;;  %1342 = vmatpush1.bf16.msra.mxu1 %v4948_v63  ;;  %v262_v62 = vld [vmem:[%s7643_s1 + $0x188] sm:$0xff] }
  0x84   : > { %1292 = vmatprep.subr.bf16.mxu0 %v4955_v10  ;;  %1343 = vmatprep.subr.bf16.mxu1 %v4957_v36  ;;  %v266_v63 = vld [vmem:[%s7643_s1 + $0x1a8] sm:$0xff]  ;;  %v5000_v10 = vcombine.low %v253_v48, %v257_v49 }
  0x85   : > { %v5011_v3 = vcombine.high %v262_v62, %v266_v63 }
  0x87   : > { %1293 = vmatpush1.bf16.msra.mxu0 %v4954_v8  ;;  %1344 = vmatpush1.bf16.msra.mxu1 %v4956_v9  ;;  %v270_v8 = vld [vmem:[%s7643_s1 + $0x1c8] sm:$0xff] }
  0x88   : > { %2010 = vmatprep.subr.bf16.mxu0 %v4961_v11  ;;  %2061 = vmatprep.subr.bf16.mxu1 %v4963_v12  ;;  %v274_v9 = vld [vmem:[%s7643_s1 + $0x1e8] sm:$0xff]  ;;  %v5008_v11 = vcombine.low %v261_v58, %v265_v59  ;;  %v5010_v12 = vcombine.low %v262_v62, %v266_v63  ;;  %v317_v62 = vld [vmem:[%s7643_s1 + $0x340] sm:$0xff] }
  0x89   : > { %v5019_v13 = vcombine.high %v270_v8, %v274_v9  ;;  %v321_v63 = vld [vmem:[%s7643_s1 + $0x360] sm:$0xff] }
  0x8a   : > { %1295 = vmatmul.mubr.bf16.vlgmr.msra.gmra.mrb[8].mxu0 %v5967_v47  ;;  %1346 = vmatmul.mubr.bf16.vlgmr.msra.gmra.mrb[8].mxu1 %v5967_v47  ;;  %v238_v47 = vld [vmem:[%s7643_s1 + $0xc8] sm:$0xff] }
  0x8b   : > { %2011 = vmatpush1.bf16.msra.mxu0 %v4960_v17  ;;  %2062 = vmatpush1.bf16.msra.mxu1 %v4962_v18  ;;  %v4987_v38 = vcombine.high %v238_v47, %v242_v33  ;;  %v4986_v45 = vcombine.low %v238_v47, %v242_v33  ;;  %v278_v17 = vld [vmem:[%s7643_s1 + $0x208] sm:$0xff]  ;;  %v293_v47 = vld [vmem:[%s7643_s1 + $0x280] sm:$0xff] }
  0x8c   : > { %2012 = vmatprep.subr.bf16.mxu0 %v4969_v19  ;;  %2063 = vmatprep.subr.bf16.mxu1 %v4971_v21  ;;  %v282_v18 = vld [vmem:[%s7643_s1 + $0x228] sm:$0xff]  ;;  %v5016_v19 = vcombine.low %v269_v6, %v273_v7  ;;  %v5018_v21 = vcombine.low %v270_v8, %v274_v9  ;;  %v297_v33 = vld [vmem:[%s7643_s1 + $0x2a0] sm:$0xff]  ;;  %v5065_v6 = vcombine.high %v317_v62, %v321_v63 }
  0x8d   : > { %1304 = vmatprep.mubr.bf16.mxu0 %v5981_v55  ;;  %1355 = vmatprep.mubr.bf16.mxu1 %v5981_v55  ;;  %v246_v55 = vld [vmem:[%s7643_s1 + $0x108] sm:$0xff]  ;;  %v5027_v23 = vcombine.high %v278_v17, %v282_v18  ;;  %v5041_v41 = vcombine.high %v293_v47, %v297_v33  ;;  %v325_v8 = vld [vmem:[%s7643_s1 + $0x380] sm:$0xff] }
  0x8e   : > { %v4995_v46 = vcombine.high %v246_v55, %v250_v43  ;;  %v4994_v52 = vcombine.low %v246_v55, %v250_v43  ;;  %v301_v55 = vld [vmem:[%s7643_s1 + $0x2c0] sm:$0xff] }
  0x8f   : > { %2013 = vmatpush1.bf16.msra.mxu0 %v4968_v27  ;;  %2064 = vmatpush1.bf16.msra.mxu1 %v4970_v28  ;;  %v286_v27 = vld [vmem:[%s7643_s1 + $0x248] sm:$0xff]  ;;  %v305_v43 = vld [vmem:[%s7643_s1 + $0x2e0] sm:$0xff] }
  0x90   : > { %2014 = vmatprep.subr.bf16.mxu0 %v4977_v30  ;;  %2065 = vmatprep.subr.bf16.mxu1 %v4979_v31  ;;  %v290_v28 = vld [vmem:[%s7643_s1 + $0x268] sm:$0xff]  ;;  %v5024_v30 = vcombine.low %v277_v15, %v281_v16  ;;  %v5026_v31 = vcombine.low %v278_v17, %v282_v18  ;;  %v5049_v48 = vcombine.high %v301_v55, %v305_v43  ;;  %v329_v9 = vld [vmem:[%s7643_s1 + $0x3a0] sm:$0xff] }
  0x91   : > { %v5035_v32 = vcombine.high %v286_v27, %v290_v28  ;;  %v5073_v15 = vcombine.high %v325_v8, %v329_v9  ;;  %v333_v17 = vld [vmem:[%s7643_s1 + $0x3c0] sm:$0xff] }
  0x92   : > { %1305 = vmatmul.mubr.bf16.gmra.mrb[12].mxu0 %v6004_v5  ;;  %1356 = vmatmul.mubr.bf16.gmra.mrb[12].mxu1 %v6004_v5  ;;  %v254_v5 = vld [vmem:[%s7643_s1 + $0x148] sm:$0xff]  ;;  %v337_v18 = vld [vmem:[%s7643_s1 + $0x3e0] sm:$0xff] }
  0x93   : > { %2015 = vmatpush1.bf16.msra.mxu0 %v4976_v34  ;;  %2066 = vmatpush1.bf16.msra.mxu1 %v4978_v35  ;;  %v5003_v56 = vcombine.high %v254_v5, %v258_v50  ;;  %v5002_v36 = vcombine.low %v254_v5, %v258_v50  ;;  %v294_v34 = vld [vmem:[%s7643_s1 + $0x288] sm:$0xff]  ;;  %v309_v5 = vld [vmem:[%s7643_s1 + $0x300] sm:$0xff] }
  0x94   : > { %2016 = vmatprep.subr.bf16.mxu0 %v4985_v37  ;;  %2067 = vmatprep.subr.bf16.mxu1 %v4987_v38  ;;  %v298_v35 = vld [vmem:[%s7643_s1 + $0x2a8] sm:$0xff]  ;;  %v5032_v37 = vcombine.low %v285_v25, %v289_v26  ;;  %v5034_v38 = vcombine.low %v286_v27, %v290_v28  ;;  %v313_v50 = vld [vmem:[%s7643_s1 + $0x320] sm:$0xff]  ;;  %v5081_v25 = vcombine.high %v333_v17, %v337_v18  ;;  %v215_v27 = vld [vmem:[%s7643_s1 + $0x10] sm:$0xff] }
  0x95   : > { %2042 = vmatprep.mubr.bf16.mxu0 %v5801_v60  ;;  %2093 = vmatprep.mubr.bf16.mxu1 %v5801_v60  ;;  %v5043_v42 = vcombine.high %v294_v34, %v298_v35  ;;  %v5057_v58 = vcombine.high %v309_v5, %v313_v50  ;;  %v219_v28 = vld [vmem:[%s7643_s1 + $0x30] sm:$0xff]  ;;  %v3246_v60 = vld [vmem:[%s7643_s1 + $0xcc8] sm:$0xff] }
  0x97   : > { %2017 = vmatpush1.bf16.msra.mxu0 %v4984_v44  ;;  %2068 = vmatpush1.bf16.msra.mxu1 %v4986_v45  ;;  %v302_v44 = vld [vmem:[%s7643_s1 + $0x2c8] sm:$0xff] }
  0x98   : > { %2018 = vmatprep.subr.bf16.mxu0 %v4993_v39  ;;  %2069 = vmatprep.subr.bf16.mxu1 %v4995_v46  ;;  %v306_v45 = vld [vmem:[%s7643_s1 + $0x2e8] sm:$0xff]  ;;  %v5040_v39 = vcombine.low %v293_v47, %v297_v33  ;;  %v5042_v46 = vcombine.low %v294_v34, %v298_v35  ;;  %v4965_v47 = vcombine.high %v215_v27, %v219_v28  ;;  %v223_v34 = vld [vmem:[%s7643_s1 + $0x50] sm:$0xff] }
  0x99   : > { %v5051_v49 = vcombine.high %v302_v44, %v306_v45  ;;  %v227_v35 = vld [vmem:[%s7643_s1 + $0x70] sm:$0xff] }
  0x9b   : > { %2019 = vmatpush1.bf16.msra.mxu0 %v4992_v51  ;;  %2070 = vmatpush1.bf16.msra.mxu1 %v4994_v52  ;;  %v310_v51 = vld [vmem:[%s7643_s1 + $0x308] sm:$0xff] }
  0x9c   : > { %2020 = vmatprep.subr.bf16.mxu0 %v5001_v53  ;;  %2071 = vmatprep.subr.bf16.mxu1 %v5003_v56  ;;  %v314_v52 = vld [vmem:[%s7643_s1 + $0x328] sm:$0xff]  ;;  %v5048_v53 = vcombine.low %v301_v55, %v305_v43  ;;  %v5050_v56 = vcombine.low %v302_v44, %v306_v45  ;;  %v4973_v55 = vcombine.high %v223_v34, %v227_v35  ;;  %v231_v44 = vld [vmem:[%s7643_s1 + $0x90] sm:$0xff] }
  0x9d   : > { %v5059_v59 = vcombine.high %v310_v51, %v314_v52  ;;  %v235_v45 = vld [vmem:[%s7643_s1 + $0xb0] sm:$0xff] }
  0x9f   : > { %2021 = vmatpush1.bf16.msra.mxu0 %v5000_v10  ;;  %2072 = vmatpush1.bf16.msra.mxu1 %v5002_v36  ;;  %v318_v10 = vld [vmem:[%s7643_s1 + $0x348] sm:$0xff] }
  0xa0   : > { %2022 = vmatprep.subr.bf16.mxu0 %v5009_v0  ;;  %2073 = vmatprep.subr.bf16.mxu1 %v5011_v3  ;;  %v322_v36 = vld [vmem:[%s7643_s1 + $0x368] sm:$0xff]  ;;  %v5056_v0 = vcombine.low %v309_v5, %v313_v50  ;;  %v5058_v3 = vcombine.low %v310_v51, %v314_v52  ;;  %v236_v5 = vld [vmem:[%s7643_s1 + $0xb8] sm:$0xff]  ;;  %v4972_v50 = vcombine.low %v223_v34, %v227_v35  ;;  %v275_v34 = vld [vmem:[%s7643_s1 + $0x1f0] sm:$0xff] }
  0xa1   : > { %v5067_v7 = vcombine.high %v318_v10, %v322_v36  ;;  %v4981_v52 = vcombine.high %v231_v44, %v235_v45  ;;  %v272_v35 = vld [vmem:[%s7643_s1 + $0x1d8] sm:$0xff] }
  0xa3   : > { %2023 = vmatpush1.bf16.msra.mxu0 %v5008_v11  ;;  %2074 = vmatpush1.bf16.msra.mxu1 %v5010_v12  ;;  %v326_v11 = vld [vmem:[%s7643_s1 + $0x388] sm:$0xff] }
  0xa4   : > { %2024 = vmatprep.subr.bf16.mxu0 %v5017_v40  ;;  %2075 = vmatprep.subr.bf16.mxu1 %v5019_v13  ;;  %v330_v12 = vld [vmem:[%s7643_s1 + $0x3a8] sm:$0xff]  ;;  %v5064_v40 = vcombine.low %v317_v62, %v321_v63  ;;  %v5066_v13 = vcombine.low %v318_v10, %v322_v36  ;;  %v244_v62 = vld [vmem:[%s7643_s1 + $0xf8] sm:$0xff]  ;;  %v4980_v10 = vcombine.low %v231_v44, %v235_v45  ;;  %v283_v44 = vld [vmem:[%s7643_s1 + $0x230] sm:$0xff] }
  0xa5   : > { %v5075_v16 = vcombine.high %v326_v11, %v330_v12  ;;  %v280_v45 = vld [vmem:[%s7643_s1 + $0x218] sm:$0xff] }
  0xa7   : > { %2025 = vmatpush1.bf16.msra.mxu0 %v5016_v19  ;;  %2076 = vmatpush1.bf16.msra.mxu1 %v5018_v21  ;;  %v334_v19 = vld [vmem:[%s7643_s1 + $0x3c8] sm:$0xff] }
  0xa8   : > { %2026 = vmatprep.subr.bf16.mxu0 %v5025_v22  ;;  %2077 = vmatprep.subr.bf16.mxu1 %v5027_v23  ;;  %v338_v21 = vld [vmem:[%s7643_s1 + $0x3e8] sm:$0xff]  ;;  %v5072_v22 = vcombine.low %v325_v8, %v329_v9  ;;  %v5074_v23 = vcombine.low %v326_v11, %v330_v12  ;;  %v248_v8 = vld [vmem:[%s7643_s1 + $0x118] sm:$0xff] }
  0xa9   : > { %v5083_v26 = vcombine.high %v334_v19, %v338_v21  ;;  %v252_v9 = vld [vmem:[%s7643_s1 + $0x138] sm:$0xff] }
  0xab   : > { %2027 = vmatpush1.bf16.msra.mxu0 %v5024_v30  ;;  %2078 = vmatpush1.bf16.msra.mxu1 %v5026_v31  ;;  %v216_v30 = vld [vmem:[%s7643_s1 + $0x18] sm:$0xff] }
  0xac   : > { %2028 = vmatprep.subr.bf16.mxu0 %v5033_v20  ;;  %2079 = vmatprep.subr.bf16.mxu1 %v5035_v32  ;;  %v220_v31 = vld [vmem:[%s7643_s1 + $0x38] sm:$0xff]  ;;  %v5080_v20 = vcombine.low %v333_v17, %v337_v18  ;;  %v5082_v32 = vcombine.low %v334_v19, %v338_v21  ;;  %v6435_v17 = vld [vmem:[%s5784_s29 + $0x4] ss:$8 sps:$4 sm:$0xff]  }
  0xad   : > { %v4967_v33 = vcombine.high %v216_v30, %v220_v31  ;;  %v256_v18 = vld [vmem:[%s7643_s1 + $0x158] sm:$0xff] }
  0xae   : > { %v260_v19 = vld [vmem:[%s7643_s1 + $0x178] sm:$0xff] }
  0xaf   : > { %2029 = vmatpush1.bf16.msra.mxu0 %v5032_v37  ;;  %2080 = vmatpush1.bf16.msra.mxu1 %v5034_v38  ;;  %v224_v37 = vld [vmem:[%s7643_s1 + $0x58] sm:$0xff] }
  0xb0   : > { %2030 = vmatprep.subr.bf16.mxu0 %v5041_v41  ;;  %2081 = vmatprep.subr.bf16.mxu1 %v5043_v42  ;;  %v228_v38 = vld [vmem:[%s7643_s1 + $0x78] sm:$0xff]  ;;  %v4964_v41 = vcombine.low %v215_v27, %v219_v28  ;;  %v4966_v42 = vcombine.low %v216_v30, %v220_v31  ;;  %v267_v27 = vld [vmem:[%s7643_s1 + $0x1b0] sm:$0xff] }
  0xb1   : > { %v4975_v43 = vcombine.high %v224_v37, %v228_v38  ;;  %v4974_v51 = vcombine.low %v224_v37, %v228_v38  ;;  %v264_v28 = vld [vmem:[%s7643_s1 + $0x198] sm:$0xff] }
  0xb2   : > { %v268_v30 = vld [vmem:[%s7643_s1 + $0x1b8] sm:$0xff] }
  0xb3   : > { %2031 = vmatpush1.bf16.msra.mxu0 %v5040_v39  ;;  %2082 = vmatpush1.bf16.msra.mxu1 %v5042_v46  ;;  %v5625_v39 = vld [vmem:[%s5784_s29 + $0x10] sm:$0xff]  ;;  %v276_v37 = vld [vmem:[%s7643_s1 + $0x1f8] sm:$0xff] }
  0xb4   : > { %2032 = vmatprep.subr.bf16.mxu0 %v5049_v48  ;;  %2083 = vmatprep.subr.bf16.mxu1 %v5051_v49  ;;  %v6385_v46 = vcombine.high %v5625_v39, %v5625_v39  ;;  %v6388_v48 = vld [vmem:[%s5784_s29] ss:$8 sps:$4 sm:$0xff]   ;;  %v232_v49 = vld [vmem:[%s7643_s1 + $0x98] sm:$0xff]  ;;  %v6412_v63 = vcombine.low %v5625_v39, %v5625_v39 }
  0xb5   : > { %v4982_v36 = vcombine.low %v232_v49, %v236_v5  ;;  %v284_v39 = vld [vmem:[%s7643_s1 + $0x238] sm:$0xff] }
  0xb7   : > { %2033 = vmatpush1.bf16.msra.mxu0 %v5048_v53  ;;  %2084 = vmatpush1.bf16.msra.mxu1 %v5050_v56  ;;  %v4983_v53 = vcombine.high %v232_v49, %v236_v5  ;;  %v239_v56 = vld [vmem:[%s7643_s1 + $0xd0] sm:$0xff]  ;;  %v5022_v5 = vcombine.low %v272_v35, %v276_v37 }
  0xb8   : > { %2034 = vmatprep.subr.bf16.mxu0 %v5057_v58  ;;  %2085 = vmatprep.subr.bf16.mxu1 %v5059_v59  ;;  %v243_v58 = vld [vmem:[%s7643_s1 + $0xf0] sm:$0xff]  ;;  %v240_v59 = vld [vmem:[%s7643_s1 + $0xd8] sm:$0xff] }
  0xb9   : > { %v4988_v11 = vcombine.low %v239_v56, %v243_v58  ;;  %v4990_v12 = vcombine.low %v240_v59, %v244_v62 }
  0xbb   : > { %2035 = vmatpush1.bf16.msra.mxu0 %v5056_v0  ;;  %2086 = vmatpush1.bf16.msra.mxu1 %v5058_v3  ;;  %v4989_v0 = vcombine.high %v239_v56, %v243_v58  ;;  %v4991_v3 = vcombine.high %v240_v59, %v244_v62  ;;  %v288_v56 = vld [vmem:[%s7643_s1 + $0x258] sm:$0xff]  ;;  %v5030_v62 = vcombine.low %v280_v45, %v284_v39 }
  0xbc   : > { %2036 = vmatprep.subr.bf16.mxu0 %v5065_v6  ;;  %2087 = vmatprep.subr.bf16.mxu1 %v5067_v7  ;;  %v247_v6 = vld [vmem:[%s7643_s1 + $0x110] sm:$0xff]  ;;  %v292_v58 = vld [vmem:[%s7643_s1 + $0x278] sm:$0xff] }
  0xbd   : > { %v251_v7 = vld [vmem:[%s7643_s1 + $0x130] sm:$0xff] }
  0xbe   : > { %v4996_v21 = vcombine.low %v247_v6, %v251_v7 }
  0xbf   : > { %2037 = vmatpush1.bf16.msra.mxu0 %v5064_v40  ;;  %2088 = vmatpush1.bf16.msra.mxu1 %v5066_v13  ;;  %v4997_v40 = vcombine.high %v247_v6, %v251_v7  ;;  %v4999_v13 = vcombine.high %v248_v8, %v252_v9  ;;  %v296_v6 = vld [vmem:[%s7643_s1 + $0x298] sm:$0xff] }
  0xc0   : > { %2038 = vmatprep.subr.bf16.mxu0 %v5073_v15  ;;  %2089 = vmatprep.subr.bf16.mxu1 %v5075_v16  ;;  %v255_v15 = vld [vmem:[%s7643_s1 + $0x150] sm:$0xff]  ;;  %v300_v7 = vld [vmem:[%s7643_s1 + $0x2b8] sm:$0xff] }
  0xc1   : > { %v259_v16 = vld [vmem:[%s7643_s1 + $0x170] sm:$0xff] }
  0xc2   : > { %v5004_v31 = vcombine.low %v255_v15, %v259_v16 }
  0xc3   : > { %2039 = vmatpush1.bf16.msra.mxu0 %v5072_v22  ;;  %2090 = vmatpush1.bf16.msra.mxu1 %v5074_v23  ;;  %v4998_v22 = vcombine.low %v248_v8, %v252_v9  ;;  %v5005_v23 = vcombine.high %v255_v15, %v259_v16  ;;  %v5038_v9 = vcombine.low %v288_v56, %v292_v58  ;;  %v304_v15 = vld [vmem:[%s7643_s1 + $0x2d8] sm:$0xff] }
  0xc4   : > { %2040 = vmatprep.subr.bf16.mxu0 %v5081_v25  ;;  %2091 = vmatprep.subr.bf16.mxu1 %v5083_v26  ;;  %v5007_v25 = vcombine.high %v256_v18, %v260_v19  ;;  %v263_v26 = vld [vmem:[%s7643_s1 + $0x190] sm:$0xff]  ;;  %v308_v16 = vld [vmem:[%s7643_s1 + $0x2f8] sm:$0xff] }
  0xc5   : > { %v5012_v38 = vcombine.low %v263_v26, %v267_v27 }
  0xc7   : > { %2041 = vmatpush1.bf16.msra.mxu0 %v5080_v20  ;;  %2092 = vmatpush1.bf16.msra.mxu1 %v5082_v32  ;;  %v5006_v20 = vcombine.low %v256_v18, %v260_v19  ;;  %v5013_v32 = vcombine.high %v263_v26, %v267_v27  ;;  %v5046_v19 = vcombine.low %v296_v6, %v300_v7  ;;  %v312_v26 = vld [vmem:[%s7643_s1 + $0x318] sm:$0xff] }
  0xc8   : > { %2112 = vmatprep.subr.bf16.mxu0 %v4965_v47  ;;  %2163 = vmatprep.subr.bf16.mxu1 %v4967_v33  ;;  %v5015_v47 = vcombine.high %v264_v28, %v268_v30  ;;  %v271_v33 = vld [vmem:[%s7643_s1 + $0x1d0] sm:$0xff]  ;;  %v316_v27 = vld [vmem:[%s7643_s1 + $0x338] sm:$0xff] }
  0xc9   : > { %v5020_v49 = vcombine.low %v271_v33, %v275_v34 }
  0xca   : > { %2043 = vmatmul.mubr.bf16.vlgmr.msra.gmra.mrb[0].mxu0 %v6388_v48  ;;  %2094 = vmatmul.mubr.bf16.vlgmr.msra.gmra.mrb[0].mxu1 %v6388_v48 }
  0xcb   : > { %2113 = vmatpush1.bf16.msra.mxu0 %v4964_v41  ;;  %2164 = vmatpush1.bf16.msra.mxu1 %v4966_v42  ;;  %v5014_v41 = vcombine.low %v264_v28, %v268_v30  ;;  %v5021_v42 = vcombine.high %v271_v33, %v275_v34  ;;  %v5054_v30 = vcombine.low %v304_v15, %v308_v16  ;;  %v320_v33 = vld [vmem:[%s7643_s1 + $0x358] sm:$0xff] }
  0xcc   : > { %2114 = vmatprep.subr.bf16.mxu0 %v4973_v55  ;;  %2165 = vmatprep.subr.bf16.mxu1 %v4975_v43  ;;  %v5023_v55 = vcombine.high %v272_v35, %v276_v37  ;;  %v279_v43 = vld [vmem:[%s7643_s1 + $0x210] sm:$0xff]  ;;  %v324_v34 = vld [vmem:[%s7643_s1 + $0x378] sm:$0xff]  ;;  %v5062_v37 = vcombine.low %v312_v26, %v316_v27 }
  0xcd   : > { %2052 = vmatprep.mubr.bf16.mxu0 %v6385_v46  ;;  %2103 = vmatprep.mubr.bf16.mxu1 %v6385_v46  ;;  %v5028_v59 = vcombine.low %v279_v43, %v283_v44 }
  0xcf   : > { %2115 = vmatpush1.bf16.msra.mxu0 %v4972_v50  ;;  %2166 = vmatpush1.bf16.msra.mxu1 %v4974_v51  ;;  %v5029_v50 = vcombine.high %v279_v43, %v283_v44  ;;  %v5031_v51 = vcombine.high %v280_v45, %v284_v39  ;;  %v328_v43 = vld [vmem:[%s7643_s1 + $0x398] sm:$0xff]  ;;  %v5070_v39 = vcombine.low %v320_v33, %v324_v34 }
  0xd0   : > { %2116 = vmatprep.subr.bf16.mxu0 %v4981_v52  ;;  %2167 = vmatprep.subr.bf16.mxu1 %v4983_v53  ;;  %v287_v52 = vld [vmem:[%s7643_s1 + $0x250] sm:$0xff]  ;;  %v332_v44 = vld [vmem:[%s7643_s1 + $0x3b8] sm:$0xff] }
  0xd1   : > { %v291_v53 = vld [vmem:[%s7643_s1 + $0x270] sm:$0xff] }
  0xd2   : > { %2053 = vmatmul.mubr.bf16.gmra.mrb[4].mxu0 %v6412_v63  ;;  %2104 = vmatmul.mubr.bf16.gmra.mrb[4].mxu1 %v6412_v63  ;;  %v5036_v8 = vcombine.low %v287_v52, %v291_v53 }
  0xd3   : > { %2117 = vmatpush1.bf16.msra.mxu0 %v4980_v10  ;;  %2168 = vmatpush1.bf16.msra.mxu1 %v4982_v36  ;;  %v5037_v10 = vcombine.high %v287_v52, %v291_v53  ;;  %v5039_v36 = vcombine.high %v288_v56, %v292_v58  ;;  %v336_v52 = vld [vmem:[%s7643_s1 + $0x3d8] sm:$0xff]  ;;  %v5078_v58 = vcombine.low %v328_v43, %v332_v44 }
  0xd4   : > { %2118 = vmatprep.subr.bf16.mxu0 %v4989_v0  ;;  %2169 = vmatprep.subr.bf16.mxu1 %v4991_v3  ;;  %v295_v0 = vld [vmem:[%s7643_s1 + $0x290] sm:$0xff]  ;;  %v340_v53 = vld [vmem:[%s7643_s1 + $0x3f8] sm:$0xff] }
  0xd5   : > { %2144 = vmatprep.mubr.bf16.mxu0 %v6435_v17  ;;  %2195 = vmatprep.mubr.bf16.mxu1 %v6435_v17  ;;  %v299_v3 = vld [vmem:[%s7643_s1 + $0x2b0] sm:$0xff] }
  0xd6   : > { %v5044_v18 = vcombine.low %v295_v0, %v299_v3 }
  0xd7   : > { %2119 = vmatpush1.bf16.msra.mxu0 %v4988_v11  ;;  %2170 = vmatpush1.bf16.msra.mxu1 %v4990_v12  ;;  %v5045_v11 = vcombine.high %v295_v0, %v299_v3  ;;  %v5047_v12 = vcombine.high %v296_v6, %v300_v7  ;;  %v2215_v0 = vld [vmem:[%s7643_s1 + $0x808] sm:$0xff]  ;;  %v5086_v7 = vcombine.low %v336_v52, %v340_v53 }
  0xd8   : > { %2120 = vmatprep.subr.bf16.mxu0 %v4997_v40  ;;  %2171 = vmatprep.subr.bf16.mxu1 %v4999_v13  ;;  %v303_v40 = vld [vmem:[%s7643_s1 + $0x2d0] sm:$0xff]  ;;  %v2219_v3 = vld [vmem:[%s7643_s1 + $0x828] sm:$0xff] }
  0xd9   : > { %v307_v13 = vld [vmem:[%s7643_s1 + $0x2f0] sm:$0xff] }
  0xda   : > { %v5052_v28 = vcombine.low %v303_v40, %v307_v13 }
  0xdb   : > { %2121 = vmatpush1.bf16.msra.mxu0 %v4996_v21  ;;  %2172 = vmatpush1.bf16.msra.mxu1 %v4998_v22  ;;  %v5053_v21 = vcombine.high %v303_v40, %v307_v13  ;;  %v5055_v22 = vcombine.high %v304_v15, %v308_v16  ;;  %v2223_v40 = vld [vmem:[%s7643_s1 + $0x848] sm:$0xff]  ;;  %v5090_v16 = vcombine.low %v2215_v0, %v2219_v3 }
  0xdc   : > { %2122 = vmatprep.subr.bf16.mxu0 %v5005_v23  ;;  %2173 = vmatprep.subr.bf16.mxu1 %v5007_v25  ;;  %v311_v23 = vld [vmem:[%s7643_s1 + $0x310] sm:$0xff]  ;;  %v2227_v13 = vld [vmem:[%s7643_s1 + $0x868] sm:$0xff] }
  0xdd   : > { %v315_v25 = vld [vmem:[%s7643_s1 + $0x330] sm:$0xff] }
  0xde   : > { %v5060_v35 = vcombine.low %v311_v23, %v315_v25 }
  0xdf   : > { %2123 = vmatpush1.bf16.msra.mxu0 %v5004_v31  ;;  %2174 = vmatpush1.bf16.msra.mxu1 %v5006_v20  ;;  %v5061_v31 = vcombine.high %v311_v23, %v315_v25  ;;  %v5063_v20 = vcombine.high %v312_v26, %v316_v27  ;;  %v2231_v23 = vld [vmem:[%s7643_s1 + $0x888] sm:$0xff]  ;;  %v5098_v27 = vcombine.low %v2223_v40, %v2227_v13 }
  0xe0   : > { %2124 = vmatprep.subr.bf16.mxu0 %v5013_v32  ;;  %2175 = vmatprep.subr.bf16.mxu1 %v5015_v47  ;;  %v319_v32 = vld [vmem:[%s7643_s1 + $0x350] sm:$0xff]  ;;  %v2235_v25 = vld [vmem:[%s7643_s1 + $0x8a8] sm:$0xff] }
  0xe1   : > { %v323_v47 = vld [vmem:[%s7643_s1 + $0x370] sm:$0xff] }
  0xe2   : > { %v5068_v45 = vcombine.low %v319_v32, %v323_v47 }
  0xe3   : > { %2125 = vmatpush1.bf16.msra.mxu0 %v5012_v38  ;;  %2176 = vmatpush1.bf16.msra.mxu1 %v5014_v41  ;;  %v5069_v38 = vcombine.high %v319_v32, %v323_v47  ;;  %v5071_v41 = vcombine.high %v320_v33, %v324_v34  ;;  %v2239_v32 = vld [vmem:[%s7643_s1 + $0x8c8] sm:$0xff]  ;;  %v2346_v33 = vrot.slane %v6435_v17, 1  ;;  %v6619_v34 = vrot.slane %v5803_v61, 1 }
  0xe4   : > { %2126 = vmatprep.subr.bf16.mxu0 %v5021_v42  ;;  %2177 = vmatprep.subr.bf16.mxu1 %v5023_v55  ;;  %v327_v42 = vld [vmem:[%s7643_s1 + $0x390] sm:$0xff]  ;;  %v2243_v47 = vld [vmem:[%s7643_s1 + $0x8e8] sm:$0xff] }
  0xe5   : > { %v331_v55 = vld [vmem:[%s7643_s1 + $0x3b0] sm:$0xff]  ;;  %v2247_v61 = vld [vmem:[%s7643_s1 + $0x908] sm:$0xff] }
  0xe6   : > { %v5076_v56 = vcombine.low %v327_v42, %v331_v55  ;;  %v2251_v17 = vld [vmem:[%s7643_s1 + $0x928] sm:$0xff] }
  0xe7   : > { %2127 = vmatpush1.bf16.msra.mxu0 %v5020_v49  ;;  %2178 = vmatpush1.bf16.msra.mxu1 %v5022_v5  ;;  %v5077_v49 = vcombine.high %v327_v42, %v331_v55  ;;  %v5079_v5 = vcombine.high %v328_v43, %v332_v44  ;;  %v2246_v42 = vld [vmem:[%s7643_s1 + $0x900] sm:$0xff]  ;;  %v6636_v55 = vsel %vm2342_vm1, %v2346_v33, %v6619_v34 }
  0xe8   : > { %2128 = vmatprep.subr.bf16.mxu0 %v5029_v50  ;;  %2179 = vmatprep.subr.bf16.mxu1 %v5031_v51  ;;  %v335_v50 = vld [vmem:[%s7643_s1 + $0x3d0] sm:$0xff]  ;;  %v5114_v44 = vcombine.low %v2239_v32, %v2243_v47 }
  0xe9   : > { %v339_v51 = vld [vmem:[%s7643_s1 + $0x3f0] sm:$0xff] }
  0xea   : > { %v5084_v6 = vcombine.low %v335_v50, %v339_v51 }
  0xeb   : > { %2129 = vmatpush1.bf16.msra.mxu0 %v5028_v59  ;;  %2180 = vmatpush1.bf16.msra.mxu1 %v5030_v62  ;;  %v5085_v59 = vcombine.high %v335_v50, %v339_v51  ;;  %v5087_v62 = vcombine.high %v336_v52, %v340_v53  ;;  %v2259_v50 = vld [vmem:[%s7643_s1 + $0x968] sm:$0xff]  ;;  %v5122_v52 = vcombine.low %v2247_v61, %v2251_v17 }
  0xec   : > { %2130 = vmatprep.subr.bf16.mxu0 %v5037_v10  ;;  %2181 = vmatprep.subr.bf16.mxu1 %v5039_v36  ;;  %v2214_v10 = vld [vmem:[%s7643_s1 + $0x800] sm:$0xff] }
  0xed   : > { %v2218_v36 = vld [vmem:[%s7643_s1 + $0x820] sm:$0xff] }
  0xee   : > { %v5088_v15 = vcombine.low %v2214_v10, %v2218_v36 }
  0xef   : > { %2131 = vmatpush1.bf16.msra.mxu0 %v5036_v8  ;;  %2182 = vmatpush1.bf16.msra.mxu1 %v5038_v9  ;;  %v5089_v8 = vcombine.high %v2214_v10, %v2218_v36  ;;  %v5091_v9 = vcombine.high %v2215_v0, %v2219_v3  ;;  %v2267_v10 = vld [vmem:[%s7643_s1 + $0x9a8] sm:$0xff] }
  0xf0   : > { %2132 = vmatprep.subr.bf16.mxu0 %v5045_v11  ;;  %2183 = vmatprep.subr.bf16.mxu1 %v5047_v12  ;;  %v2222_v11 = vld [vmem:[%s7643_s1 + $0x840] sm:$0xff] }
  0xf1   : > { %v2226_v12 = vld [vmem:[%s7643_s1 + $0x860] sm:$0xff] }
  0xf2   : > { %v5096_v26 = vcombine.low %v2222_v11, %v2226_v12 }
  0xf3   : > { %2133 = vmatpush1.bf16.msra.mxu0 %v5044_v18  ;;  %2184 = vmatpush1.bf16.msra.mxu1 %v5046_v19  ;;  %v5097_v18 = vcombine.high %v2222_v11, %v2226_v12  ;;  %v5099_v19 = vcombine.high %v2223_v40, %v2227_v13  ;;  %v2275_v11 = vld [vmem:[%s7643_s1 + $0x9e8] sm:$0xff] }
  0xf4   : > { %2134 = vmatprep.subr.bf16.mxu0 %v5053_v21  ;;  %2185 = vmatprep.subr.bf16.mxu1 %v5055_v22  ;;  %v2230_v21 = vld [vmem:[%s7643_s1 + $0x880] sm:$0xff] }
  0xf5   : > { %v2234_v22 = vld [vmem:[%s7643_s1 + $0x8a0] sm:$0xff] }
  0xf7   : > { %2135 = vmatpush1.bf16.msra.mxu0 %v5052_v28  ;;  %2186 = vmatpush1.bf16.msra.mxu1 %v5054_v30  ;;  %v5105_v28 = vcombine.high %v2230_v21, %v2234_v22  ;;  %v5107_v30 = vcombine.high %v2231_v23, %v2235_v25 }
  0xf8   : > { %2136 = vmatprep.subr.bf16.mxu0 %v5061_v31  ;;  %2187 = vmatprep.subr.bf16.mxu1 %v5063_v20  ;;  %v2238_v31 = vld [vmem:[%s7643_s1 + $0x8c0] sm:$0xff] }
  0xf9   : > { %v2242_v20 = vld [vmem:[%s7643_s1 + $0x8e0] sm:$0xff] }
  0xfa   : > { %v5112_v43 = vcombine.low %v2238_v31, %v2242_v20 }
  0xfb   : > { %2137 = vmatpush1.bf16.msra.mxu0 %v5060_v35  ;;  %2188 = vmatpush1.bf16.msra.mxu1 %v5062_v37  ;;  %v5104_v35 = vcombine.low %v2230_v21, %v2234_v22  ;;  %v5106_v37 = vcombine.low %v2231_v23, %v2235_v25  ;;  %v2283_v21 = vld [vmem:[%s7643_s1 + $0xa28] sm:$0xff] }
  0xfc   : > { %2138 = vmatprep.subr.bf16.mxu0 %v5069_v38  ;;  %2189 = vmatprep.subr.bf16.mxu1 %v5071_v41  ;;  %v5113_v38 = vcombine.high %v2238_v31, %v2242_v20  ;;  %v5115_v41 = vcombine.high %v2239_v32, %v2243_v47  ;;  %v2291_v31 = vld [vmem:[%s7643_s1 + $0xa68] sm:$0xff] }
  0xff   : > { %2139 = vmatpush1.bf16.msra.mxu0 %v5068_v45  ;;  %2190 = vmatpush1.bf16.msra.mxu1 %v5070_v39  ;;  %v5123_v39 = vcombine.high %v2247_v61, %v2251_v17 }
 0x100   : > { %2140 = vmatprep.subr.bf16.mxu0 %v5077_v49  ;;  %2191 = vmatprep.subr.bf16.mxu1 %v5079_v5  ;;  %v2254_v49 = vld [vmem:[%s7643_s1 + $0x940] sm:$0xff] }
 0x101   : > { %v2258_v5 = vld [vmem:[%s7643_s1 + $0x960] sm:$0xff] }
 0x102   : > { %v5129_v53 = vcombine.high %v2254_v49, %v2258_v5  ;;  %v5128_v36 = vcombine.low %v2254_v49, %v2258_v5 }
 0x103   : > { %2141 = vmatpush1.bf16.msra.mxu0 %v5076_v56  ;;  %2192 = vmatpush1.bf16.msra.mxu1 %v5078_v58  ;;  %v2262_v58 = vld [vmem:[%s7643_s1 + $0x980] sm:$0xff] }
 0x104   : > { %2142 = vmatprep.subr.bf16.mxu0 %v5085_v59  ;;  %2193 = vmatprep.subr.bf16.mxu1 %v5087_v62  ;;  %v2266_v59 = vld [vmem:[%s7643_s1 + $0x9a0] sm:$0xff]  ;;  %v2263_v62 = vld [vmem:[%s7643_s1 + $0x988] sm:$0xff] }
 0x105   : > { %v5137_v3 = vcombine.high %v2262_v58, %v2266_v59  ;;  %v5136_v12 = vcombine.low %v2262_v58, %v2266_v59  ;;  %v5138_v40 = vcombine.low %v2263_v62, %v2267_v10 }
 0x107   : > { %2143 = vmatpush1.bf16.msra.mxu0 %v5084_v6  ;;  %2194 = vmatpush1.bf16.msra.mxu1 %v5086_v7  ;;  %v5139_v6 = vcombine.high %v2263_v62, %v2267_v10  ;;  %v2270_v7 = vld [vmem:[%s7643_s1 + $0x9c0] sm:$0xff] }
 0x108   : > { %2993 = vmatprep.subr.bf16.mxu0 %v5089_v8  ;;  %3044 = vmatprep.subr.bf16.mxu1 %v5091_v9  ;;  %v2274_v8 = vld [vmem:[%s7643_s1 + $0x9e0] sm:$0xff]  ;;  %v2271_v9 = vld [vmem:[%s7643_s1 + $0x9c8] sm:$0xff] }
 0x109   : > { %v5145_v13 = vcombine.high %v2270_v7, %v2274_v8  ;;  %v5144_v22 = vcombine.low %v2270_v7, %v2274_v8  ;;  %v5146_v23 = vcombine.low %v2271_v9, %v2275_v11 }
 0x10a   : > { %2145 = vmatmul.mubr.bf16.vlgmr.msra.gmra.mrb[8].mxu0 %v6388_v48  ;;  %2196 = vmatmul.mubr.bf16.vlgmr.msra.gmra.mrb[8].mxu1 %v6388_v48 }
 0x10b   : > { %2994 = vmatpush1.bf16.msra.mxu0 %v5088_v15  ;;  %3045 = vmatpush1.bf16.msra.mxu1 %v5090_v16  ;;  %v5147_v15 = vcombine.high %v2271_v9, %v2275_v11  ;;  %v2278_v16 = vld [vmem:[%s7643_s1 + $0xa00] sm:$0xff] }
 0x10c   : > { %2995 = vmatprep.subr.bf16.mxu0 %v5097_v18  ;;  %3046 = vmatprep.subr.bf16.mxu1 %v5099_v19  ;;  %v2282_v18 = vld [vmem:[%s7643_s1 + $0xa20] sm:$0xff]  ;;  %v2279_v19 = vld [vmem:[%s7643_s1 + $0xa08] sm:$0xff] }
 0x10d   : > { %2154 = vmatprep.mubr.bf16.mxu0 %v6385_v46  ;;  %2205 = vmatprep.mubr.bf16.mxu1 %v6385_v46  ;;  %v2250_v46 = vld [vmem:[%s7643_s1 + $0x920] sm:$0xff]  ;;  %v5153_v25 = vcombine.high %v2278_v16, %v2282_v18  ;;  %v5152_v20 = vcombine.low %v2278_v16, %v2282_v18  ;;  %v5154_v32 = vcombine.low %v2279_v19, %v2283_v21 }
 0x10e   : > { %v5121_v45 = vcombine.high %v2246_v42, %v2250_v46  ;;  %v5120_v51 = vcombine.low %v2246_v42, %v2250_v46 }
 0x10f   : > { %2996 = vmatpush1.bf16.msra.mxu0 %v5096_v26  ;;  %3047 = vmatpush1.bf16.msra.mxu1 %v5098_v27  ;;  %v5155_v26 = vcombine.high %v2279_v19, %v2283_v21  ;;  %v2286_v27 = vld [vmem:[%s7643_s1 + $0xa40] sm:$0xff] }
 0x110   : > { %2997 = vmatprep.subr.bf16.mxu0 %v5105_v28  ;;  %3048 = vmatprep.subr.bf16.mxu1 %v5107_v30  ;;  %v2290_v28 = vld [vmem:[%s7643_s1 + $0xa60] sm:$0xff]  ;;  %v2287_v30 = vld [vmem:[%s7643_s1 + $0xa48] sm:$0xff] }
 0x111   : > { %v5161_v47 = vcombine.high %v2286_v27, %v2290_v28  ;;  %v5163_v33 = vcombine.high %v2287_v30, %v2291_v31  ;;  %v5160_v42 = vcombine.low %v2286_v27, %v2290_v28  ;;  %v5162_v46 = vcombine.low %v2287_v30, %v2291_v31 }
 0x112   : > { %2155 = vmatmul.mubr.bf16.gmra.mrb[12].mxu0 %v6412_v63  ;;  %2206 = vmatmul.mubr.bf16.gmra.mrb[12].mxu1 %v6412_v63  ;;  %v2255_v63 = vld [vmem:[%s7643_s1 + $0x948] sm:$0xff] }
 0x113   : > { %2998 = vmatpush1.bf16.msra.mxu0 %v5104_v35  ;;  %3049 = vmatpush1.bf16.msra.mxu1 %v5106_v37  ;;  %v5131_v56 = vcombine.high %v2255_v63, %v2259_v50  ;;  %v5130_v0 = vcombine.low %v2255_v63, %v2259_v50  ;;  %v2294_v35 = vld [vmem:[%s7643_s1 + $0xa80] sm:$0xff] }
 0x114   : > { %2999 = vmatprep.subr.bf16.mxu0 %v5113_v38  ;;  %3050 = vmatprep.subr.bf16.mxu1 %v5115_v41  ;;  %v2298_v37 = vld [vmem:[%s7643_s1 + $0xaa0] sm:$0xff]  ;;  %v2295_v38 = vld [vmem:[%s7643_s1 + $0xa88] sm:$0xff] }
 0x115   : > { %3025 = vmatprep.mubr.bf16.mxu0 %v6636_v55  ;;  %3076 = vmatprep.mubr.bf16.mxu1 %v6636_v55  ;;  %v2299_v41 = vld [vmem:[%s7643_s1 + $0xaa8] sm:$0xff]  ;;  %v5169_v61 = vcombine.high %v2294_v35, %v2298_v37  ;;  %v5168_v49 = vcombine.low %v2294_v35, %v2298_v37  ;;  %v2343_v37 = vrot.slane %v6388_v48, 1  ;;  %v2225_v48 = vld [vmem:[%s7643_s1 + $0x858] sm:$0xff] }
 0x116   : > { %v5171_v17 = vcombine.high %v2295_v38, %v2299_v41  ;;  %v5170_v5 = vcombine.low %v2295_v38, %v2299_v41  ;;  %v6787_v38 = vrot.slane %v5856_v29, 1  ;;  %v2229_v29 = vld [vmem:[%s7643_s1 + $0x878] sm:$0xff] }
 0x117   : > { %3000 = vmatpush1.bf16.msra.mxu0 %v5112_v43  ;;  %3051 = vmatpush1.bf16.msra.mxu1 %v5114_v44  ;;  %v2302_v43 = vld [vmem:[%s7643_s1 + $0xac0] sm:$0xff] }
 0x118   : > { %3001 = vmatprep.subr.bf16.mxu0 %v5121_v45  ;;  %3052 = vmatprep.subr.bf16.mxu1 %v5123_v39  ;;  %v2306_v44 = vld [vmem:[%s7643_s1 + $0xae0] sm:$0xff]  ;;  %v2303_v45 = vld [vmem:[%s7643_s1 + $0xac8] sm:$0xff] }
 0x119   : > { %v2307_v39 = vld [vmem:[%s7643_s1 + $0xae8] sm:$0xff]  ;;  %v5177_v63 = vcombine.high %v2302_v43, %v2306_v44  ;;  %v5176_v58 = vcombine.low %v2302_v43, %v2306_v44  ;;  %v6803_v44 = vsel %vm2342_vm1, %v2343_v37, %v6787_v38  ;;  %v2276_v37 = vld [vmem:[%s7643_s1 + $0x9f0] sm:$0xff] }
 0x11a   : > { %v5179_v50 = vcombine.high %v2303_v45, %v2307_v39  ;;  %v5178_v59 = vcombine.low %v2303_v45, %v2307_v39 }
 0x11b   : > { %3002 = vmatpush1.bf16.msra.mxu0 %v5120_v51  ;;  %3053 = vmatpush1.bf16.msra.mxu1 %v5122_v52  ;;  %v2310_v51 = vld [vmem:[%s7643_s1 + $0xb00] sm:$0xff] }
 0x11c   : > { %3003 = vmatprep.subr.bf16.mxu0 %v5129_v53  ;;  %3054 = vmatprep.subr.bf16.mxu1 %v5131_v56  ;;  %v2314_v52 = vld [vmem:[%s7643_s1 + $0xb20] sm:$0xff]  ;;  %v2311_v53 = vld [vmem:[%s7643_s1 + $0xb08] sm:$0xff] }
 0x11d   : > { %v2315_v56 = vld [vmem:[%s7643_s1 + $0xb28] sm:$0xff]  ;;  %v5185_v62 = vcombine.high %v2310_v51, %v2314_v52  ;;  %v5184_v7 = vcombine.low %v2310_v51, %v2314_v52  ;;  %v2237_v51 = vld [vmem:[%s7643_s1 + $0x8b8] sm:$0xff] }
 0x11e   : > { %v5187_v10 = vcombine.high %v2311_v53, %v2315_v56  ;;  %v5186_v8 = vcombine.low %v2311_v53, %v2315_v56  ;;  %v5102_v53 = vcombine.low %v2225_v48, %v2229_v29 }
 0x11f   : > { %3004 = vmatpush1.bf16.msra.mxu0 %v5128_v36  ;;  %3055 = vmatpush1.bf16.msra.mxu1 %v5130_v0  ;;  %v2318_v36 = vld [vmem:[%s7643_s1 + $0xb40] sm:$0xff] }
 0x120   : > { %3005 = vmatprep.subr.bf16.mxu0 %v5137_v3  ;;  %3056 = vmatprep.subr.bf16.mxu1 %v5139_v6  ;;  %v2322_v0 = vld [vmem:[%s7643_s1 + $0xb60] sm:$0xff]  ;;  %v2319_v3 = vld [vmem:[%s7643_s1 + $0xb48] sm:$0xff] }
 0x121   : > { %v2323_v6 = vld [vmem:[%s7643_s1 + $0xb68] sm:$0xff]  ;;  %v5193_v9 = vcombine.high %v2318_v36, %v2322_v0  ;;  %v5192_v16 = vcombine.low %v2318_v36, %v2322_v0  ;;  %v2245_v36 = vld [vmem:[%s7643_s1 + $0x8f8] sm:$0xff] }
 0x122   : > { %v5195_v11 = vcombine.high %v2319_v3, %v2323_v6  ;;  %v5194_v18 = vcombine.low %v2319_v3, %v2323_v6 }
 0x123   : > { %3006 = vmatpush1.bf16.msra.mxu0 %v5136_v12  ;;  %3057 = vmatpush1.bf16.msra.mxu1 %v5138_v40  ;;  %v2326_v12 = vld [vmem:[%s7643_s1 + $0xb80] sm:$0xff] }
 0x124   : > { %3007 = vmatprep.subr.bf16.mxu0 %v5145_v13  ;;  %3058 = vmatprep.subr.bf16.mxu1 %v5147_v15  ;;  %v2330_v40 = vld [vmem:[%s7643_s1 + $0xba0] sm:$0xff]  ;;  %v2327_v13 = vld [vmem:[%s7643_s1 + $0xb88] sm:$0xff] }
 0x125   : > { %v2331_v15 = vld [vmem:[%s7643_s1 + $0xba8] sm:$0xff]  ;;  %v5201_v19 = vcombine.high %v2326_v12, %v2330_v40  ;;  %v5200_v27 = vcombine.low %v2326_v12, %v2330_v40  ;;  %v2253_v12 = vld [vmem:[%s7643_s1 + $0x938] sm:$0xff] }
 0x126   : > { %v5203_v21 = vcombine.high %v2327_v13, %v2331_v15  ;;  %v5202_v28 = vcombine.low %v2327_v13, %v2331_v15 }
 0x127   : > { %3008 = vmatpush1.bf16.msra.mxu0 %v5144_v22  ;;  %3059 = vmatpush1.bf16.msra.mxu1 %v5146_v23  ;;  %v2334_v22 = vld [vmem:[%s7643_s1 + $0xbc0] sm:$0xff] }
 0x128   : > { %3009 = vmatprep.subr.bf16.mxu0 %v5153_v25  ;;  %3060 = vmatprep.subr.bf16.mxu1 %v5155_v26  ;;  %v2338_v23 = vld [vmem:[%s7643_s1 + $0xbe0] sm:$0xff]  ;;  %v2335_v25 = vld [vmem:[%s7643_s1 + $0xbc8] sm:$0xff] }
 0x129   : > { %v2339_v26 = vld [vmem:[%s7643_s1 + $0xbe8] sm:$0xff]  ;;  %v5209_v30 = vcombine.high %v2334_v22, %v2338_v23  ;;  %v5208_v35 = vcombine.low %v2334_v22, %v2338_v23  ;;  %v2261_v22 = vld [vmem:[%s7643_s1 + $0x978] sm:$0xff] }
 0x12a   : > { %v5211_v31 = vcombine.high %v2335_v25, %v2339_v26  ;;  %v5210_v41 = vcombine.low %v2335_v25, %v2339_v26 }
 0x12b   : > { %3010 = vmatpush1.bf16.msra.mxu0 %v5152_v20  ;;  %3061 = vmatpush1.bf16.msra.mxu1 %v5154_v32  ;;  %v2216_v20 = vld [vmem:[%s7643_s1 + $0x810] sm:$0xff] }
 0x12c   : > { %3011 = vmatprep.subr.bf16.mxu0 %v5161_v47  ;;  %3062 = vmatprep.subr.bf16.mxu1 %v5163_v33  ;;  %v2220_v32 = vld [vmem:[%s7643_s1 + $0x830] sm:$0xff]  ;;  %v2217_v47 = vld [vmem:[%s7643_s1 + $0x818] sm:$0xff] }
 0x12d   : > { %v2221_v33 = vld [vmem:[%s7643_s1 + $0x838] sm:$0xff]  ;;  %v5092_v43 = vcombine.low %v2216_v20, %v2220_v32 }
 0x12e   : > { %v5094_v45 = vcombine.low %v2217_v47, %v2221_v33 }
 0x12f   : > { %3012 = vmatpush1.bf16.msra.mxu0 %v5160_v42  ;;  %3063 = vmatpush1.bf16.msra.mxu1 %v5162_v46  ;;  %v5093_v42 = vcombine.high %v2216_v20, %v2220_v32  ;;  %v5095_v46 = vcombine.high %v2217_v47, %v2221_v33 }
 0x130   : > { %3013 = vmatprep.subr.bf16.mxu0 %v5169_v61  ;;  %3064 = vmatprep.subr.bf16.mxu1 %v5171_v17  ;;  %v2224_v61 = vld [vmem:[%s7643_s1 + $0x850] sm:$0xff] }
 0x131   : > { %v2228_v17 = vld [vmem:[%s7643_s1 + $0x870] sm:$0xff] }
 0x132   : > { %v5101_v39 = vcombine.high %v2224_v61, %v2228_v17  ;;  %v5100_v52 = vcombine.low %v2224_v61, %v2228_v17 }
 0x133   : > { %3014 = vmatpush1.bf16.msra.mxu0 %v5168_v49  ;;  %3065 = vmatpush1.bf16.msra.mxu1 %v5170_v5  ;;  %v5103_v49 = vcombine.high %v2225_v48, %v2229_v29  ;;  %v2232_v5 = vld [vmem:[%s7643_s1 + $0x890] sm:$0xff] }
 0x134   : > { %3015 = vmatprep.subr.bf16.mxu0 %v5177_v63  ;;  %3066 = vmatprep.subr.bf16.mxu1 %v5179_v50  ;;  %v2236_v63 = vld [vmem:[%s7643_s1 + $0x8b0] sm:$0xff]  ;;  %v2233_v50 = vld [vmem:[%s7643_s1 + $0x898] sm:$0xff] }
 0x135   : > { %v5109_v56 = vcombine.high %v2232_v5, %v2236_v63  ;;  %v5108_v0 = vcombine.low %v2232_v5, %v2236_v63  ;;  %v5110_v3 = vcombine.low %v2233_v50, %v2237_v51  ;;  %v2280_v29 = vld [vmem:[%s7643_s1 + $0xa10] sm:$0xff] }
 0x137   : > { %3016 = vmatpush1.bf16.msra.mxu0 %v5176_v58  ;;  %3067 = vmatpush1.bf16.msra.mxu1 %v5178_v59  ;;  %v5111_v58 = vcombine.high %v2233_v50, %v2237_v51  ;;  %v2240_v59 = vld [vmem:[%s7643_s1 + $0x8d0] sm:$0xff] }
 0x138   : > { %3017 = vmatprep.subr.bf16.mxu0 %v5185_v62  ;;  %3068 = vmatprep.subr.bf16.mxu1 %v5187_v10  ;;  %v2244_v62 = vld [vmem:[%s7643_s1 + $0x8f0] sm:$0xff]  ;;  %v2241_v10 = vld [vmem:[%s7643_s1 + $0x8d8] sm:$0xff] }
 0x139   : > { %v5117_v6 = vcombine.high %v2240_v59, %v2244_v62  ;;  %v5116_v40 = vcombine.low %v2240_v59, %v2244_v62  ;;  %v5118_v13 = vcombine.low %v2241_v10, %v2245_v36  ;;  %v2288_v51 = vld [vmem:[%s7643_s1 + $0xa50] sm:$0xff] }
 0x13b   : > { %3018 = vmatpush1.bf16.msra.mxu0 %v5184_v7  ;;  %3069 = vmatpush1.bf16.msra.mxu1 %v5186_v8  ;;  %v5119_v7 = vcombine.high %v2241_v10, %v2245_v36  ;;  %v2248_v8 = vld [vmem:[%s7643_s1 + $0x910] sm:$0xff] }
 0x13c   : > { %3019 = vmatprep.subr.bf16.mxu0 %v5193_v9  ;;  %3070 = vmatprep.subr.bf16.mxu1 %v5195_v11  ;;  %v2252_v9 = vld [vmem:[%s7643_s1 + $0x930] sm:$0xff]  ;;  %v2249_v11 = vld [vmem:[%s7643_s1 + $0x918] sm:$0xff] }
 0x13d   : > { %v5125_v15 = vcombine.high %v2248_v8, %v2252_v9  ;;  %v5124_v23 = vcombine.low %v2248_v8, %v2252_v9  ;;  %v5126_v25 = vcombine.low %v2249_v11, %v2253_v12  ;;  %v2296_v36 = vld [vmem:[%s7643_s1 + $0xa90] sm:$0xff] }
 0x13f   : > { %3020 = vmatpush1.bf16.msra.mxu0 %v5192_v16  ;;  %3071 = vmatpush1.bf16.msra.mxu1 %v5194_v18  ;;  %v5127_v16 = vcombine.high %v2249_v11, %v2253_v12  ;;  %v2256_v18 = vld [vmem:[%s7643_s1 + $0x950] sm:$0xff] }
 0x140   : > { %3021 = vmatprep.subr.bf16.mxu0 %v5201_v19  ;;  %3072 = vmatprep.subr.bf16.mxu1 %v5203_v21  ;;  %v2260_v19 = vld [vmem:[%s7643_s1 + $0x970] sm:$0xff]  ;;  %v2257_v21 = vld [vmem:[%s7643_s1 + $0x958] sm:$0xff] }
 0x141   : > { %v5133_v26 = vcombine.high %v2256_v18, %v2260_v19  ;;  %v5132_v20 = vcombine.low %v2256_v18, %v2260_v19  ;;  %v5134_v32 = vcombine.low %v2257_v21, %v2261_v22  ;;  %v2304_v12 = vld [vmem:[%s7643_s1 + $0xad0] sm:$0xff] }
 0x143   : > { %3022 = vmatpush1.bf16.msra.mxu0 %v5200_v27  ;;  %3073 = vmatpush1.bf16.msra.mxu1 %v5202_v28  ;;  %v5135_v27 = vcombine.high %v2257_v21, %v2261_v22  ;;  %v2264_v28 = vld [vmem:[%s7643_s1 + $0x990] sm:$0xff] }
 0x144   : > { %3023 = vmatprep.subr.bf16.mxu0 %v5209_v30  ;;  %3074 = vmatprep.subr.bf16.mxu1 %v5211_v31  ;;  %v2268_v30 = vld [vmem:[%s7643_s1 + $0x9b0] sm:$0xff]  ;;  %v2269_v31 = vld [vmem:[%s7643_s1 + $0x9b8] sm:$0xff] }
 0x145   : > { %v5141_v47 = vcombine.high %v2264_v28, %v2268_v30  ;;  %v2312_v22 = vld [vmem:[%s7643_s1 + $0xb10] sm:$0xff] }
 0x147   : > { %3024 = vmatpush1.bf16.msra.mxu0 %v5208_v35  ;;  %3075 = vmatpush1.bf16.msra.mxu1 %v5210_v41  ;;  %v2272_v35 = vld [vmem:[%s7643_s1 + $0x9d0] sm:$0xff]  ;;  %v2273_v41 = vld [vmem:[%s7643_s1 + $0x9d8] sm:$0xff] }
 0x148   : > { %3095 = vmatprep.subr.bf16.mxu0 %v5093_v42  ;;  %3146 = vmatprep.subr.bf16.mxu1 %v5095_v46  ;;  %v2277_v42 = vld [vmem:[%s7643_s1 + $0x9f8] sm:$0xff]  ;;  %v5140_v46 = vcombine.low %v2264_v28, %v2268_v30  ;;  %v5149_v17 = vcombine.high %v2272_v35, %v2276_v37 }
 0x149   : > { %v5151_v48 = vcombine.high %v2273_v41, %v2277_v42  ;;  %v5150_v5 = vcombine.low %v2273_v41, %v2277_v42  ;;  %v2328_v42 = vld [vmem:[%s7643_s1 + $0xb90] sm:$0xff] }
 0x14a   : > { %3026 = vmatmul.mubr.bf16.vlgmr.msra.gmra.mrb[0].mxu0 %v6803_v44  ;;  %3077 = vmatmul.mubr.bf16.vlgmr.msra.gmra.mrb[0].mxu1 %v6803_v44 }
 0x14b   : > { %3096 = vmatpush1.bf16.msra.mxu0 %v5092_v43  ;;  %3147 = vmatpush1.bf16.msra.mxu1 %v5094_v45  ;;  %v2284_v43 = vld [vmem:[%s7643_s1 + $0xa30] sm:$0xff]  ;;  %v2281_v45 = vld [vmem:[%s7643_s1 + $0xa18] sm:$0xff] }
 0x14c   : > { %3097 = vmatprep.subr.bf16.mxu0 %v5101_v39  ;;  %3148 = vmatprep.subr.bf16.mxu1 %v5103_v49  ;;  %v2285_v39 = vld [vmem:[%s7643_s1 + $0xa38] sm:$0xff]  ;;  %v5148_v49 = vcombine.low %v2272_v35, %v2276_v37  ;;  %v5157_v63 = vcombine.high %v2280_v29, %v2284_v43 }
 0x14d   : > { %3035 = vmatprep.mubr.bf16.mxu0 %v6619_v34  ;;  %3086 = vmatprep.mubr.bf16.mxu1 %v6619_v34  ;;  %v5159_v50 = vcombine.high %v2281_v45, %v2285_v39  ;;  %v5158_v59 = vcombine.low %v2281_v45, %v2285_v39  ;;  %v2336_v39 = vld [vmem:[%s7643_s1 + $0xbd0] sm:$0xff] }
 0x14f   : > { %3098 = vmatpush1.bf16.msra.mxu0 %v5100_v52  ;;  %3149 = vmatpush1.bf16.msra.mxu1 %v5102_v53  ;;  %v2292_v52 = vld [vmem:[%s7643_s1 + $0xa70] sm:$0xff]  ;;  %v2289_v53 = vld [vmem:[%s7643_s1 + $0xa58] sm:$0xff] }
 0x150   : > { %3099 = vmatprep.subr.bf16.mxu0 %v5109_v56  ;;  %3150 = vmatprep.subr.bf16.mxu1 %v5111_v58  ;;  %v2293_v56 = vld [vmem:[%s7643_s1 + $0xa78] sm:$0xff]  ;;  %v5156_v58 = vcombine.low %v2280_v29, %v2284_v43  ;;  %v5165_v62 = vcombine.high %v2288_v51, %v2292_v52 }
 0x151   : > { %v5167_v10 = vcombine.high %v2289_v53, %v2293_v56  ;;  %v5166_v8 = vcombine.low %v2289_v53, %v2293_v56  ;;  %v3221_v56 = vld [vmem:[%s7643_s1 + $0xc00] sm:$0xff] }
 0x152   : > { %3036 = vmatmul.mubr.bf16.gmra.mrb[4].mxu0 %v6787_v38  ;;  %3087 = vmatmul.mubr.bf16.gmra.mrb[4].mxu1 %v6787_v38 }
 0x153   : > { %3100 = vmatpush1.bf16.msra.mxu0 %v5108_v0  ;;  %3151 = vmatpush1.bf16.msra.mxu1 %v5110_v3  ;;  %v2300_v0 = vld [vmem:[%s7643_s1 + $0xab0] sm:$0xff]  ;;  %v2297_v3 = vld [vmem:[%s7643_s1 + $0xa98] sm:$0xff] }
 0x154   : > { %3101 = vmatprep.subr.bf16.mxu0 %v5117_v6  ;;  %3152 = vmatprep.subr.bf16.mxu1 %v5119_v7  ;;  %v2301_v6 = vld [vmem:[%s7643_s1 + $0xab8] sm:$0xff]  ;;  %v5164_v7 = vcombine.low %v2288_v51, %v2292_v52  ;;  %v5173_v9 = vcombine.high %v2296_v36, %v2300_v0 }
 0x155   : > { %3127 = vmatprep.mubr.bf16.mxu0 %v6636_v55  ;;  %3178 = vmatprep.mubr.bf16.mxu1 %v6636_v55  ;;  %v2265_v55 = vld [vmem:[%s7643_s1 + $0x998] sm:$0xff]  ;;  %v5175_v11 = vcombine.high %v2297_v3, %v2301_v6  ;;  %v5174_v18 = vcombine.low %v2297_v3, %v2301_v6  ;;  %v3229_v6 = vld [vmem:[%s7643_s1 + $0xc40] sm:$0xff] }
 0x156   : > { %v5143_v33 = vcombine.high %v2265_v55, %v2269_v31  ;;  %v5142_v61 = vcombine.low %v2265_v55, %v2269_v31  ;;  %v2320_v31 = vld [vmem:[%s7643_s1 + $0xb50] sm:$0xff] }
 0x157   : > { %3102 = vmatpush1.bf16.msra.mxu0 %v5116_v40  ;;  %3153 = vmatpush1.bf16.msra.mxu1 %v5118_v13  ;;  %v2308_v40 = vld [vmem:[%s7643_s1 + $0xaf0] sm:$0xff]  ;;  %v2305_v13 = vld [vmem:[%s7643_s1 + $0xad8] sm:$0xff] }
 0x158   : > { %3103 = vmatprep.subr.bf16.mxu0 %v5125_v15  ;;  %3154 = vmatprep.subr.bf16.mxu1 %v5127_v16  ;;  %v2309_v15 = vld [vmem:[%s7643_s1 + $0xaf8] sm:$0xff]  ;;  %v5172_v16 = vcombine.low %v2296_v36, %v2300_v0  ;;  %v5181_v19 = vcombine.high %v2304_v12, %v2308_v40 }
 0x159   : > { %v5183_v21 = vcombine.high %v2305_v13, %v2309_v15  ;;  %v5182_v28 = vcombine.low %v2305_v13, %v2309_v15  ;;  %v3237_v15 = vld [vmem:[%s7643_s1 + $0xc80] sm:$0xff] }
 0x15b   : > { %3104 = vmatpush1.bf16.msra.mxu0 %v5124_v23  ;;  %3155 = vmatpush1.bf16.msra.mxu1 %v5126_v25  ;;  %v2316_v23 = vld [vmem:[%s7643_s1 + $0xb30] sm:$0xff]  ;;  %v2313_v25 = vld [vmem:[%s7643_s1 + $0xb18] sm:$0xff] }
 0x15c   : > { %3105 = vmatprep.subr.bf16.mxu0 %v5133_v26  ;;  %3156 = vmatprep.subr.bf16.mxu1 %v5135_v27  ;;  %v2317_v26 = vld [vmem:[%s7643_s1 + $0xb38] sm:$0xff]  ;;  %v5180_v27 = vcombine.low %v2304_v12, %v2308_v40  ;;  %v5189_v30 = vcombine.high %v2312_v22, %v2316_v23 }
 0x15d   : > { %v5191_v55 = vcombine.high %v2313_v25, %v2317_v26  ;;  %v5190_v35 = vcombine.low %v2313_v25, %v2317_v26 }
 0x15f   : > { %3106 = vmatpush1.bf16.msra.mxu0 %v5132_v20  ;;  %3157 = vmatpush1.bf16.msra.mxu1 %v5134_v32  ;;  %v2324_v20 = vld [vmem:[%s7643_s1 + $0xb70] sm:$0xff]  ;;  %v2321_v32 = vld [vmem:[%s7643_s1 + $0xb58] sm:$0xff] }
 0x160   : > { %3107 = vmatprep.subr.bf16.mxu0 %v5141_v47  ;;  %3158 = vmatprep.subr.bf16.mxu1 %v5143_v33  ;;  %v2325_v47 = vld [vmem:[%s7643_s1 + $0xb78] sm:$0xff]  ;;  %v5188_v33 = vcombine.low %v2312_v22, %v2316_v23  ;;  %v5197_v37 = vcombine.high %v2320_v31, %v2324_v20  ;;  %v3358_v22 = vrot.slane %v501_v2, 2  ;;  %v3250_v2 = vld [vmem:[%s7643_s1 + $0xce8] sm:$0xff] }
 0x161   : > { %v5199_v41 = vcombine.high %v2321_v32, %v2325_v47  ;;  %v5198_v29 = vcombine.low %v2321_v32, %v2325_v47  ;;  %v3253_v32 = vld [vmem:[%s7643_s1 + $0xd00] sm:$0xff] }
 0x162   : > { %v3257_v47 = vld [vmem:[%s7643_s1 + $0xd20] sm:$0xff] }
 0x163   : > { %3108 = vmatpush1.bf16.msra.mxu0 %v5140_v46  ;;  %3159 = vmatpush1.bf16.msra.mxu1 %v5142_v61  ;;  %v2332_v46 = vld [vmem:[%s7643_s1 + $0xbb0] sm:$0xff]  ;;  %v2329_v61 = vld [vmem:[%s7643_s1 + $0xb98] sm:$0xff] }
 0x164   : > { %3109 = vmatprep.subr.bf16.mxu0 %v5149_v17  ;;  %3160 = vmatprep.subr.bf16.mxu1 %v5151_v48  ;;  %v2333_v17 = vld [vmem:[%s7643_s1 + $0xbb8] sm:$0xff]  ;;  %v5196_v48 = vcombine.low %v2320_v31, %v2324_v20  ;;  %v5205_v43 = vcombine.high %v2328_v42, %v2332_v46  ;;  %v5243_v20 = vcombine.high %v3246_v60, %v3250_v2 }
 0x165   : > { %v5207_v45 = vcombine.high %v2329_v61, %v2333_v17  ;;  %v5206_v51 = vcombine.low %v2329_v61, %v2333_v17  ;;  %v3261_v61 = vld [vmem:[%s7643_s1 + $0xd40] sm:$0xff] }
 0x166   : > { %v3265_v17 = vld [vmem:[%s7643_s1 + $0xd60] sm:$0xff] }
 0x167   : > { %3110 = vmatpush1.bf16.msra.mxu0 %v5148_v49  ;;  %3161 = vmatpush1.bf16.msra.mxu1 %v5150_v5  ;;  %v2340_v49 = vld [vmem:[%s7643_s1 + $0xbf0] sm:$0xff]  ;;  %v2337_v5 = vld [vmem:[%s7643_s1 + $0xbd8] sm:$0xff] }
 0x168   : > { %3111 = vmatprep.subr.bf16.mxu0 %v5157_v63  ;;  %3162 = vmatprep.subr.bf16.mxu1 %v5159_v50  ;;  %v2341_v63 = vld [vmem:[%s7643_s1 + $0xbf8] sm:$0xff]  ;;  %v5204_v50 = vcombine.low %v2328_v42, %v2332_v46  ;;  %v5213_v52 = vcombine.high %v2336_v39, %v2340_v49  ;;  %v5249_v42 = vcombine.high %v3253_v32, %v3257_v47 }
 0x169   : > { %v5215_v53 = vcombine.high %v2337_v5, %v2341_v63  ;;  %v5214_v36 = vcombine.low %v2337_v5, %v2341_v63  ;;  %v3273_v5 = vld [vmem:[%s7643_s1 + $0xda0] sm:$0xff]  ;;  %v3270_v63 = vld [vmem:[%s7643_s1 + $0xd88] sm:$0xff] }
 0x16b   : > { %3112 = vmatpush1.bf16.msra.mxu0 %v5156_v58  ;;  %3163 = vmatpush1.bf16.msra.mxu1 %v5158_v59  ;;  %v3225_v58 = vld [vmem:[%s7643_s1 + $0xc20] sm:$0xff]  ;;  %v3222_v59 = vld [vmem:[%s7643_s1 + $0xc08] sm:$0xff] }
 0x16c   : > { %3113 = vmatprep.subr.bf16.mxu0 %v5165_v62  ;;  %3164 = vmatprep.subr.bf16.mxu1 %v5167_v10  ;;  %v3226_v62 = vld [vmem:[%s7643_s1 + $0xc28] sm:$0xff]  ;;  %v5212_v10 = vcombine.low %v2336_v39, %v2340_v49  ;;  %v5217_v0 = vcombine.high %v3221_v56, %v3225_v58  ;;  %v3269_v49 = vld [vmem:[%s7643_s1 + $0xd80] sm:$0xff] }
 0x16d   : > { %v5219_v3 = vcombine.high %v3222_v59, %v3226_v62  ;;  %v5218_v12 = vcombine.low %v3222_v59, %v3226_v62  ;;  %v3281_v59 = vld [vmem:[%s7643_s1 + $0xde0] sm:$0xff]  ;;  %v3278_v62 = vld [vmem:[%s7643_s1 + $0xdc8] sm:$0xff] }
 0x16f   : > { %3114 = vmatpush1.bf16.msra.mxu0 %v5164_v7  ;;  %3165 = vmatpush1.bf16.msra.mxu1 %v5166_v8  ;;  %v3233_v7 = vld [vmem:[%s7643_s1 + $0xc60] sm:$0xff]  ;;  %v3230_v8 = vld [vmem:[%s7643_s1 + $0xc48] sm:$0xff] }
 0x170   : > { %3115 = vmatprep.subr.bf16.mxu0 %v5173_v9  ;;  %3166 = vmatprep.subr.bf16.mxu1 %v5175_v11  ;;  %v3234_v9 = vld [vmem:[%s7643_s1 + $0xc68] sm:$0xff]  ;;  %v5216_v11 = vcombine.low %v3221_v56, %v3225_v58  ;;  %v5225_v40 = vcombine.high %v3229_v6, %v3233_v7  ;;  %v5224_v23 = vcombine.low %v3229_v6, %v3233_v7  ;;  %v3277_v58 = vld [vmem:[%s7643_s1 + $0xdc0] sm:$0xff] }
 0x171   : > { %v5227_v13 = vcombine.high %v3230_v8, %v3234_v9  ;;  %v5226_v25 = vcombine.low %v3230_v8, %v3234_v9  ;;  %v3285_v7 = vld [vmem:[%s7643_s1 + $0xe00] sm:$0xff]  ;;  %v3286_v9 = vld [vmem:[%s7643_s1 + $0xe08] sm:$0xff] }
 0x172   : > { %v3289_v8 = vld [vmem:[%s7643_s1 + $0xe20] sm:$0xff] }
 0x173   : > { %3116 = vmatpush1.bf16.msra.mxu0 %v5172_v16  ;;  %3167 = vmatpush1.bf16.msra.mxu1 %v5174_v18  ;;  %v3241_v16 = vld [vmem:[%s7643_s1 + $0xca0] sm:$0xff]  ;;  %v3238_v18 = vld [vmem:[%s7643_s1 + $0xc88] sm:$0xff] }
 0x174   : > { %3117 = vmatprep.subr.bf16.mxu0 %v5181_v19  ;;  %3168 = vmatprep.subr.bf16.mxu1 %v5183_v21  ;;  %v3242_v19 = vld [vmem:[%s7643_s1 + $0xca8] sm:$0xff]  ;;  %v3357_v21 = vrot.slane %v499_v1, 1  ;;  %v5233_v26 = vcombine.high %v3237_v15, %v3241_v16  ;;  %v3249_v1 = vld [vmem:[%s7643_s1 + $0xce0] sm:$0xff] }
 0x177   : > { %3118 = vmatpush1.bf16.msra.mxu0 %v5180_v27  ;;  %3169 = vmatpush1.bf16.msra.mxu1 %v5182_v28  ;;  %v5235_v27 = vcombine.high %v3238_v18, %v3242_v19  ;;  %v3245_v28 = vld [vmem:[%s7643_s1 + $0xcc0] sm:$0xff] }
 0x178   : > { %3119 = vmatprep.subr.bf16.mxu0 %v5189_v30  ;;  %3170 = vmatprep.subr.bf16.mxu1 %v5191_v55  ;;  %v5232_v30 = vcombine.low %v3237_v15, %v3241_v16  ;;  %v5234_v55 = vcombine.low %v3238_v18, %v3242_v19  ;;  %v5241_v31 = vcombine.high %v3245_v28, %v3249_v1  ;;  %v3293_v16 = vld [vmem:[%s7643_s1 + $0xe40] sm:$0xff]  ;;  %v3294_v19 = vld [vmem:[%s7643_s1 + $0xe48] sm:$0xff] }
 0x179   : > { %v3297_v18 = vld [vmem:[%s7643_s1 + $0xe60] sm:$0xff] }
 0x17b   : > { %3120 = vmatpush1.bf16.msra.mxu0 %v5188_v33  ;;  %3171 = vmatpush1.bf16.msra.mxu1 %v5190_v35  ;;  %v3258_v33 = vld [vmem:[%s7643_s1 + $0xd28] sm:$0xff] }
 0x17c   : > { %3121 = vmatprep.subr.bf16.mxu0 %v5197_v37  ;;  %3172 = vmatprep.subr.bf16.mxu1 %v5199_v41  ;;  %v5240_v37 = vcombine.low %v3245_v28, %v3249_v1  ;;  %v5242_v41 = vcombine.low %v3246_v60, %v3250_v2  ;;  %v3305_v28 = vld [vmem:[%s7643_s1 + $0xea0] sm:$0xff]  ;;  %v3302_v1 = vld [vmem:[%s7643_s1 + $0xe88] sm:$0xff]  ;;  %v5288_v2 = vcombine.low %v3293_v16, %v3297_v18 }
 0x17d   : > { %v3306_v60 = vld [vmem:[%s7643_s1 + $0xea8] sm:$0xff] }
 0x17f   : > { %3122 = vmatpush1.bf16.msra.mxu0 %v5196_v48  ;;  %3173 = vmatpush1.bf16.msra.mxu1 %v5198_v29  ;;  %v3266_v48 = vld [vmem:[%s7643_s1 + $0xd68] sm:$0xff]  ;;  %v5248_v29 = vcombine.low %v3253_v32, %v3257_v47 }
 0x180   : > { %3123 = vmatprep.subr.bf16.mxu0 %v5205_v43  ;;  %3174 = vmatprep.subr.bf16.mxu1 %v5207_v45  ;;  %v5257_v45 = vcombine.high %v3261_v61, %v3265_v17  ;;  %v3310_v32 = vld [vmem:[%s7643_s1 + $0xec8] sm:$0xff] }
 0x181   : > { %v3314_v47 = vld [vmem:[%s7643_s1 + $0xee8] sm:$0xff] }
 0x183   : > { %3124 = vmatpush1.bf16.msra.mxu0 %v5204_v50  ;;  %3175 = vmatpush1.bf16.msra.mxu1 %v5206_v51  ;;  %v3274_v50 = vld [vmem:[%s7643_s1 + $0xda8] sm:$0xff]  ;;  %v5256_v51 = vcombine.low %v3261_v61, %v3265_v17 }
 0x184   : > { %3125 = vmatprep.subr.bf16.mxu0 %v5213_v52  ;;  %3176 = vmatprep.subr.bf16.mxu1 %v5215_v53  ;;  %v5265_v53 = vcombine.high %v3269_v49, %v3273_v5  ;;  %v5267_v56 = vcombine.high %v3270_v63, %v3274_v50  ;;  %v3318_v61 = vld [vmem:[%s7643_s1 + $0xf08] sm:$0xff] }
 0x185   : > { %v3322_v17 = vld [vmem:[%s7643_s1 + $0xf28] sm:$0xff] }
 0x187   : > { %3126 = vmatpush1.bf16.msra.mxu0 %v5212_v10  ;;  %3177 = vmatpush1.bf16.msra.mxu1 %v5214_v36  ;;  %v3282_v10 = vld [vmem:[%s7643_s1 + $0xde8] sm:$0xff]  ;;  %v5264_v36 = vcombine.low %v3269_v49, %v3273_v5 }
 0x188   : > { %4008 = vmatprep.subr.bf16.mxu0 %v5217_v0  ;;  %4059 = vmatprep.subr.bf16.mxu1 %v5219_v3  ;;  %v5266_v0 = vcombine.low %v3270_v63, %v3274_v50  ;;  %v5273_v3 = vcombine.high %v3277_v58, %v3281_v59  ;;  %v5275_v6 = vcombine.high %v3278_v62, %v3282_v10  ;;  %v3326_v49 = vld [vmem:[%s7643_s1 + $0xf48] sm:$0xff] }
 0x189   : > { %v3330_v5 = vld [vmem:[%s7643_s1 + $0xf68] sm:$0xff]  ;;  %v5314_v50 = vcombine.low %v3318_v61, %v3322_v17 }
 0x18a   : > { %3128 = vmatmul.mubr.bf16.vlgmr.msra.gmra.mrb[8].mxu0 %v6803_v44  ;;  %3179 = vmatmul.mubr.bf16.vlgmr.msra.gmra.mrb[8].mxu1 %v6803_v44  ;;  %v3359_v44 = vor.u32 %v3358_v22, %v3357_v21  ;;  %v3298_v21 = vld [vmem:[%s7643_s1 + $0xe68] sm:$0xff]  ;;  %v5280_v22 = vcombine.low %v3285_v7, %v3289_v8 }
 0x18b   : > { %4009 = vmatpush1.bf16.msra.mxu0 %v5216_v11  ;;  %4060 = vmatpush1.bf16.msra.mxu1 %v5218_v12  ;;  %v3290_v11 = vld [vmem:[%s7643_s1 + $0xe28] sm:$0xff]  ;;  %v5272_v12 = vcombine.low %v3277_v58, %v3281_v59 }
 0x18c   : > { %4010 = vmatprep.subr.bf16.mxu0 %v5225_v40  ;;  %4061 = vmatprep.subr.bf16.mxu1 %v5227_v13  ;;  %v7052_v35 = vsel %vm3349_vm2, %v3359_v44, %v5891_v54  ;;  %v5274_v40 = vcombine.low %v3278_v62, %v3282_v10  ;;  %v5281_v13 = vcombine.high %v3285_v7, %v3289_v8  ;;  %v3334_v58 = vld [vmem:[%s7643_s1 + $0xf88] sm:$0xff] }
 0x18d   : > { %3137 = vmatprep.mubr.bf16.mxu0 %v6619_v34  ;;  %3188 = vmatprep.mubr.bf16.mxu1 %v6619_v34  ;;  %v3254_v34 = vld [vmem:[%s7643_s1 + $0xd08] sm:$0xff]  ;;  %v5283_v15 = vcombine.high %v3286_v9, %v3290_v11  ;;  %v5290_v44 = vcombine.low %v3294_v19, %v3298_v21  ;;  %v5322_v10 = vcombine.low %v3326_v49, %v3330_v5 }
 0x18e   : > { %v5251_v46 = vcombine.high %v3254_v34, %v3258_v33  ;;  %v5250_v43 = vcombine.low %v3254_v34, %v3258_v33  ;;  %v5298_v33 = vcombine.low %v3302_v1, %v3306_v60  ;;  %v3338_v59 = vld [vmem:[%s7643_s1 + $0xfa8] sm:$0xff] }
 0x18f   : > { %4011 = vmatpush1.bf16.msra.mxu0 %v5224_v23  ;;  %4062 = vmatpush1.bf16.msra.mxu1 %v5226_v25  ;;  %v5282_v23 = vcombine.low %v3286_v9, %v3290_v11  ;;  %v5289_v25 = vcombine.high %v3293_v16, %v3297_v18  ;;  %v3342_v7 = vld [vmem:[%s7643_s1 + $0xfc8] sm:$0xff]  ;;  %v3350_v9 = vrot.slane %v487_v24, 1  ;;  %v3223_v16 = vld [vmem:[%s7643_s1 + $0xc10] sm:$0xff]  ;;  %v3224_v24 = vld [vmem:[%s7643_s1 + $0xc18] sm:$0xff] }
 0x190   : > { %4012 = vmatprep.subr.bf16.mxu0 %v5233_v26  ;;  %4063 = vmatprep.subr.bf16.mxu1 %v5235_v27  ;;  %v5291_v26 = vcombine.high %v3294_v19, %v3298_v21  ;;  %v3301_v27 = vld [vmem:[%s7643_s1 + $0xe80] sm:$0xff]  ;;  %v3346_v8 = vld [vmem:[%s7643_s1 + $0xfe8] sm:$0xff]  ;;  %v3227_v18 = vld [vmem:[%s7643_s1 + $0xc30] sm:$0xff] }
 0x191   : > { %v5296_v34 = vcombine.low %v3301_v27, %v3305_v28  ;;  %v5338_v21 = vcombine.low %v3342_v7, %v3346_v8 }
 0x192   : > { %3138 = vmatmul.mubr.bf16.gmra.mrb[12].mxu0 %v6787_v38  ;;  %3189 = vmatmul.mubr.bf16.gmra.mrb[12].mxu1 %v6787_v38  ;;  %v3262_v38 = vld [vmem:[%s7643_s1 + $0xd48] sm:$0xff] }
 0x193   : > { %4013 = vmatpush1.bf16.msra.mxu0 %v5232_v30  ;;  %4064 = vmatpush1.bf16.msra.mxu1 %v5234_v55  ;;  %v5259_v39 = vcombine.high %v3262_v38, %v3266_v48  ;;  %v5258_v52 = vcombine.low %v3262_v38, %v3266_v48  ;;  %v5297_v30 = vcombine.high %v3301_v27, %v3305_v28  ;;  %v3232_v27 = vld [vmem:[%s7643_s1 + $0xc58] sm:$0xff] }
 0x194   : > { %4014 = vmatprep.subr.bf16.mxu0 %v5241_v31  ;;  %4065 = vmatprep.subr.bf16.mxu1 %v5243_v20  ;;  %v5299_v55 = vcombine.high %v3302_v1, %v3306_v60  ;;  %v3309_v31 = vld [vmem:[%s7643_s1 + $0xec0] sm:$0xff]  ;;  %v5306_v48 = vcombine.low %v3310_v32, %v3314_v47  ;;  %v3236_v28 = vld [vmem:[%s7643_s1 + $0xc78] sm:$0xff]  ;;  %v5220_v60 = vcombine.low %v3223_v16, %v3227_v18 }
 0x195   : > { %4040 = vmatprep.mubr.bf16.mxu0 %v7052_v35  ;;  %4091 = vmatprep.mubr.bf16.mxu1 %v7052_v35  ;;  %v3313_v20 = vld [vmem:[%s7643_s1 + $0xee0] sm:$0xff] }
 0x196   : > { %v5304_v38 = vcombine.low %v3309_v31, %v3313_v20 }
 0x197   : > { %4015 = vmatpush1.bf16.msra.mxu0 %v5240_v37  ;;  %4066 = vmatpush1.bf16.msra.mxu1 %v5242_v41  ;;  %v5305_v37 = vcombine.high %v3309_v31, %v3313_v20  ;;  %v5307_v41 = vcombine.high %v3310_v32, %v3314_v47  ;;  %v3243_v31 = vld [vmem:[%s7643_s1 + $0xcb0] sm:$0xff]  ;;  %v3240_v20 = vld [vmem:[%s7643_s1 + $0xc98] sm:$0xff] }
 0x198   : > { %4016 = vmatprep.subr.bf16.mxu0 %v5249_v42  ;;  %4067 = vmatprep.subr.bf16.mxu1 %v5251_v46  ;;  %v3317_v42 = vld [vmem:[%s7643_s1 + $0xf00] sm:$0xff]  ;;  %v3244_v32 = vld [vmem:[%s7643_s1 + $0xcb8] sm:$0xff] }
 0x199   : > { %v3321_v46 = vld [vmem:[%s7643_s1 + $0xf20] sm:$0xff] }
 0x19a   : > { %v5312_v63 = vcombine.low %v3317_v42, %v3321_v46 }
 0x19b   : > { %4017 = vmatpush1.bf16.msra.mxu0 %v5248_v29  ;;  %4068 = vmatpush1.bf16.msra.mxu1 %v5250_v43  ;;  %v5313_v29 = vcombine.high %v3317_v42, %v3321_v46  ;;  %v5315_v43 = vcombine.high %v3318_v61, %v3322_v17  ;;  %v3251_v42 = vld [vmem:[%s7643_s1 + $0xcf0] sm:$0xff]  ;;  %v3248_v46 = vld [vmem:[%s7643_s1 + $0xcd8] sm:$0xff] }
 0x19c   : > { %4018 = vmatprep.subr.bf16.mxu0 %v5257_v45  ;;  %4069 = vmatprep.subr.bf16.mxu1 %v5259_v39  ;;  %v3325_v45 = vld [vmem:[%s7643_s1 + $0xf40] sm:$0xff]  ;;  %v3252_v61 = vld [vmem:[%s7643_s1 + $0xcf8] sm:$0xff] }
 0x19d   : > { %v3329_v39 = vld [vmem:[%s7643_s1 + $0xf60] sm:$0xff] }
 0x19e   : > { %v5320_v62 = vcombine.low %v3325_v45, %v3329_v39 }
 0x19f   : > { %4019 = vmatpush1.bf16.msra.mxu0 %v5256_v51  ;;  %4070 = vmatpush1.bf16.msra.mxu1 %v5258_v52  ;;  %v5321_v51 = vcombine.high %v3325_v45, %v3329_v39  ;;  %v5323_v52 = vcombine.high %v3326_v49, %v3330_v5  ;;  %v3259_v45 = vld [vmem:[%s7643_s1 + $0xd30] sm:$0xff]  ;;  %v3256_v39 = vld [vmem:[%s7643_s1 + $0xd18] sm:$0xff] }
 0x1a0   : > { %4020 = vmatprep.subr.bf16.mxu0 %v5265_v53  ;;  %4071 = vmatprep.subr.bf16.mxu1 %v5267_v56  ;;  %v3333_v53 = vld [vmem:[%s7643_s1 + $0xf80] sm:$0xff]  ;;  %v3260_v49 = vld [vmem:[%s7643_s1 + $0xd38] sm:$0xff] }
 0x1a1   : > { %v3337_v56 = vld [vmem:[%s7643_s1 + $0xfa0] sm:$0xff] }
 0x1a2   : > { %v5328_v11 = vcombine.low %v3333_v53, %v3337_v56 }
 0x1a3   : > { %4021 = vmatpush1.bf16.msra.mxu0 %v5264_v36  ;;  %4072 = vmatpush1.bf16.msra.mxu1 %v5266_v0  ;;  %v5329_v36 = vcombine.high %v3333_v53, %v3337_v56  ;;  %v5331_v0 = vcombine.high %v3334_v58, %v3338_v59  ;;  %v3267_v53 = vld [vmem:[%s7643_s1 + $0xd70] sm:$0xff]  ;;  %v3264_v56 = vld [vmem:[%s7643_s1 + $0xd58] sm:$0xff] }
 0x1a4   : > { %4022 = vmatprep.subr.bf16.mxu0 %v5273_v3  ;;  %4073 = vmatprep.subr.bf16.mxu1 %v5275_v6  ;;  %v3341_v3 = vld [vmem:[%s7643_s1 + $0xfc0] sm:$0xff] }
 0x1a5   : > { %v3345_v6 = vld [vmem:[%s7643_s1 + $0xfe0] sm:$0xff] }
 0x1a7   : > { %4023 = vmatpush1.bf16.msra.mxu0 %v5272_v12  ;;  %4074 = vmatpush1.bf16.msra.mxu1 %v5274_v40  ;;  %v3351_v12 = vrot.slane %v489_v14, 2  ;;  %v5330_v40 = vcombine.low %v3334_v58, %v3338_v59  ;;  %v5336_v14 = vcombine.low %v3341_v3, %v3345_v6  ;;  %v3268_v58 = vld [vmem:[%s7643_s1 + $0xd78] sm:$0xff] }
 0x1a8   : > { %4024 = vmatprep.subr.bf16.mxu0 %v5281_v13  ;;  %4075 = vmatprep.subr.bf16.mxu1 %v5283_v15  ;;  %v5337_v13 = vcombine.high %v3341_v3, %v3345_v6  ;;  %v5339_v15 = vcombine.high %v3342_v7, %v3346_v8  ;;  %v3275_v3 = vld [vmem:[%s7643_s1 + $0xdb0] sm:$0xff]  ;;  %v3276_v6 = vld [vmem:[%s7643_s1 + $0xdb8] sm:$0xff]  ;;  %v5262_v8 = vcombine.low %v3264_v56, %v3268_v58 }
 0x1a9   : > { %v3352_v19 = vor.u32 %v3351_v12, %v3350_v9  ;;  %v3279_v12 = vld [vmem:[%s7643_s1 + $0xdd0] sm:$0xff] }
 0x1ab   : > { %4025 = vmatpush1.bf16.msra.mxu0 %v5280_v22  ;;  %4076 = vmatpush1.bf16.msra.mxu1 %v5282_v23  ;;  %v5221_v22 = vcombine.high %v3223_v16, %v3227_v18  ;;  %v5223_v23 = vcombine.high %v3224_v24, %v3228_v4  ;;  %v7219_v1 = vsel %vm3349_vm2, %v3352_v19, %v5893_v57  ;;  %v3291_v19 = vld [vmem:[%s7643_s1 + $0xe30] sm:$0xff] }
 0x1ac   : > { %4026 = vmatprep.subr.bf16.mxu0 %v5289_v25  ;;  %4077 = vmatprep.subr.bf16.mxu1 %v5291_v26  ;;  %v3231_v25 = vld [vmem:[%s7643_s1 + $0xc50] sm:$0xff] }
 0x1ad   : > { %v3235_v26 = vld [vmem:[%s7643_s1 + $0xc70] sm:$0xff] }
 0x1ae   : > { %v5228_v47 = vcombine.low %v3231_v25, %v3235_v26 }
 0x1af   : > { %4027 = vmatpush1.bf16.msra.mxu0 %v5288_v2  ;;  %4078 = vmatpush1.bf16.msra.mxu1 %v5290_v44  ;;  %v5222_v2 = vcombine.low %v3224_v24, %v3228_v4  ;;  %v5229_v44 = vcombine.high %v3231_v25, %v3235_v26 }
 0x1b0   : > { %4028 = vmatprep.subr.bf16.mxu0 %v5297_v30  ;;  %4079 = vmatprep.subr.bf16.mxu1 %v5299_v55  ;;  %v5231_v30 = vcombine.high %v3232_v27, %v3236_v28  ;;  %v3239_v55 = vld [vmem:[%s7643_s1 + $0xc90] sm:$0xff] }
 0x1b1   : > { %v5236_v17 = vcombine.low %v3239_v55, %v3243_v31 }
 0x1b3   : > { %4029 = vmatpush1.bf16.msra.mxu0 %v5296_v34  ;;  %4080 = vmatpush1.bf16.msra.mxu1 %v5298_v33  ;;  %v5230_v34 = vcombine.low %v3232_v27, %v3236_v28  ;;  %v5237_v33 = vcombine.high %v3239_v55, %v3243_v31  ;;  %v3295_v28 = vld [vmem:[%s7643_s1 + $0xe50] sm:$0xff] }
 0x1b4   : > { %4030 = vmatprep.subr.bf16.mxu0 %v5305_v37  ;;  %4081 = vmatprep.subr.bf16.mxu1 %v5307_v41  ;;  %v5239_v37 = vcombine.high %v3240_v20, %v3244_v32  ;;  %v3247_v41 = vld [vmem:[%s7643_s1 + $0xcd0] sm:$0xff] }
 0x1b5   : > { %v5244_v5 = vcombine.low %v3247_v41, %v3251_v42 }
 0x1b7   : > { %4031 = vmatpush1.bf16.msra.mxu0 %v5304_v38  ;;  %4082 = vmatpush1.bf16.msra.mxu1 %v5306_v48  ;;  %v5238_v38 = vcombine.low %v3240_v20, %v3244_v32  ;;  %v5245_v48 = vcombine.high %v3247_v41, %v3251_v42  ;;  %v3303_v32 = vld [vmem:[%s7643_s1 + $0xe90] sm:$0xff] }
 0x1b8   : > { %4032 = vmatprep.subr.bf16.mxu0 %v5313_v29  ;;  %4083 = vmatprep.subr.bf16.mxu1 %v5315_v43  ;;  %v5247_v29 = vcombine.high %v3248_v46, %v3252_v61  ;;  %v3255_v43 = vld [vmem:[%s7643_s1 + $0xd10] sm:$0xff] }
 0x1b9   : > { %v5252_v59 = vcombine.low %v3255_v43, %v3259_v45 }
 0x1bb   : > { %4033 = vmatpush1.bf16.msra.mxu0 %v5312_v63  ;;  %4084 = vmatpush1.bf16.msra.mxu1 %v5314_v50  ;;  %v5246_v63 = vcombine.low %v3248_v46, %v3252_v61  ;;  %v5253_v50 = vcombine.high %v3255_v43, %v3259_v45  ;;  %v3311_v61 = vld [vmem:[%s7643_s1 + $0xed0] sm:$0xff] }
 0x1bc   : > { %4034 = vmatprep.subr.bf16.mxu0 %v5321_v51  ;;  %4085 = vmatprep.subr.bf16.mxu1 %v5323_v52  ;;  %v5255_v51 = vcombine.high %v3256_v39, %v3260_v49  ;;  %v3263_v52 = vld [vmem:[%s7643_s1 + $0xd50] sm:$0xff] }
 0x1bd   : > { %v5260_v7 = vcombine.low %v3263_v52, %v3267_v53 }
 0x1bf   : > { %4035 = vmatpush1.bf16.msra.mxu0 %v5320_v62  ;;  %4086 = vmatpush1.bf16.msra.mxu1 %v5322_v10  ;;  %v5254_v62 = vcombine.low %v3256_v39, %v3260_v49  ;;  %v5261_v10 = vcombine.high %v3263_v52, %v3267_v53  ;;  %v3319_v49 = vld [vmem:[%s7643_s1 + $0xf10] sm:$0xff] }
 0x1c0   : > { %4036 = vmatprep.subr.bf16.mxu0 %v5329_v36  ;;  %4087 = vmatprep.subr.bf16.mxu1 %v5331_v0  ;;  %v5263_v36 = vcombine.high %v3264_v56, %v3268_v58  ;;  %v3271_v0 = vld [vmem:[%s7643_s1 + $0xd90] sm:$0xff] }
 0x1c1   : > { %v5269_v9 = vcombine.high %v3271_v0, %v3275_v3  ;;  %v5268_v16 = vcombine.low %v3271_v0, %v3275_v3  ;;  %v3327_v58 = vld [vmem:[%s7643_s1 + $0xf50] sm:$0xff] }
 0x1c3   : > { %4037 = vmatpush1.bf16.msra.mxu0 %v5328_v11  ;;  %4088 = vmatpush1.bf16.msra.mxu1 %v5330_v40  ;;  %v3283_v40 = vld [vmem:[%s7643_s1 + $0xdf0] sm:$0xff] }
 0x1c4   : > { %4038 = vmatprep.subr.bf16.mxu0 %v5337_v13  ;;  %4089 = vmatprep.subr.bf16.mxu1 %v5339_v15  ;;  %v3280_v13 = vld [vmem:[%s7643_s1 + $0xdd8] sm:$0xff]  ;;  %v5277_v24 = vcombine.high %v3279_v12, %v3283_v40 }
 0x1c5   : > { %v3284_v15 = vld [vmem:[%s7643_s1 + $0xdf8] sm:$0xff] }
 0x1c6   : > { %v5279_v4 = vcombine.high %v3280_v13, %v3284_v15  ;;  %v5278_v25 = vcombine.low %v3280_v13, %v3284_v15  ;;  %v3343_v15 = vld [vmem:[%s7643_s1 + $0xfd0] sm:$0xff] }
 0x1c7   : > { %4039 = vmatpush1.bf16.msra.mxu0 %v5336_v14  ;;  %4090 = vmatpush1.bf16.msra.mxu1 %v5338_v21  ;;  %v3287_v14 = vld [vmem:[%s7643_s1 + $0xe10] sm:$0xff]  ;;  %v3288_v21 = vld [vmem:[%s7643_s1 + $0xe18] sm:$0xff] }
 0x1c8   : > { %4110 = vmatprep.subr.bf16.mxu0 %v5221_v22  ;;  %4161 = vmatprep.subr.bf16.mxu1 %v5223_v23  ;;  %v3292_v22 = vld [vmem:[%s7643_s1 + $0xe38] sm:$0xff]  ;;  %v5276_v23 = vcombine.low %v3279_v12, %v3283_v40  ;;  %v5285_v26 = vcombine.high %v3287_v14, %v3291_v19 }
 0x1c9   : > { %v5287_v27 = vcombine.high %v3288_v21, %v3292_v22  ;;  %v5286_v55 = vcombine.low %v3288_v21, %v3292_v22 }
 0x1ca   : > { %4041 = vmatmul.mubr.bf16.vlgmr.msra.gmra.mrb[0].mxu0 %v7219_v1  ;;  %4092 = vmatmul.mubr.bf16.vlgmr.msra.gmra.mrb[0].mxu1 %v7219_v1 }
 0x1cb   : > { %4111 = vmatpush1.bf16.msra.mxu0 %v5220_v60  ;;  %4162 = vmatpush1.bf16.msra.mxu1 %v5222_v2  ;;  %v3299_v60 = vld [vmem:[%s7643_s1 + $0xe70] sm:$0xff]  ;;  %v3296_v2 = vld [vmem:[%s7643_s1 + $0xe58] sm:$0xff] }
 0x1cc   : > { %4112 = vmatprep.subr.bf16.mxu0 %v5229_v44  ;;  %4163 = vmatprep.subr.bf16.mxu1 %v5231_v30  ;;  %v3300_v44 = vld [vmem:[%s7643_s1 + $0xe78] sm:$0xff]  ;;  %v5284_v30 = vcombine.low %v3287_v14, %v3291_v19  ;;  %v5293_v31 = vcombine.high %v3295_v28, %v3299_v60 }
 0x1cd   : > { %4050 = vmatprep.mubr.bf16.mxu0 %v5891_v54  ;;  %4101 = vmatprep.mubr.bf16.mxu1 %v5891_v54  ;;  %v5295_v20 = vcombine.high %v3296_v2, %v3300_v44  ;;  %v5294_v41 = vcombine.low %v3296_v2, %v3300_v44  ;;  %v5571_v2 = vld [vmem:[%s7644_s2 + $0x50] sm:$0xff]  }
 0x1ce   : > { %v5572_v44 = vld [vmem:[%s7644_s2 + $0xd0] sm:$0xff]  }
 0x1cf   : > { %4113 = vmatpush1.bf16.msra.mxu0 %v5228_v47  ;;  %4164 = vmatpush1.bf16.msra.mxu1 %v5230_v34  ;;  %v3307_v47 = vld [vmem:[%s7643_s1 + $0xeb0] sm:$0xff]  ;;  %v3304_v34 = vld [vmem:[%s7643_s1 + $0xe98] sm:$0xff] }
 0x1d0   : > { %4114 = vmatprep.subr.bf16.mxu0 %v5237_v33  ;;  %4165 = vmatprep.subr.bf16.mxu1 %v5239_v37  ;;  %v3308_v33 = vld [vmem:[%s7643_s1 + $0xeb8] sm:$0xff]  ;;  %v5292_v37 = vcombine.low %v3295_v28, %v3299_v60  ;;  %v5301_v42 = vcombine.high %v3303_v32, %v3307_v47  ;;  %v5569_v28 = vld [vmem:[%s7644_s2 + $0x8] sm:$0xff]  }
 0x1d1   : > { %v5303_v46 = vcombine.high %v3304_v34, %v3308_v33  ;;  %v5302_v43 = vcombine.low %v3304_v34, %v3308_v33  ;;  %v5570_v60 = vld [vmem:[%s7644_s2 + $0x88] sm:$0xff]   ;;  %v5579_v34 = vld [vmem:[%s7644_s2 + $0x60] sm:$0xff]  }
 0x1d2   : > { %4051 = vmatmul.mubr.bf16.gmra.mrb[4].mxu0 %v5893_v57  ;;  %4102 = vmatmul.mubr.bf16.gmra.mrb[4].mxu1 %v5893_v57  ;;  %v5580_v33 = vld [vmem:[%s7644_s2 + $0xe0] sm:$0xff]  }
 0x1d3   : > { %4115 = vmatpush1.bf16.msra.mxu0 %v5236_v17  ;;  %4166 = vmatpush1.bf16.msra.mxu1 %v5238_v38  ;;  %v3315_v17 = vld [vmem:[%s7643_s1 + $0xef0] sm:$0xff]  ;;  %v3312_v38 = vld [vmem:[%s7643_s1 + $0xed8] sm:$0xff] }
 0x1d4   : > { %4116 = vmatprep.subr.bf16.mxu0 %v5245_v48  ;;  %4167 = vmatprep.subr.bf16.mxu1 %v5247_v29  ;;  %v3316_v48 = vld [vmem:[%s7643_s1 + $0xef8] sm:$0xff]  ;;  %v5300_v29 = vcombine.low %v3303_v32, %v3307_v47  ;;  %v5309_v45 = vcombine.high %v3311_v61, %v3315_v17 }
 0x1d5   : > { %4142 = vmatprep.mubr.bf16.mxu0 %v7052_v35  ;;  %4193 = vmatprep.mubr.bf16.mxu1 %v7052_v35  ;;  %v3272_v35 = vld [vmem:[%s7643_s1 + $0xd98] sm:$0xff]  ;;  %v5311_v39 = vcombine.high %v3312_v38, %v3316_v48  ;;  %v5310_v52 = vcombine.low %v3312_v38, %v3316_v48  ;;  %v5587_v38 = vld [vmem:[%s7644_s2 + $0x70] sm:$0xff]  }
 0x1d6   : > { %v5271_v11 = vcombine.high %v3272_v35, %v3276_v6  ;;  %v5270_v18 = vcombine.low %v3272_v35, %v3276_v6  ;;  %v3335_v6 = vld [vmem:[%s7643_s1 + $0xf90] sm:$0xff]  ;;  %v5577_v32 = vld [vmem:[%s7644_s2 + $0x18] sm:$0xff]  }
 0x1d7   : > { %4117 = vmatpush1.bf16.msra.mxu0 %v5244_v5  ;;  %4168 = vmatpush1.bf16.msra.mxu1 %v5246_v63  ;;  %v3323_v5 = vld [vmem:[%s7643_s1 + $0xf30] sm:$0xff]  ;;  %v3320_v63 = vld [vmem:[%s7643_s1 + $0xf18] sm:$0xff] }
 0x1d8   : > { %4118 = vmatprep.subr.bf16.mxu0 %v5253_v50  ;;  %4169 = vmatprep.subr.bf16.mxu1 %v5255_v51  ;;  %v3324_v50 = vld [vmem:[%s7643_s1 + $0xf38] sm:$0xff]  ;;  %v5308_v51 = vcombine.low %v3311_v61, %v3315_v17  ;;  %v5317_v53 = vcombine.high %v3319_v49, %v3323_v5  ;;  %v5585_v61 = vld [vmem:[%s7644_s2 + $0x28] sm:$0xff]   ;;  %v5588_v48 = vld [vmem:[%s7644_s2 + $0xf0] sm:$0xff]  }
 0x1d9   : > { %v5319_v56 = vcombine.high %v3320_v63, %v3324_v50  ;;  %v5318_v0 = vcombine.low %v3320_v63, %v3324_v50  ;;  %v5578_v47 = vld [vmem:[%s7644_s2 + $0x98] sm:$0xff]   ;;  %v5586_v17 = vld [vmem:[%s7644_s2 + $0xa8] sm:$0xff]  }
 0x1db   : > { %4119 = vmatpush1.bf16.msra.mxu0 %v5252_v59  ;;  %4170 = vmatpush1.bf16.msra.mxu1 %v5254_v62  ;;  %v3331_v59 = vld [vmem:[%s7643_s1 + $0xf70] sm:$0xff]  ;;  %v3328_v62 = vld [vmem:[%s7643_s1 + $0xf58] sm:$0xff] }
 0x1dc   : > { %4120 = vmatprep.subr.bf16.mxu0 %v5261_v10  ;;  %4171 = vmatprep.subr.bf16.mxu1 %v5263_v36  ;;  %v3332_v10 = vld [vmem:[%s7643_s1 + $0xf78] sm:$0xff]  ;;  %v5316_v36 = vcombine.low %v3319_v49, %v3323_v5  ;;  %v5325_v3 = vcombine.high %v3327_v58, %v3331_v59 }
 0x1dd   : > { %v5327_v35 = vcombine.high %v3328_v62, %v3332_v10  ;;  %v5326_v12 = vcombine.low %v3328_v62, %v3332_v10  ;;  %v5593_v49 = vld [vmem:[%s7644_s2 + $0x38] sm:$0xff]  }
 0x1de   : > { %v5594_v5 = vld [vmem:[%s7644_s2 + $0xb8] sm:$0xff]  }
 0x1df   : > { %4121 = vmatpush1.bf16.msra.mxu0 %v5260_v7  ;;  %4172 = vmatpush1.bf16.msra.mxu1 %v5262_v8  ;;  %v3339_v7 = vld [vmem:[%s7643_s1 + $0xfb0] sm:$0xff]  ;;  %v3336_v8 = vld [vmem:[%s7643_s1 + $0xf98] sm:$0xff] }
 0x1e0   : > { %4122 = vmatprep.subr.bf16.mxu0 %v5269_v9  ;;  %4173 = vmatprep.subr.bf16.mxu1 %v5271_v11  ;;  %v3340_v9 = vld [vmem:[%s7643_s1 + $0xfb8] sm:$0xff]  ;;  %v5324_v11 = vcombine.low %v3327_v58, %v3331_v59  ;;  %v5333_v40 = vcombine.high %v3335_v6, %v3339_v7 }
 0x1e1   : > { %v5335_v13 = vcombine.high %v3336_v8, %v3340_v9  ;;  %v5334_v14 = vcombine.low %v3336_v8, %v3340_v9 }
 0x1e3   : > { %4123 = vmatpush1.bf16.msra.mxu0 %v5268_v16  ;;  %4174 = vmatpush1.bf16.msra.mxu1 %v5270_v18  ;;  %v3347_v16 = vld [vmem:[%s7643_s1 + $0xff0] sm:$0xff]  ;;  %v3344_v18 = vld [vmem:[%s7643_s1 + $0xfd8] sm:$0xff] }
 0x1e4   : > { %4124 = vmatprep.subr.bf16.mxu0 %v5277_v24  ;;  %4175 = vmatprep.subr.bf16.mxu1 %v5279_v4  ;;  %v3348_v24 = vld [vmem:[%s7643_s1 + $0xff8] sm:$0xff]  ;;  %v5332_v4 = vcombine.low %v3335_v6, %v3339_v7  ;;  %v5341_v19 = vcombine.high %v3343_v15, %v3347_v16  ;;  %v5340_v22 = vcombine.low %v3343_v15, %v3347_v16 }
 0x1e5   : > { %v5343_v21 = vcombine.high %v3344_v18, %v3348_v24 }
 0x1e7   : > { %4125 = vmatpush1.bf16.msra.mxu0 %v5276_v23  ;;  %4176 = vmatpush1.bf16.msra.mxu1 %v5278_v25  ;;  %v5342_v23 = vcombine.low %v3344_v18, %v3348_v24  ;;  %v5563_v25 = vld [vmem:[%s7644_s2 + $0x40] sm:$0xff]  }
 0x1e8   : > { %4126 = vmatprep.subr.bf16.mxu0 %v5285_v26  ;;  %4177 = vmatprep.subr.bf16.mxu1 %v5287_v27  ;;  %v5564_v26 = vld [vmem:[%s7644_s2 + $0xc0] sm:$0xff]   ;;  %v5568_v27 = vld [vmem:[%s7644_s2 + $0xc8] sm:$0xff]  }
 0x1eb   : > { %4127 = vmatpush1.bf16.msra.mxu0 %v5284_v30  ;;  %4178 = vmatpush1.bf16.msra.mxu1 %v5286_v55  ;;  %v5573_v30 = vld [vmem:[%s7644_s2 + $0x10] sm:$0xff]  }
 0x1ec   : > { %4128 = vmatprep.subr.bf16.mxu0 %v5293_v31  ;;  %4179 = vmatprep.subr.bf16.mxu1 %v5295_v20  ;;  %v5574_v55 = vld [vmem:[%s7644_s2 + $0x90] sm:$0xff]   ;;  %v5575_v31 = vld [vmem:[%s7644_s2 + $0x58] sm:$0xff]  }
 0x1ed   : > { %v5576_v20 = vld [vmem:[%s7644_s2 + $0xd8] sm:$0xff]  }
 0x1ef   : > { %4129 = vmatpush1.bf16.msra.mxu0 %v5292_v37  ;;  %4180 = vmatpush1.bf16.msra.mxu1 %v5294_v41  ;;  %v5581_v37 = vld [vmem:[%s7644_s2 + $0x20] sm:$0xff]  }
 0x1f0   : > { %4130 = vmatprep.subr.bf16.mxu0 %v5301_v42  ;;  %4181 = vmatprep.subr.bf16.mxu1 %v5303_v46  ;;  %v5582_v41 = vld [vmem:[%s7644_s2 + $0xa0] sm:$0xff]   ;;  %v5583_v42 = vld [vmem:[%s7644_s2 + $0x68] sm:$0xff]  }
 0x1f1   : > { %v5584_v46 = vld [vmem:[%s7644_s2 + $0xe8] sm:$0xff]  }
 0x1f3   : > { %4131 = vmatpush1.bf16.msra.mxu0 %v5300_v29  ;;  %4182 = vmatpush1.bf16.msra.mxu1 %v5302_v43  ;;  %v5589_v29 = vld [vmem:[%s7644_s2 + $0x30] sm:$0xff]  }
 0x1f4   : > { %4132 = vmatprep.subr.bf16.mxu0 %v5309_v45  ;;  %4183 = vmatprep.subr.bf16.mxu1 %v5311_v39  ;;  %v5590_v43 = vld [vmem:[%s7644_s2 + $0xb0] sm:$0xff]   ;;  %v5591_v45 = vld [vmem:[%s7644_s2 + $0x78] sm:$0xff]  }
 0x1f5   : > { %v5592_v39 = vld [vmem:[%s7644_s2 + $0xf8] sm:$0xff]  }
 0x1f7   : > { %4133 = vmatpush1.bf16.msra.mxu0 %v5308_v51  ;;  %4184 = vmatpush1.bf16.msra.mxu1 %v5310_v52 }
 0x1f8   : > { %4134 = vmatprep.subr.bf16.mxu0 %v5317_v53  ;;  %4185 = vmatprep.subr.bf16.mxu1 %v5319_v56 }
 0x1fb   : > { %4135 = vmatpush1.bf16.msra.mxu0 %v5316_v36  ;;  %4186 = vmatpush1.bf16.msra.mxu1 %v5318_v0 }
 0x1fc   : > { %4136 = vmatprep.subr.bf16.mxu0 %v5325_v3  ;;  %4187 = vmatprep.subr.bf16.mxu1 %v5327_v35 }
 0x1ff   : > { %4137 = vmatpush1.bf16.msra.mxu0 %v5324_v11  ;;  %4188 = vmatpush1.bf16.msra.mxu1 %v5326_v12 }
 0x200   : > { %4138 = vmatprep.subr.bf16.mxu0 %v5333_v40  ;;  %4189 = vmatprep.subr.bf16.mxu1 %v5335_v13 }
 0x203   : > { %4139 = vmatpush1.bf16.msra.mxu0 %v5332_v4  ;;  %4190 = vmatpush1.bf16.msra.mxu1 %v5334_v14 }
 0x204   : > { %4140 = vmatprep.subr.bf16.mxu0 %v5341_v19  ;;  %4191 = vmatprep.subr.bf16.mxu1 %v5343_v21 }
 0x207   : > { %4141 = vmatpush1.bf16.msra.mxu0 %v5340_v22  ;;  %4192 = vmatpush1.bf16.msra.mxu1 %v5342_v23 }
 0x208   : > { %5379 = vmatprep.subr.bf16.mxu0 %v5563_v25  ;;  %5407 = vmatprep.subr.bf16.mxu1 %v5564_v26 }
 0x20a   : > { %4143 = vmatmul.mubr.bf16.vlgmr.msra.gmra.mrb[8].mxu0 %v7219_v1  ;;  %4194 = vmatmul.mubr.bf16.vlgmr.msra.gmra.mrb[8].mxu1 %v7219_v1  ;;  %v5565_v1 = vld [vmem:[%s7644_s2] sm:$0xff]  }
 0x20b   : > { %4152 = vmatprep.mubr.bf16.mxu0 %v5891_v54  ;;  %4203 = vmatprep.mubr.bf16.mxu1 %v5891_v54  ;;  %v5566_v54 = vld [vmem:[%s7644_s2 + $0x80] sm:$0xff]  }
 0x20c   : > { %5380 = vmatpush3.bf16.msra.mxu0 %v5565_v1  ;;  %5408 = vmatpush3.bf16.msra.mxu1 %v5566_v54 }
 0x20d   : > { %5409 = vmatprep.subr.bf16.mxu1 %v5568_v27 }
 0x210   : > { %5410 = vmatpush3.bf16.msra.mxu1 %v5570_v60 }
 0x211   : > { %5411 = vmatprep.subr.bf16.mxu1 %v5572_v44 }
 0x212   : > { %4153 = vmatmul.mubr.bf16.gmra.mrb[12].mxu0 %v5893_v57  ;;  %4204 = vmatmul.mubr.bf16.gmra.mrb[12].mxu1 %v5893_v57  ;;  %v5567_v57 = vld [vmem:[%s7644_s2 + $0x48] sm:$0xff]  }
 0x213   : > { %5381 = vmatprep.subr.bf16.mxu0 %v5567_v57 }
 0x214   : > { %5382 = vmatpush3.bf16.msra.mxu0 %v5569_v28  ;;  %5412 = vmatpush3.bf16.msra.mxu1 %v5574_v55 }
 0x215   : > { %5383 = vmatprep.subr.bf16.mxu0 %v5571_v2  ;;  %5413 = vmatprep.subr.bf16.mxu1 %v5576_v20 }
 0x218   : > { %5384 = vmatpush3.bf16.msra.mxu0 %v5573_v30  ;;  %5414 = vmatpush3.bf16.msra.mxu1 %v5578_v47 }
 0x219   : > { %5385 = vmatprep.subr.bf16.mxu0 %v5575_v31  ;;  %5415 = vmatprep.subr.bf16.mxu1 %v5580_v33 }
 0x21c   : > { %5386 = vmatpush3.bf16.msra.mxu0 %v5577_v32  ;;  %5416 = vmatpush3.bf16.msra.mxu1 %v5582_v41 }
 0x21d   : > { %5387 = vmatprep.subr.bf16.mxu0 %v5579_v34  ;;  %5417 = vmatprep.subr.bf16.mxu1 %v5584_v46 }
 0x220   : > { %5388 = vmatpush3.bf16.msra.mxu0 %v5581_v37  ;;  %5418 = vmatpush3.bf16.msra.mxu1 %v5586_v17 }
 0x221   : > { %5389 = vmatprep.subr.bf16.mxu0 %v5583_v42  ;;  %5419 = vmatprep.subr.bf16.mxu1 %v5588_v48 }
 0x224   : > { %5390 = vmatpush3.bf16.msra.mxu0 %v5585_v61  ;;  %5420 = vmatpush3.bf16.msra.mxu1 %v5590_v43 }
 0x225   : > { %5391 = vmatprep.subr.bf16.mxu0 %v5587_v38  ;;  %5421 = vmatprep.subr.bf16.mxu1 %v5592_v39 }
 0x228   : > { %5392 = vmatpush3.bf16.msra.mxu0 %v5589_v29  ;;  %5422 = vmatpush3.bf16.msra.mxu1 %v5594_v5 }
 0x229   : > { %5393 = vmatprep.subr.bf16.mxu0 %v5591_v45 }
 0x22c   : > { %5394 = vmatpush3.bf16.msra.mxu0 %v5593_v49 }
 0x29d   : > { %v4042_v63 = vpop.f32.mrb[0].mxu0  ;;  %v4093_v50 = vpop.f32.mrb[0].mxu1 }
 0x29e   : > { %v4044_v51 = vpop.f32.mrb[1].mxu0  ;;  %v4095_v52 = vpop.f32.mrb[1].mxu1  ;;  %v4236_v8 = vmul.f32 %v4042_v63, %v4042_v63  ;;  %v4238_v9 = vmul.f32 %v4093_v50, %v4093_v50 }
 0x29f   : > { %v4046_v53 = vpop.f32.mrb[2].mxu0  ;;  %v4097_v56 = vpop.f32.mrb[2].mxu1  ;;  %v4237_v12 = vmul.f32 %v4044_v51, %v4044_v51  ;;  %v4239_v40 = vmul.f32 %v4095_v52, %v4095_v52 }
 0x2a0   : > { %v4048_v58 = vpop.f32.mrb[3].mxu0  ;;  %v4099_v59 = vpop.f32.mrb[3].mxu1  ;;  %v4240_v13 = vmul.f32 %v4046_v53, %v4046_v53  ;;  %v4242_v24 = vmul.f32 %v4097_v56, %v4097_v56 }
 0x2a1   : > { %v4241_v4 = vmul.f32 %v4048_v58, %v4048_v58  ;;  %v4243_v23 = vmul.f32 %v4099_v59, %v4099_v59 }
 0x2a5   : > { %v4052_v62 = vpop.f32.mrb[4].mxu0  ;;  %v4103_v10 = vpop.f32.mrb[4].mxu1 }
 0x2a6   : > { %v4054_v36 = vpop.f32.mrb[5].mxu0  ;;  %v4105_v0 = vpop.f32.mrb[5].mxu1  ;;  %v4244_v33 = vmul.f32 %v4052_v62, %v4052_v62  ;;  %v4246_v37 = vmul.f32 %v4103_v10, %v4103_v10 }
 0x2a7   : > { %v4056_v3 = vpop.f32.mrb[6].mxu0  ;;  %v4107_v35 = vpop.f32.mrb[6].mxu1  ;;  %v4245_v61 = vmul.f32 %v4054_v36, %v4054_v36  ;;  %v4247_v43 = vmul.f32 %v4105_v0, %v4105_v0 }
 0x2a8   : > { %v4057_v6 = vpop.f32.mrb[7].mxu0  ;;  %v4108_v7 = vpop.f32.mrb[7].mxu1 }
 0x2dd   : > { %v4144_v11 = vpop.f32.mrb[8].mxu0  ;;  %v4195_v16 = vpop.f32.mrb[8].mxu1 }
 0x2de   : > { %v4248_v15 = vmul.f32 %v4144_v11, %v4144_v11  ;;  %v4146_v18 = vpop.f32.mrb[9].mxu0  ;;  %v4250_v14 = vmul.f32 %v4195_v16, %v4195_v16  ;;  %v4197_v21 = vpop.f32.mrb[9].mxu1 }
 0x2df   : > { %v4249_v19 = vmul.f32 %v4146_v18, %v4146_v18  ;;  %v4148_v22 = vpop.f32.mrb[10].mxu0  ;;  %v4251_v26 = vmul.f32 %v4197_v21, %v4197_v21  ;;  %v4199_v54 = vpop.f32.mrb[10].mxu1 }
 0x2e0   : > { %v7499_v25 = vadd.f32 %v4248_v15, %v4236_v8  ;;  %v4252_v1 = vmul.f32 %v4148_v22, %v4148_v22  ;;  %v4150_v57 = vpop.f32.mrb[11].mxu0  ;;  %v7501_v27 = vadd.f32 %v4250_v14, %v4238_v9  ;;  %v4254_v60 = vmul.f32 %v4199_v54, %v4199_v54  ;;  %v4201_v44 = vpop.f32.mrb[11].mxu1 }
 0x2e1   : > { %v7503_v28 = vadd.f32 %v4249_v19, %v4237_v12  ;;  %v4253_v2 = vmul.f32 %v4150_v57, %v4150_v57  ;;  %v7506_v30 = vadd.f32 %v4251_v26, %v4239_v40  ;;  %v4255_v31 = vmul.f32 %v4201_v44, %v4201_v44 }
 0x2e2   : > { %5595 = vrsqrt.f32 %v7499_v25  ;;  %v7508_v55 = vadd.f32 %v4252_v1, %v4240_v13  ;;  %v7511_v20 = vadd.f32 %v4254_v60, %v4242_v24  ;;  %vm4274_vm7 = vcmp.eq.f32.partialorder %v7499_v25, inf }
 0x2e3   : > { %5597 = vrsqrt.f32 %v7501_v27  ;;  %v7513_v32 = vadd.f32 %v4253_v2, %v4241_v4  ;;  %v7516_v47 = vadd.f32 %v4255_v31, %v4243_v23  ;;  %vm4281_vm3 = vcmp.eq.f32.partialorder %v7503_v28, inf }
 0x2e4   : > { %5599 = vrsqrt.f32 %v7503_v28  ;;  %v4284_v53 = vand.u32 2147483648, %v7503_v28  ;;  %vm4295_vm4 = vcmp.eq.f32.partialorder %v7506_v30, inf  ;;  %vm4283_vm5 = vcmp.eq.f32.partialorder %v7503_v28, 0.0 }
 0x2e5   : > { %5601 = vrsqrt.f32 %v7506_v30  ;;  %v4154_v34 = vpop.f32.mrb[12].mxu0  ;;  %v4205_v42 = vpop.f32.mrb[12].mxu1  ;;  %v4312_v56 = vand.u32 2147483648, %v7513_v32  ;;  %vm4309_vm6 = vcmp.eq.f32.partialorder %v7513_v32, inf  ;;  %v4298_v59 = vand.u32 2147483648, %v7506_v30 }
 0x2e6   : > { %5603 = vrsqrt.f32 %v7508_v55  ;;  %v4256_v41 = vmul.f32 %v4154_v34, %v4154_v34  ;;  %v4156_v46 = vpop.f32.mrb[13].mxu0  ;;  %v4258_v17 = vmul.f32 %v4205_v42, %v4205_v42  ;;  %v4207_v48 = vpop.f32.mrb[13].mxu1  ;;  %v4326_v62 = vand.u32 2147483648, %v7516_v47 }
 0x2e7   : > { %5605 = vrsqrt.f32 %v7511_v20  ;;  %v4257_v38 = vmul.f32 %v4156_v46, %v4156_v46  ;;  %v4158_v29 = vpop.f32.mrb[14].mxu0  ;;  %v4259_v39 = vmul.f32 %v4207_v48, %v4207_v48  ;;  %v4209_v49 = vpop.f32.mrb[14].mxu1  ;;  %vm4311_vm8 = vcmp.eq.f32.partialorder %v7513_v32, 0.0 }
 0x2e8   : > { %5607 = vrsqrt.f32 %v7513_v32  ;;  %v7522_v45 = vadd.f32 %v4256_v41, %v4244_v33  ;;  %v4159_v5 = vpop.f32.mrb[15].mxu0  ;;  %v7525_v63 = vadd.f32 %v4258_v17, %v4246_v37  ;;  %v4210_v51 = vpop.f32.mrb[15].mxu1  ;;  %vm4323_vm9 = vcmp.eq.f32.partialorder %v7516_v47, inf }
 0x2e9   : > { %5609 = vrsqrt.f32 %v7516_v47  ;;  %v7527_v50 = vadd.f32 %v4257_v38, %v4245_v61  ;;  %v7530_v52 = vadd.f32 %v4259_v39, %v4247_v43  ;;  %vm4276_vm10 = vcmp.eq.f32.partialorder %v7499_v25, 0.0 }
 0x2ea   : > { %5611 = vrsqrt.f32 %v7522_v45  ;;  %v4277_v0 = vand.u32 2147483648, %v7499_v25  ;;  %vm4297_vm11 = vcmp.eq.f32.partialorder %v7506_v30, 0.0  ;;  %vm4325_vm12 = vcmp.eq.f32.partialorder %v7516_v47, 0.0 }
 0x2eb   : > { %5613 = vrsqrt.f32 %v7525_v63  ;;  %vm4302_vm13 = vcmp.eq.f32.partialorder %v7508_v55, inf  ;;  %vm4304_vm14 = vcmp.eq.f32.partialorder %v7508_v55, 0.0  ;;  %v4305_v35 = vand.u32 2147483648, %v7508_v55 }
 0x2ec   : > { %v5596_v58 = vpop.eup %5595  ;;  %5615 = vrsqrt.f32 %v7527_v50  ;;  %vm4288_vm15 = vcmp.eq.f32.partialorder %v7501_v27, inf  ;;  %vm4290_vm0 = vcmp.eq.f32.partialorder %v7501_v27, 0.0  ;;  %v4291_v13 = vand.u32 2147483648, %v7501_v27 }
 0x2ed   : > { %v5598_v10 = vpop.eup %5597  ;;  %5617 = vrsqrt.f32 %v7530_v52  ;;  %v4273_v36 = vmul.f32 %v5596_v58, %v7499_v25  ;;  %vm4316_vm1 = vcmp.eq.f32.partialorder %v7511_v20, inf  ;;  %vm4318_vm2 = vcmp.eq.f32.partialorder %v7511_v20, 0.0 }
 0x2ee   : > { %v5600_v3 = vpop.eup %5599  ;;  %v4287_v6 = vmul.f32 %v5598_v10, %v7501_v27  ;;  %v4319_v18 = vand.u32 2147483648, %v7511_v20  ;;  %v4340_v1 = vand.u32 2147483648, %v7527_v50 }
 0x2ef   : > { %v5602_v7 = vpop.eup %5601  ;;  %v4280_v8 = vmul.f32 %v5600_v3, %v7503_v28  ;;  %v4275_v9 = vsel %vm4274_vm7, %v7499_v25, %v4273_v36  ;;  %vm4337_vm7 = vcmp.eq.f32.partialorder %v7527_v50, inf }
 0x2f0   : > { %v5604_v11 = vpop.eup %5603  ;;  %v4294_v12 = vmul.f32 %v5602_v7, %v7506_v30  ;;  %v4289_v40 = vsel %vm4288_vm15, %v7501_v27, %v4287_v6  ;;  %v4278_v14 = vsel %vm4276_vm10, %v4277_v0, %v4275_v9  ;;  %vm4339_vm15 = vcmp.eq.f32.partialorder %v7527_v50, 0.0 }
 0x2f1   : > { %v5606_v15 = vpop.eup %5605  ;;  %v4301_v16 = vmul.f32 %v5604_v11, %v7508_v55  ;;  %v4282_v4 = vsel %vm4281_vm3, %v7503_v28, %v4280_v8  ;;  %v4292_v26 = vsel %vm4290_vm0, %v4291_v13, %v4289_v40  ;;  %vm4351_vm3 = vcmp.eq.f32.partialorder %v7530_v52, inf }
 0x2f2   : > { %v5608_v24 = vpop.eup %5607  ;;  %v4315_v19 = vmul.f32 %v5606_v15, %v7511_v20  ;;  %v4296_v25 = vsel %vm4295_vm4, %v7506_v30, %v4294_v12  ;;  %v4285_v27 = vsel %vm4283_vm5, %v4284_v53, %v4282_v4  ;;  %vm4353_vm4 = vcmp.eq.f32.partialorder %v7530_v52, 0.0 }
 0x2f3   : > { %v5610_v21 = vpop.eup %5609  ;;  %v4308_v22 = vmul.f32 %v5608_v24, %v7513_v32  ;;  %v4303_v23 = vsel %vm4302_vm13, %v7508_v55, %v4301_v16  ;;  %v4299_v17 = vsel %vm4297_vm11, %v4298_v59, %v4296_v25  ;;  %v4354_v30 = vand.u32 2147483648, %v7530_v52 }
 0x2f4   : > { %v5612_v54 = vpop.eup %5611  ;;  %v4322_v57 = vmul.f32 %v5610_v21, %v7516_v47  ;;  %v4306_v60 = vsel %vm4304_vm14, %v4305_v35, %v4303_v23  ;;  %v4317_v2 = vsel %vm4316_vm1, %v7511_v20, %v4315_v19  ;;  %vm4330_vm5 = vcmp.eq.f32.partialorder %v7522_v45, inf }
 0x2f5   : > { %v5614_v44 = vpop.eup %5613  ;;  %v4310_v31 = vsel %vm4309_vm6, %v7513_v32, %v4308_v22  ;;  %v4356_v34 = vpack.c.bf16 %v4306_v60, %v4278_v14  ;;  %v4320_v33 = vsel %vm4318_vm2, %v4319_v18, %v4317_v2  ;;  %v4329_v28 = vmul.f32 %v5612_v54, %v7522_v45 }
 0x2f6   : > { %v5616_v37 = vpop.eup %5615  ;;  %v4313_v55 = vsel %vm4311_vm8, %v4312_v56, %v4310_v31  ;;  %v4324_v41 = vsel %vm4323_vm9, %v7516_v47, %v4322_v57  ;;  %v4358_v42 = vpack.c.bf16 %v4320_v33, %v4292_v26  ;;  %v4343_v29 = vmul.f32 %v5614_v44, %v7525_v63 }
 0x2f7   : > { %v5618_v46 = vpop.eup %5617  ;;  %v4357_v61 = vpack.c.bf16 %v4313_v55, %v4285_v27  ;;  %v4327_v20 = vsel %vm4325_vm12, %v4326_v62, %v4324_v41  ;;  %v4336_v38 = vmul.f32 %v5616_v37, %v7527_v50  ;;  %v4331_v49 = vsel %vm4330_vm5, %v7522_v45, %v4329_v28 }
 0x2f8   : > { %v4359_v48 = vpack.c.bf16 %v4327_v20, %v4299_v17  ;;  %v4350_v32 = vmul.f32 %v5618_v46, %v7530_v52  ;;  %vm4344_vm6 = vcmp.eq.f32.partialorder %v7525_v63, inf  ;;  %v4333_v53 = vand.u32 2147483648, %v7522_v45 }
 0x2f9   : > { %4652 = vmatprep.mubr.bf16.mxu0 %v4357_v61  ;;  %v4338_v43 = vsel %vm4337_vm7, %v7527_v50, %v4336_v38  ;;  %v4345_v56 = vsel %vm4344_vm6, %v7525_v63, %v4343_v29  ;;  %vm4332_vm8 = vcmp.eq.f32.partialorder %v7522_v45, 0.0  ;;  %v4347_v59 = vand.u32 2147483648, %v7525_v63 }
 0x2fa   : > { %4700 = vmatprep.mubr.bf16.mxu1 %v4359_v48  ;;  %4653 = vmatmul.mubr.bf16.vlgmr.msra.gmra.mrb[16].mxu0 %v4356_v34  ;;  %v4341_v47 = vsel %vm4339_vm15, %v4340_v1, %v4338_v43  ;;  %v4352_v39 = vsel %vm4351_vm3, %v7530_v52, %v4350_v32  ;;  %v4334_v50 = vsel %vm4332_vm8, %v4333_v53, %v4331_v49  ;;  %vm4346_vm9 = vcmp.eq.f32.partialorder %v7525_v63, 0.0 }
 0x2fb   : > { %4701 = vmatmul.mubr.bf16.vlgmr.msra.gmra.mrb[16].mxu1 %v4358_v42  ;;  %v4361_v5 = vpack.c.bf16 %v4341_v47, %v4341_v47  ;;  %v4355_v51 = vsel %vm4353_vm4, %v4354_v30, %v4352_v39  ;;  %v4348_v52 = vsel %vm4346_vm9, %v4347_v59, %v4345_v56  ;;  %v4360_v62 = vpack.c.bf16 %v4334_v50, %v4334_v50 }
 0x2fc   : > { %v4363_v58 = vpack.c.bf16 %v4355_v51, %v4355_v51  ;;  %v4362_v10 = vpack.c.bf16 %v4348_v52, %v4348_v52 }
 0x2fd   : > { %4660 = vmatprep.mubr.bf16.mxu0 %v4361_v5 }
 0x2fe   : > { %4708 = vmatprep.mubr.bf16.mxu1 %v4363_v58 }
 0x302   : > { %4661 = vmatmul.mubr.bf16.gmra.mrb[20].mxu0 %v4360_v62 }
 0x303   : > { %4709 = vmatmul.mubr.bf16.gmra.mrb[20].mxu1 %v4362_v10 }
 0x3cd   : > { %v5395_v36 = vpop.f32.mrb[16].mxu0 }
 0x3ce   : > { %v5423_v0 = vpop.f32.mrb[16].mxu1  ;;  %v5396_v3 = vpop.f32.mrb[17].mxu0 }
 0x3cf   : > { %v5397_v35 = vadd.f32 %v5396_v3, %v5395_v36  ;;  %v5424_v6 = vpop.f32.mrb[17].mxu1  ;;  %v5398_v7 = vpop.f32.mrb[18].mxu0 }
 0x3d0   : > { %v5425_v8 = vadd.f32 %v5424_v6, %v5423_v0  ;;  %v5426_v45 = vpop.f32.mrb[18].mxu1  ;;  %v5399_v9 = vpop.f32.mrb[19].mxu0 }
 0x3d1   : > { %v4655_v11 = vadd.f32 1e-10, %v5397_v35  ;;  %v5400_v12 = vadd.f32 %v5399_v9, %v5398_v7  ;;  %v5427_v40 = vpop.f32.mrb[19].mxu1 }
 0x3d2   : > { %v5428_v13 = vadd.f32 %v5427_v40, %v5426_v45 }
 0x3d3   : > { %v4703_v63 = vadd.f32 %v5425_v8, %v4655_v11  ;;  %v4658_v15 = vadd.f32 1e-10, %v5400_v12 }
 0x3d5   : > { %5619 = vlog2.f32 %v4703_v63  ;;  %v4706_v16 = vadd.f32 %v5428_v13, %v4658_v15  ;;  %v5401_v18 = vpop.f32.mrb[20].mxu0 }
 0x3d6   : > { %v5429_v24 = vpop.f32.mrb[20].mxu1  ;;  %v5402_v4 = vpop.f32.mrb[21].mxu0 }
 0x3d7   : > { %5621 = vlog2.f32 %v4706_v16  ;;  %v5403_v14 = vadd.f32 %v5402_v4, %v5401_v18  ;;  %v5430_v19 = vpop.f32.mrb[21].mxu1  ;;  %v5404_v21 = vpop.f32.mrb[22].mxu0 }
 0x3d8   : > { %v5431_v22 = vadd.f32 %v5430_v19, %v5429_v24  ;;  %v5432_v23 = vpop.f32.mrb[22].mxu1  ;;  %v5405_v26 = vpop.f32.mrb[23].mxu0 }
 0x3d9   : > { %v4663_v1 = vadd.f32 1e-10, %v5403_v14  ;;  %v5433_v54 = vpop.f32.mrb[23].mxu1 }
 0x3db   : > { %v4711_v25 = vadd.f32 %v5431_v22, %v4663_v1 }
 0x3dd   : > { %5623 = vlog2.f32 %v4711_v25 }
 0x3df   : > { %v5620_v57 = vpop.eup %5619 }
 0x3e0   : > { %v4717_v60 = vmul.f32 0.6931472, %v5620_v57 }
 0x3e1   : > { %v5622_v2 = vpop.eup %5621 }
 0x3e2   : > { %v4722_v44 = vmul.f32 0.4342945, %v4717_v60  ;;  %v4719_v27 = vmul.f32 0.6931472, %v5622_v2 }
 0x3e4   : > { %4725 = vst [vmem:[%s206_s23] sm:$0xff] %v4722_v44  ;;  %v4723_v31 = vmul.f32 0.4342945, %v4719_v27 }
 0x3e6   : > { %4726 = vst [vmem:[%s206_s23 + $0x8] sm:$0xff] %v4723_v31 }
 0x3e7   : > { %v5624_v34 = vpop.eup %5623 }
 0x3e8   : > { %v4721_v33 = vmul.f32 0.6931472, %v5624_v34 }
 0x3ea   : > { %v4724_v37 = vmul.f32 0.4342945, %v4721_v33 }
 0x3ec   : > { %4727 = vst [vmem:[%s206_s23 + $0x10] sm:$0xff] %v4724_v37 }
 0x3ed PF: > { %s13_s14 = sadd.s32 1, %s5650_s14   ;;  %s7646_s12 = smov %s5646_s13 }
 0x3ee   : > { %p10_p5 = scmp.ge.s32.totalorder %s13_s14, 4   ;;  %s7647_s13 = smov %s7649_s15 }
 0x3f0   :  { %12 = sbr.rel (!%p10_p5) target bundleno = 2 (0x2), region = 62 }

</bundles_post_ra>
